<compile_context>
chip_gen: v5e
topology: v5e:2x2
jax: 0.10.0
libtpu: 0.0.40
codegen_flags: <defaults>
</compile_context>

<pallas_src>
import functools

import jax
import jax.numpy as jnp
from jax import lax
from jax.experimental import pallas as pl
from jax.experimental.pallas import tpu as pltpu

# ----------------------------- static sizes ---------------------------------
ROW = 10                         # rows per state; also fc1 in_features
H1 = 100                         # fc1 out_features
H1P = 128                        # padded fc1 / residual width (lane-aligned)
TR = 200                         # width of each trunk branch (v-Linear / fc-Linear)
F_OFF = 256                      # offset of the `fc` branch inside the fused trunk
TRUNK_N = 512                    # fused trunk width: [hv(200)|pad|f(200)|pad|carrier@511]
HEAD_N = 8                       # packed head rows: [v, a0, a1, b0, b1, pad, pad, pad]
STATES_PER_BLOCK = 64            # states per grid step; 64*10 = 640 lanes (5 x 128)
LANE_BLK = STATES_PER_BLOCK * ROW


def _softplus(z):
    # Matches torch.nn.Softplus(beta=1, threshold=20).
    return jnp.where(z > 20.0, z, jnp.log1p(jnp.exp(jnp.minimum(z, 20.0))))


# ------------------------------- kernel -------------------------------------
def net_kernel(x_ref, w1_ref, wt_ref, wh_ref, out_ref):
    x = x_ref[...]                                         # (128, 640) feature-major

    # fc1 (+bias via carrier row 126) -> Dropout2d (eval: id) -> max_pool1d(k=1: id)
    # -> ReLU -> + residual (rows 0:100 of x).  Row 127 of h becomes the constant-1
    # carrier for the trunk biases; extra rows (100:127) hit zero trunk weights.
    h = jnp.maximum(
        jnp.dot(w1_ref[...], x, preferred_element_type=jnp.float32), 0.0) + x

    # Fused trunk: value branch rows 0:200 | fc branch rows 256:456, biases carried
    # by column 127 of h; row 511 of t becomes the constant-1 head-bias carrier.
    t = jnp.maximum(
        jnp.dot(wt_ref[...], h, preferred_element_type=jnp.float32), 0.0)   # (512, 640)

    # Fused heads: rows [v | alpha_raw(2) | beta_raw(2) | pad(3)].
    head = jnp.dot(wh_ref[...], t, preferred_element_type=jnp.float32)      # (8, 640)

    row = lax.broadcasted_iota(jnp.int32, head.shape, 0)
    sp1 = _softplus(head) + 1.0
    # row 0 is the raw value output; rows 1:5 get Softplus(.) + 1 (rows 5:8 unused).
    out_ref[...] = jnp.where(row == 0, head, sp1)


# --------------------------- parameter handling -----------------------------
def init_params(key):
    """Deterministic init mimicking PyTorch's default Linear init (U(-1/sqrt(fan_in),..))."""
    def linear(k, fan_in, fan_out):
        k_w, k_b = jax.random.split(k)
        bound = 1.0 / (fan_in ** 0.5)
        w = jax.random.uniform(k_w, (fan_out, fan_in), jnp.float32, -bound, bound)
        b = jax.random.uniform(k_b, (fan_out,), jnp.float32, -bound, bound)
        return w, b

    ks = jax.random.split(key, 6)
    return {
        "fc1": linear(ks[0], 10, 100),
        "v1": linear(ks[1], 100, 200),
        "v2": linear(ks[2], 200, 1),
        "fc": linear(ks[3], 100, 200),
        "alpha": linear(ks[4], 200, 2),
        "beta": linear(ks[5], 200, 2),
    }


def prepare_params(params):
    """One-time packing into three feature-major, fully tile-aligned weight slabs."""
    w1, b1 = params["fc1"]      # (100, 10), (100,)
    wv1, bv1 = params["v1"]     # (200, 100), (200,)
    wv2, bv2 = params["v2"]     # (1, 200), (1,)
    wf, bf = params["fc"]       # (200, 100), (200,)
    wa, ba = params["alpha"]    # (2, 200), (2,)
    wb, bb = params["beta"]     # (2, 200), (2,)

    # fc1 slab (128, 128): cols 100:110 take the fc1 input rows of X, col 126 is
    # the bias carrier, [127, 126] makes h row 127 == 1 (trunk bias carrier).
    w1_slab = jnp.zeros((H1P, H1P), jnp.float32)
    w1_slab = w1_slab.at[0:H1, H1:H1 + ROW].set(w1)
    w1_slab = w1_slab.at[0:H1, 126].set(b1)
    w1_slab = w1_slab.at[127, 126].set(1.0)

    # trunk slab (512, 128): [v-branch rows 0:200 | fc-branch rows 256:456],
    # biases in column 127, [511, 127] makes t row 511 == 1 (head bias carrier).
    wt_slab = jnp.zeros((TRUNK_N, H1P), jnp.float32)
    wt_slab = wt_slab.at[0:TR, 0:H1].set(wv1)
    wt_slab = wt_slab.at[F_OFF:F_OFF + TR, 0:H1].set(wf)
    wt_slab = wt_slab.at[0:TR, 127].set(bv1)
    wt_slab = wt_slab.at[F_OFF:F_OFF + TR, 127].set(bf)
    wt_slab = wt_slab.at[511, 127].set(1.0)

    # head slab (8, 512): rows [v | alpha(2) | beta(2) | pad(3)], biases in col 511.
    wh_slab = jnp.zeros((HEAD_N, TRUNK_N), jnp.float32)
    wh_slab = wh_slab.at[0, 0:TR].set(wv2[0])
    wh_slab = wh_slab.at[1:3, F_OFF:F_OFF + TR].set(wa)
    wh_slab = wh_slab.at[3:5, F_OFF:F_OFF + TR].set(wb)
    wh_slab = wh_slab.at[0, 511].set(bv2[0])
    wh_slab = wh_slab.at[1:3, 511].set(ba)
    wh_slab = wh_slab.at[3:5, 511].set(bb)

    # Guard the bias-carrier invariants the fusion relies on (review concern).
    assert float(w1_slab[127, 126]) == 1.0
    assert float(wt_slab[511, 127]) == 1.0

    return {"w1": w1_slab, "wt": wt_slab, "wh": wh_slab}


# ------------------------------- wrappers ------------------------------------
@jax.jit
def _net_forward_packed(xs_padded, w1_slab, wt_slab, wh_slab):
    """xs_padded: (Npad, 10, 10) with Npad % STATES_PER_BLOCK == 0.

    Returns the packed heads (8, Npad*10): rows [v | alpha(2) | beta(2) | pad(3)],
    one column per (state, row).
    """
    npad = xs_padded.shape[0]
    g = npad // STATES_PER_BLOCK
    m = npad * ROW

    # Wrapper-side layout plumbing (free for the kernel): build the feature-major
    # activation slab X of shape (128, m).
    rows = xs_padded.reshape(m, ROW).astype(jnp.float32)                    # fc1 inputs
    resid = jnp.broadcast_to(
        xs_padded.reshape(npad, 1, H1), (npad, ROW, H1)
    ).reshape(m, H1).astype(jnp.float32)                                    # residuals
    xp = jnp.concatenate(
        [resid,                                   # cols   0:100
         rows,                                    # cols 100:110
         jnp.zeros((m, 16), jnp.float32),         # cols 110:126
         jnp.ones((m, 1), jnp.float32),           # col  126 (fc1 bias carrier)
         jnp.zeros((m, 1), jnp.float32)],         # col  127 (stays 0)
        axis=1).T                                                            # (128, m)

    return pl.pallas_call(
        net_kernel,
        out_shape=jax.ShapeDtypeStruct((HEAD_N, m), jnp.float32),
        grid=(g,),
        in_specs=[
            pl.BlockSpec((H1P, LANE_BLK), lambda i: (0, i)),
            # constant index_maps -> weight slabs stay resident in VMEM (no re-DMA)
            pl.BlockSpec((H1P, H1P), lambda i: (0, 0)),
            pl.BlockSpec((TRUNK_N, H1P), lambda i: (0, 0)),
            pl.BlockSpec((HEAD_N, TRUNK_N), lambda i: (0, 0)),
        ],
        out_specs=pl.BlockSpec((HEAD_N, LANE_BLK), lambda i: (0, i)),
        compiler_params=pltpu.CompilerParams(
            dimension_semantics=("parallel",)),   # v7x megacore shards the batched grid
    )(xp, w1_slab, wt_slab, wh_slab)


def net_forward(x, prepared):
    """x: (10, 10) single state or (N, 10, 10) batch of states."""
    single = x.ndim == 2
    xs = x[None] if single else x
    assert xs.shape[1:] == (ROW, ROW), "residual .view(-1,1,100) requires (10,10) states"
    n = xs.shape[0]

    # Pad the state count to a multiple of STATES_PER_BLOCK; keep the grid-step
    # count even (when > 1) so the two v7x TensorCores get equal halves.
    g = pl.cdiv(n, STATES_PER_BLOCK)
    if g > 1 and g % 2:
        g += 1
    npad = g * STATES_PER_BLOCK
    if npad != n:
        xs = jnp.concatenate([xs, jnp.zeros((npad - n, ROW, ROW), xs.dtype)], axis=0)

    packed = _net_forward_packed(xs, prepared["w1"], prepared["wt"], prepared["wh"])
    vals = packed[:, : n * ROW]                       # (8, n*10)
    v = vals[0].reshape(n, ROW, 1)
    alpha = vals[1:3].T.reshape(n, ROW, 2)
    beta = vals[3:5].T.reshape(n, ROW, 2)
    if single:
        v, alpha, beta = v[0], alpha[0], beta[0]
    return (alpha, beta), v


def reference_forward(x, params):
    """Plain-JAX reference matching the PyTorch forward (eval mode), single (10,10)."""
    dot = functools.partial(jnp.dot, precision=jax.lax.Precision.HIGHEST)
    w1, b1 = params["fc1"]
    wv1, bv1 = params["v1"]
    wv2, bv2 = params["v2"]
    wf, bf = params["fc"]
    wa, ba = params["alpha"]
    wb, bb = params["beta"]
    h = jnp.maximum(dot(x, w1.T) + b1, 0.0) + x.reshape(1, 100)
    hv = jnp.maximum(dot(h, wv1.T) + bv1, 0.0)
    v = dot(hv, wv2.T) + bv2
    f = jnp.maximum(dot(h, wf.T) + bf, 0.0)
    alpha = jax.nn.softplus(dot(f, wa.T) + ba) + 1.0
    beta = jax.nn.softplus(dot(f, wb.T) + bb) + 1.0
    return (alpha, beta), v


# --------------------------------- demo --------------------------------------
if __name__ == "__main__":
    key = jax.random.PRNGKey(0)
    k_param, k_x = jax.random.split(key)

    params = init_params(k_param)
    prepared = prepare_params(params)       # one-time packing (outside the per-call path)

    # single (10, 10) state
    x = jax.random.normal(k_x, (ROW, ROW), dtype=jnp.float32)
    (alpha, beta), v = net_forward(x, prepared)
    jax.block_until_ready((alpha, beta, v))
    assert alpha.shape == (10, 2) and beta.shape == (10, 2) and v.shape == (10, 1)
    assert bool(jnp.all(alpha > 1.0)) and bool(jnp.all(beta > 1.0))

    (alpha_r, beta_r), v_r = reference_forward(x, params)
    assert bool(jnp.allclose(alpha, alpha_r, atol=2e-3, rtol=2e-3))
    assert bool(jnp.allclose(beta, beta_r, atol=2e-3, rtol=2e-3))
    assert bool(jnp.allclose(v, v_r, atol=2e-3, rtol=2e-3))

    # small batch (single grid step)
    xs = jax.random.normal(jax.random.PRNGKey(1), (4, ROW, ROW), dtype=jnp.float32)
    xs = xs.at[0].set(x)
    (alpha_b, beta_b), v_b = net_forward(xs, prepared)
    jax.block_until_ready((alpha_b, beta_b, v_b))
    assert alpha_b.shape == (4, 10, 2) and beta_b.shape == (4, 10, 2) and v_b.shape == (4, 10, 1)
    assert bool(jnp.allclose(alpha_b[0], alpha, atol=1e-5, rtol=1e-5))

    # larger batch (multi-step, megacore-shardable grid) vs. vmapped reference
    xs_big = jax.random.normal(jax.random.PRNGKey(2), (130, ROW, ROW), dtype=jnp.float32)
    (alpha_g, beta_g), v_g = net_forward(xs_big, prepared)
    jax.block_until_ready((alpha_g, beta_g, v_g))
    (alpha_gr, beta_gr), v_gr = jax.vmap(lambda s: reference_forward(s, params))(xs_big)
    assert bool(jnp.allclose(alpha_g, alpha_gr, atol=2e-3, rtol=2e-3))
    assert bool(jnp.allclose(beta_g, beta_gr, atol=2e-3, rtol=2e-3))
    assert bool(jnp.allclose(v_g, v_gr, atol=2e-3, rtol=2e-3))

    print("KERNEL_OK")
</pallas_src>

<mosaic_0001>
module attributes {stable_mosaic.version = 11 : i64} {
  func.func @net_kernel(%arg0: i32, %arg1: memref<128x640xf32, #tpu.memory_space<vmem>>, %arg2: memref<128x128xf32, #tpu.memory_space<vmem>>, %arg3: memref<512x128xf32, #tpu.memory_space<vmem>>, %arg4: memref<8x512xf32, #tpu.memory_space<vmem>>, %arg5: memref<8x640xf32, #tpu.memory_space<vmem>>) attributes {dimension_semantics = [#tpu.dimension_semantics<parallel>], iteration_bounds = array<i64: 1>, scalar_prefetch = 0 : i64, scratch_operands = 0 : i64, tpu.core_type = #tpu.core_type<tc>, window_params = [{transform_indices = @transform_0, window_bounds = array<i64: 128, 640>}, {pipeline_mode = #tpu.pipeline_mode<synchronous>, transform_indices = @transform_1, window_bounds = array<i64: 128, 128>}, {pipeline_mode = #tpu.pipeline_mode<synchronous>, transform_indices = @transform_2, window_bounds = array<i64: 512, 128>}, {pipeline_mode = #tpu.pipeline_mode<synchronous>, transform_indices = @transform_3, window_bounds = array<i64: 8, 512>}, {transform_indices = @transform_4, window_bounds = array<i64: 8, 640>}]} {
    %c0 = arith.constant 0 : index
    %c0_0 = arith.constant 0 : index
    %0 = vector.load %arg1[%c0, %c0_0] : memref<128x640xf32, #tpu.memory_space<vmem>>, vector<128x640xf32>
    %c0_1 = arith.constant 0 : index
    %c0_2 = arith.constant 0 : index
    %1 = vector.load %arg2[%c0_1, %c0_2] : memref<128x128xf32, #tpu.memory_space<vmem>>, vector<128x128xf32>
    %cst = arith.constant dense<0.000000e+00> : vector<128x640xf32>
    %2 = tpu.matmul %1, %0, %cst {dimension_numbers = #tpu.dot_dimension_numbers<[1], [0], [0], [1], [0, 0, 1, 1], [], []>} : vector<128x128xf32>, vector<128x640xf32>, vector<128x640xf32> -> vector<128x640xf32>
    %cst_3 = arith.constant 0.000000e+00 : f32
    %3 = vector.broadcast %cst_3 : f32 to vector<128x640xf32>
    %4 = arith.maximumf %2, %3 : vector<128x640xf32>
    %5 = arith.addf %4, %0 : vector<128x640xf32>
    %c0_4 = arith.constant 0 : index
    %c0_5 = arith.constant 0 : index
    %6 = vector.load %arg3[%c0_4, %c0_5] : memref<512x128xf32, #tpu.memory_space<vmem>>, vector<512x128xf32>
    %cst_6 = arith.constant dense<0.000000e+00> : vector<512x640xf32>
    %7 = tpu.matmul %6, %5, %cst_6 {dimension_numbers = #tpu.dot_dimension_numbers<[1], [0], [0], [1], [0, 0, 1, 1], [], []>} : vector<512x128xf32>, vector<128x640xf32>, vector<512x640xf32> -> vector<512x640xf32>
    %cst_7 = arith.constant 0.000000e+00 : f32
    %8 = vector.broadcast %cst_7 : f32 to vector<512x640xf32>
    %9 = arith.maximumf %7, %8 : vector<512x640xf32>
    %c0_8 = arith.constant 0 : index
    %c0_9 = arith.constant 0 : index
    %10 = vector.load %arg4[%c0_8, %c0_9] : memref<8x512xf32, #tpu.memory_space<vmem>>, vector<8x512xf32>
    %cst_10 = arith.constant dense<0.000000e+00> : vector<8x640xf32>
    %11 = tpu.matmul %10, %9, %cst_10 {dimension_numbers = #tpu.dot_dimension_numbers<[1], [0], [0], [1], [0, 0, 1, 1], [], []>} : vector<8x512xf32>, vector<512x640xf32>, vector<8x640xf32> -> vector<8x640xf32>
    %12 = tpu.iota {dimensions = array<i32: 0>} : vector<8x640xi32>
    %cst_11 = arith.constant 2.000000e+01 : f32
    %13 = vector.broadcast %cst_11 : f32 to vector<8x640xf32>
    %14 = arith.cmpf ogt, %11, %13 : vector<8x640xf32>
    %cst_12 = arith.constant 2.000000e+01 : f32
    %15 = vector.broadcast %cst_12 : f32 to vector<8x640xf32>
    %16 = arith.minimumf %11, %15 : vector<8x640xf32>
    %17 = math.exp %16 : vector<8x640xf32>
    %18 = math.log1p %17 : vector<8x640xf32>
    %19 = arith.select %14, %11, %18 : vector<8x640xi1>, vector<8x640xf32>
    %cst_13 = arith.constant 1.000000e+00 : f32
    %20 = vector.broadcast %cst_13 : f32 to vector<8x640xf32>
    %21 = arith.addf %19, %20 : vector<8x640xf32>
    %c0_i32 = arith.constant 0 : i32
    %22 = vector.broadcast %c0_i32 : i32 to vector<8x640xi32>
    %23 = arith.cmpi eq, %12, %22 : vector<8x640xi32>
    %24 = arith.select %23, %11, %21 : vector<8x640xi1>, vector<8x640xf32>
    %c0_14 = arith.constant 0 : index
    %c0_15 = arith.constant 0 : index
    %25 = vector.load %arg5[%c0_14, %c0_15] : memref<8x640xf32, #tpu.memory_space<vmem>>, vector<8x640xf32>
    tpu.vector_store %arg5[%c0_14, %c0_15], %24 {strides = array<i32>} : memref<8x640xf32, #tpu.memory_space<vmem>>, vector<8x640xf32>,
    return
  }
  func.func @transform_0(%arg0: i32) -> (i32, i32) {
    %c0_i32 = arith.constant 0 : i32
    %c0_i32_0 = arith.constant 0 : i32
    return %c0_i32, %arg0 : i32, i32
  }
  func.func @transform_1(%arg0: i32) -> (i32, i32) {
    %c0_i32 = arith.constant 0 : i32
    %c0_i32_0 = arith.constant 0 : i32
    %c0_i32_1 = arith.constant 0 : i32
    return %c0_i32, %c0_i32_0 : i32, i32
  }
  func.func @transform_2(%arg0: i32) -> (i32, i32) {
    %c0_i32 = arith.constant 0 : i32
    %c0_i32_0 = arith.constant 0 : i32
    %c0_i32_1 = arith.constant 0 : i32
    return %c0_i32, %c0_i32_0 : i32, i32
  }
  func.func @transform_3(%arg0: i32) -> (i32, i32) {
    %c0_i32 = arith.constant 0 : i32
    %c0_i32_0 = arith.constant 0 : i32
    %c0_i32_1 = arith.constant 0 : i32
    return %c0_i32, %c0_i32_0 : i32, i32
  }
  func.func @transform_4(%arg0: i32) -> (i32, i32) {
    %c0_i32 = arith.constant 0 : i32
    %c0_i32_0 = arith.constant 0 : i32
    return %c0_i32, %arg0 : i32, i32
  }
}

</mosaic_0001>

<bundles_post_ra>
// kernel: _net_forward_packed.1
= control target key start
LH: loop header
LB: loop body
LE: loop exit
PB: predicated region body
PF: predicated region fallthrough
CT: control target
= control target key end

     0   :  { %s5318_s0 = inlined_call_operand.vmem [shape: f32[128,640], index: 0, kind: input, shape index: {}]   ;;  %s5319_s1 = inlined_call_operand.vmem [shape: f32[128,128], index: 1, kind: input, shape index: {}]   ;;  %s5320_s2 = inlined_call_operand.vmem [shape: f32[512,128], index: 2, kind: input, shape index: {}]   ;;  %s5321_s3 = inlined_call_operand.vmem [shape: f32[8,512], index: 3, kind: input, shape index: {}]   ;;  %s5322_s4 = inlined_call_operand.hbm [shape: f32[8,640], index: 4, kind: output, shape index: {}]  }
   0x1   :  { %v2728_v0 = vld [vmem:[%s5318_s0 + $0x258] sm:$0xff]  ;;  %v2733_v1 = vld [vmem:[%s5318_s0 + $0x230] sm:$0xff]  ;;  %v2740_v2 = vld [vmem:[%s5318_s0 + $0x208] sm:$0xff] }
   0x2   :  { %114 = vmatpush.msra.mxu0 %v2728_v0  ;;  %2536 = vmatpush.msra.mxu3 %v2728_v0  ;;  %v2747_v3 = vld [vmem:[%s5318_s0 + $0x1e0] sm:$0xff]  ;;  %v2754_v4 = vld [vmem:[%s5318_s0 + $0x1b8] sm:$0xff]  ;;  %v2759_v5 = vld [vmem:[%s5318_s0 + $0x268] sm:$0xff] }
   0x3   :  { %v2766_v6 = vld [vmem:[%s5318_s0 + $0x240] sm:$0xff]  ;;  %v2771_v7 = vld [vmem:[%s5318_s0 + $0x190] sm:$0xff]  ;;  %244 = vmatpush.msra.mxu2 %v2759_v5  ;;  %v2779_v8 = vld [vmem:[%s5318_s0 + $0x218] sm:$0xff] }
   0x4   :  { %115 = vmatpush.msra.mxu0 %v2733_v1  ;;  %2537 = vmatpush.msra.mxu3 %v2733_v1  ;;  %v2784_v9 = vld [vmem:[%s5318_s0 + $0x168] sm:$0xff]  ;;  %v2792_v10 = vld [vmem:[%s5318_s0 + $0x1f0] sm:$0xff]  ;;  %v2797_v11 = vld [vmem:[%s5318_s0 + $0x140] sm:$0xff] }
   0x5   :  { %245 = vmatpush.msra.mxu2 %v2766_v6 }
   0x6   :  { %116 = vmatpush.msra.mxu0 %v2740_v2  ;;  %2538 = vmatpush.msra.mxu3 %v2740_v2 }
   0x7   :  { %246 = vmatpush.msra.mxu2 %v2779_v8 }
   0x8   :  { %117 = vmatpush.msra.mxu0 %v2747_v3  ;;  %2539 = vmatpush.msra.mxu3 %v2747_v3 }
   0xa   :  { %118 = vmatpush.msra.mxu0 %v2754_v4  ;;  %2540 = vmatpush.msra.mxu3 %v2754_v4 }
   0xc   :  { %119 = vmatpush.msra.mxu0 %v2771_v7  ;;  %2541 = vmatpush.msra.mxu3 %v2771_v7 }
   0xd   :  { %9 = vsyncpa [#allocation3], 0  ;;  %v2805_v12 = vld [vmem:[%s5318_s0 + $0x1c8] sm:$0xff]  ;;  %v2810_v13 = vld [vmem:[%s5318_s0 + $0x118] sm:$0xff]  ;;  %247 = vmatpush.msra.mxu2 %v2792_v10  ;;  %s2527_s23 = sshll.u32 %s5322_s4, 4  ;;  %s2528_s23 = int_to_ptr.hbm [resolvable:$true] %s2527_s23 }
   0xe   :  { %120 = vmatpush.msra.mxu0 %v2784_v9  ;;  %2542 = vmatpush.msra.mxu3 %v2784_v9  ;;  %v2818_v14 = vld [vmem:[%s5318_s0 + $0x1a0] sm:$0xff]  ;;  %v2823_v15 = vld [vmem:[%s5318_s0 + $0xf0] sm:$0xff]  ;;  %v2831_v16 = vld [vmem:[%s5318_s0 + $0x178] sm:$0xff] }
   0xf   :  { %248 = vmatpush.msra.mxu2 %v2805_v12  ;;  %v2836_v17 = vld [vmem:[%s5318_s0 + $0xc8] sm:$0xff]  ;;  %v2844_v18 = vld [vmem:[%s5318_s0 + $0x150] sm:$0xff]  ;;  %v2849_v19 = vld [vmem:[%s5318_s0 + $0xa0] sm:$0xff] }
  0x10   :  { %121 = vmatpush.msra.mxu0 %v2797_v11  ;;  %2543 = vmatpush.msra.mxu3 %v2797_v11  ;;  %v2857_v20 = vld [vmem:[%s5318_s0 + $0x128] sm:$0xff]  ;;  %v2862_v21 = vld [vmem:[%s5318_s0 + $0x78] sm:$0xff]  ;;  %v2870_v22 = vld [vmem:[%s5318_s0 + $0x100] sm:$0xff] }
  0x11   :  { %249 = vmatpush.msra.mxu2 %v2818_v14  ;;  %5382 = vst [vmem:[#allocation5_spill] sm:$0xff] %v2857_v20  ;;  %v2875_v23 = vld [vmem:[%s5318_s0 + $0x50] sm:$0xff]  ;;  %v2883_v24 = vld [vmem:[%s5318_s0 + $0xd8] sm:$0xff]  ;;  %v2888_v25 = vld [vmem:[%s5318_s0 + $0x28] sm:$0xff] }
  0x12   :  { %122 = vmatpush.msra.mxu0 %v2810_v13  ;;  %2544 = vmatpush.msra.mxu3 %v2810_v13  ;;  %5383 = vst [vmem:[#allocation6_spill] sm:$0xff] %v2870_v22  ;;  %v2896_v26 = vld [vmem:[%s5318_s0 + $0xb0] sm:$0xff]  ;;  %v2901_v27 = vld [vmem:[%s5318_s0] sm:$0xff]  ;;  %v2914_v29 = vld [vmem:[%s5319_s1 + $0x48] sm:$0xff] }
  0x13   :  { %250 = vmatpush.msra.mxu2 %v2831_v16  ;;  %5384 = vst [vmem:[#allocation7_spill] sm:$0xff] %v2883_v24  ;;  %v2909_v28 = vld [vmem:[%s5319_s1] sm:$0xff]  ;;  %v2920_v30 = vld [vmem:[%s5318_s0 + $0x88] sm:$0xff]  ;;  %v2935_v32 = vld [vmem:[%s5318_s0 + $0x38] sm:$0xff] }
  0x14   :  { %123 = vmatpush.msra.mxu0 %v2823_v15  ;;  %2545 = vmatpush.msra.mxu3 %v2823_v15  ;;  %5385 = vst [vmem:[#allocation8_spill] sm:$0xff] %v2896_v26  ;;  %v2929_v31 = vld [vmem:[%s5318_s0 + $0x60] sm:$0xff]  ;;  %v2941_v33 = vld [vmem:[%s5318_s0 + $0x10] sm:$0xff]  ;;  %v2946_v34 = vld [vmem:[%s5319_s1 + $0x8] sm:$0xff] }
  0x15   :  { %251 = vmatpush.msra.mxu2 %v2844_v18  ;;  %5386 = vst [vmem:[#allocation9_spill] sm:$0xff] %v2920_v30  ;;  %v2951_v35 = vld [vmem:[%s5319_s1 + $0x50] sm:$0xff]  ;;  %v2960_v36 = vld [vmem:[%s5318_s0 + $0x260] sm:$0xff]  ;;  %v2965_v37 = vld [vmem:[%s5318_s0 + $0x238] sm:$0xff] }
  0x16   :  { %124 = vmatpush.msra.mxu0 %v2836_v17  ;;  %2546 = vmatpush.msra.mxu3 %v2836_v17  ;;  %5387 = vst [vmem:[#allocation10_spill] sm:$0xff] %v2929_v31  ;;  %v2972_v38 = vld [vmem:[%s5318_s0 + $0x210] sm:$0xff]  ;;  %v2978_v39 = vld [vmem:[%s5318_s0 + $0x1e8] sm:$0xff]  ;;  %v2988_v41 = vld [vmem:[%s5319_s1 + $0x58] sm:$0xff] }
  0x17   :  { %252 = vmatpush.msra.mxu2 %v2857_v20  ;;  %5388 = vst [vmem:[#allocation11_spill] sm:$0xff] %v2935_v32  ;;  %v2983_v40 = vld [vmem:[%s5319_s1 + $0x10] sm:$0xff]  ;;  %v2997_v42 = vld [vmem:[%s5318_s0 + $0x1c0] sm:$0xff]  ;;  %v3002_v43 = vld [vmem:[%s5318_s0 + $0x198] sm:$0xff] }
  0x18   :  { %125 = vmatpush.msra.mxu0 %v2849_v19  ;;  %2547 = vmatpush.msra.mxu3 %v2849_v19  ;;  %5389 = vst [vmem:[#allocation12_spill] sm:$0xff] %v2941_v33  ;;  %v3009_v44 = vld [vmem:[%s5318_s0 + $0x170] sm:$0xff]  ;;  %v3015_v45 = vld [vmem:[%s5318_s0 + $0x148] sm:$0xff]  ;;  %v3020_v46 = vld [vmem:[%s5319_s1 + $0x18] sm:$0xff] }
  0x19   :  { %253 = vmatpush.msra.mxu2 %v2870_v22  ;;  %5390 = vst [vmem:[#allocation13_spill] sm:$0xff] %v2960_v36  ;;  %v3025_v47 = vld [vmem:[%s5319_s1 + $0x60] sm:$0xff]  ;;  %v3039_v49 = vld [vmem:[%s5318_s0 + $0xf8] sm:$0xff]  ;;  %v3046_v50 = vld [vmem:[%s5318_s0 + $0xd0] sm:$0xff] }
  0x1a   :  { %126 = vmatpush.msra.mxu0 %v2862_v21  ;;  %2548 = vmatpush.msra.mxu3 %v2862_v21  ;;  %5391 = vst [vmem:[#allocation14_spill] sm:$0xff] %v2965_v37  ;;  %v3034_v48 = vld [vmem:[%s5318_s0 + $0x120] sm:$0xff]  ;;  %v3052_v51 = vld [vmem:[%s5318_s0 + $0xa8] sm:$0xff]  ;;  %v3076_v55 = vld [vmem:[%s5318_s0 + $0x58] sm:$0xff] }
  0x1b   :  { %254 = vmatpush.msra.mxu2 %v2883_v24  ;;  %5392 = vst [vmem:[#allocation15_spill] sm:$0xff] %v2972_v38  ;;  %v3057_v52 = vld [vmem:[%s5319_s1 + $0x20] sm:$0xff]  ;;  %v3062_v53 = vld [vmem:[%s5319_s1 + $0x68] sm:$0xff]  ;;  %v3083_v56 = vld [vmem:[%s5318_s0 + $0x30] sm:$0xff] }
  0x1c   :  { %127 = vmatpush.msra.mxu0 %v2875_v23  ;;  %2549 = vmatpush.msra.mxu3 %v2875_v23  ;;  %5393 = vst [vmem:[#allocation16_spill] sm:$0xff] %v2978_v39  ;;  %v3071_v54 = vld [vmem:[%s5318_s0 + $0x80] sm:$0xff]  ;;  %v3089_v57 = vld [vmem:[%s5318_s0 + $0x8] sm:$0xff]  ;;  %v3099_v59 = vld [vmem:[%s5319_s1 + $0x70] sm:$0xff] }
  0x1d   :  { %255 = vmatpush.msra.mxu2 %v2896_v26  ;;  %5394 = vst [vmem:[#allocation17_spill] sm:$0xff] %v2997_v42  ;;  %v3094_v58 = vld [vmem:[%s5319_s1 + $0x28] sm:$0xff]  ;;  %v3109_v60 = vld [vmem:[%s5319_s1 + $0x30] sm:$0xff]  ;;  %v3114_v61 = vld [vmem:[%s5319_s1 + $0x78] sm:$0xff] }
  0x1e   :  { %128 = vmatpush.msra.mxu0 %v2888_v25  ;;  %2550 = vmatpush.msra.mxu3 %v2888_v25  ;;  %5395 = vst [vmem:[#allocation18_spill] sm:$0xff] %v3002_v43  ;;  %v3122_v62 = vld [vmem:[%s5319_s1 + $0x38] sm:$0xff]  ;;  %v3129_v63 = vld [vmem:[%s5319_s1 + $0x40] sm:$0xff] }
  0x1f   :  { %256 = vmatpush.msra.mxu2 %v2920_v30  ;;  %5396 = vst [vmem:[#allocation19_spill] sm:$0xff] %v3009_v44 }
  0x20   :  { %129 = vmatpush.msra.mxu0 %v2901_v27  ;;  %2551 = vmatpush.msra.mxu3 %v2901_v27  ;;  %5397 = vst [vmem:[#allocation20_spill] sm:$0xff] %v3015_v45 }
  0x21   :  { %130 = vmatmul.f32.vlgmr.msra.gmra.mxu0 %v2909_v28  ;;  %157 = vmatmul.f32.vlgmr.msra.gmra.mxu3 %v2914_v29  ;;  %5398 = vst [vmem:[#allocation21_spill] sm:$0xff] %v3034_v48 }
  0x22   :  { %257 = vmatpush.msra.mxu2 %v2929_v31  ;;  %179 = vmatpush.msrb.mxu0 %v2960_v36  ;;  %5399 = vst [vmem:[#allocation22_spill] sm:$0xff] %v3039_v49  ;;  %v22_v31 = vld [vmem:[%s5318_s0 + $0x20] sm:$0xff] }
  0x23   :  { %5400 = vst [vmem:[#allocation23_spill] sm:$0xff] %v3046_v50 }
  0x24   :  { %258 = vmatpush.msra.mxu2 %v2935_v32  ;;  %180 = vmatpush.msrb.mxu0 %v2965_v37  ;;  %5401 = vst [vmem:[#allocation24_spill] sm:$0xff] %v3052_v51  ;;  %v37_v37 = vld [vmem:[%s5318_s0 + $0x98] sm:$0xff] }
  0x25   :  { %5402 = vst [vmem:[#allocation25_spill] sm:$0xff] %v3071_v54 }
  0x26   :  { %259 = vmatpush.msra.mxu2 %v2941_v33  ;;  %181 = vmatpush.msrb.mxu0 %v2972_v38  ;;  %5403 = vst [vmem:[#allocation26_spill] sm:$0xff] %v3076_v55  ;;  %v3326_v38 = vld [vmem:[%s5318_s0 + $0x110] sm:$0xff] }
  0x27   :  { %260 = vmatmul.f32.vlgmr.msra.gmra.mxu2 %v2909_v28  ;;  %5404 = vst [vmem:[#allocation27_spill] sm:$0xff] %v3083_v56 }
  0x28   :  { %182 = vmatpush.msrb.mxu0 %v2978_v39  ;;  %5405 = vst [vmem:[#allocation28_spill] sm:$0xff] %v3089_v57  ;;  %v3306_v39 = vld [vmem:[%s5318_s0 + $0x188] sm:$0xff] }
  0x29   :  { %133 = vmatmul.f32.gmra.mxu0 %v2946_v34  ;;  %160 = vmatmul.f32.gmra.mxu3 %v2951_v35  ;;  %5430 = vst [vmem:[#allocation53_spill] sm:$0xff] %v3306_v39 }
  0x2a   :  { %183 = vmatpush.msrb.mxu0 %v2997_v42  ;;  %5433 = vst [vmem:[#allocation56_spill] sm:$0xff] %v3326_v38 }
  0x2c   :  { %184 = vmatpush.msrb.mxu0 %v3002_v43  ;;  %v3296_v43 = vld [vmem:[%s5318_s0 + $0x1b0] sm:$0xff] }
  0x2d   :  { %5428 = vst [vmem:[#allocation51_spill] sm:$0xff] %v3296_v43 }
  0x2e   :  { %185 = vmatpush.msrb.mxu0 %v3009_v44  ;;  %v3286_v44 = vld [vmem:[%s5318_s0 + $0x1d8] sm:$0xff] }
  0x2f   :  { %263 = vmatmul.f32.gmra.mxu2 %v2946_v34  ;;  %5427 = vst [vmem:[#allocation50_spill] sm:$0xff] %v3286_v44 }
  0x30   :  { %186 = vmatpush.msrb.mxu0 %v3015_v45  ;;  %v3274_v45 = vld [vmem:[%s5318_s0 + $0x228] sm:$0xff] }
  0x31   :  { %136 = vmatmul.f32.gmra.mxu0 %v2983_v40  ;;  %163 = vmatmul.f32.gmra.mxu3 %v2988_v41  ;;  %5425 = vst [vmem:[#allocation48_spill] sm:$0xff] %v3274_v45 }
  0x32   :  { %187 = vmatpush.msrb.mxu0 %v3034_v48 }
  0x34   :  { %188 = vmatpush.msrb.mxu0 %v3039_v49 }
  0x36   :  { %189 = vmatpush.msrb.mxu0 %v3046_v50 }
  0x37   :  { %266 = vmatmul.f32.gmra.mxu2 %v2983_v40 }
  0x38   :  { %190 = vmatpush.msrb.mxu0 %v3052_v51 }
  0x39   :  { %139 = vmatmul.f32.gmra.mxu0 %v3020_v46  ;;  %166 = vmatmul.f32.gmra.mxu3 %v3025_v47 }
  0x3a   :  { %191 = vmatpush.msrb.mxu0 %v3071_v54  ;;  %v3164_v54 = vld [vmem:[%s5318_s0 + $0x1f8] sm:$0xff] }
  0x3b   :  { %5409 = vst [vmem:[#allocation32_spill] sm:$0xff] %v3164_v54 }
  0x3c   :  { %192 = vmatpush.msrb.mxu0 %v3076_v55  ;;  %v3158_v55 = vld [vmem:[%s5318_s0 + $0x220] sm:$0xff] }
  0x3d   :  { %5408 = vst [vmem:[#allocation31_spill] sm:$0xff] %v3158_v55 }
  0x3e   :  { %193 = vmatpush.msrb.mxu0 %v3083_v56  ;;  %v3152_v56 = vld [vmem:[%s5318_s0 + $0x248] sm:$0xff] }
  0x3f   :  { %269 = vmatmul.f32.gmra.mxu2 %v3020_v46  ;;  %5407 = vst [vmem:[#allocation30_spill] sm:$0xff] %v3152_v56 }
  0x40   :  { %194 = vmatpush.msrb.mxu0 %v3089_v57  ;;  %v3145_v57 = vld [vmem:[%s5318_s0 + $0x270] sm:$0xff] }
  0x41   :  { %142 = vmatmul.f32.gmra.mxu0 %v3057_v52  ;;  %169 = vmatmul.f32.gmra.mxu3 %v3062_v53  ;;  %5406 = vst [vmem:[#allocation29_spill] sm:$0xff] %v3145_v57 }
  0x42   :  { %309 = vmatpush.msrb.mxu3 %v3145_v57  ;;  %v3190_v57 = vld [vmem:[%s5318_s0 + $0x158] sm:$0xff] }
  0x43   :  { %5413 = vst [vmem:[#allocation36_spill] sm:$0xff] %v3190_v57 }
  0x44   :  { %310 = vmatpush.msrb.mxu3 %v3152_v56  ;;  %v3171_v56 = vld [vmem:[%s5318_s0 + $0x1d0] sm:$0xff] }
  0x45   :  { %5410 = vst [vmem:[#allocation33_spill] sm:$0xff] %v3171_v56 }
  0x46   :  { %311 = vmatpush.msrb.mxu3 %v3158_v55  ;;  %v3178_v55 = vld [vmem:[%s5318_s0 + $0x1a8] sm:$0xff] }
  0x47   :  { %272 = vmatmul.f32.gmra.mxu2 %v3057_v52  ;;  %5411 = vst [vmem:[#allocation34_spill] sm:$0xff] %v3178_v55 }
  0x48   :  { %312 = vmatpush.msrb.mxu3 %v3164_v54  ;;  %v3184_v54 = vld [vmem:[%s5318_s0 + $0x180] sm:$0xff] }
  0x49   :  { %145 = vmatmul.f32.gmra.mxu0 %v3094_v58  ;;  %172 = vmatmul.f32.gmra.mxu3 %v3099_v59  ;;  %5412 = vst [vmem:[#allocation35_spill] sm:$0xff] %v3184_v54 }
  0x4a   :  { %313 = vmatpush.msrb.mxu3 %v3171_v56 }
  0x4c   :  { %314 = vmatpush.msrb.mxu3 %v3178_v55  ;;  %v3197_v55 = vld [vmem:[%s5318_s0 + $0x130] sm:$0xff] }
  0x4d   :  { %5414 = vst [vmem:[#allocation37_spill] sm:$0xff] %v3197_v55 }
  0x4e   :  { %315 = vmatpush.msrb.mxu3 %v3184_v54  ;;  %v3204_v54 = vld [vmem:[%s5318_s0 + $0x108] sm:$0xff] }
  0x4f   :  { %275 = vmatmul.f32.gmra.mxu2 %v3094_v58  ;;  %5415 = vst [vmem:[#allocation38_spill] sm:$0xff] %v3204_v54 }
  0x50   :  { %316 = vmatpush.msrb.mxu3 %v3190_v57  ;;  %v3210_v57 = vld [vmem:[%s5318_s0 + $0xe0] sm:$0xff] }
  0x51   :  { %148 = vmatmul.f32.gmra.mxu0 %v3109_v60  ;;  %175 = vmatmul.f32.gmra.mxu3 %v3114_v61  ;;  %5416 = vst [vmem:[#allocation39_spill] sm:$0xff] %v3210_v57 }
  0x52   :  { %317 = vmatpush.msrb.mxu3 %v3197_v55  ;;  %v3218_v55 = vld [vmem:[%s5318_s0 + $0xb8] sm:$0xff] }
  0x53   :  { %5417 = vst [vmem:[#allocation40_spill] sm:$0xff] %v3218_v55 }
  0x54   :  { %318 = vmatpush.msrb.mxu3 %v3204_v54  ;;  %v3225_v54 = vld [vmem:[%s5318_s0 + $0x90] sm:$0xff] }
  0x55   :  { %5418 = vst [vmem:[#allocation41_spill] sm:$0xff] %v3225_v54 }
  0x56   :  { %319 = vmatpush.msrb.mxu3 %v3210_v57  ;;  %v3232_v57 = vld [vmem:[%s5318_s0 + $0x68] sm:$0xff] }
  0x57   :  { %278 = vmatmul.f32.gmra.mxu2 %v3109_v60  ;;  %5419 = vst [vmem:[#allocation42_spill] sm:$0xff] %v3232_v57 }
  0x58   :  { %320 = vmatpush.msrb.mxu3 %v3218_v55  ;;  %v3240_v55 = vld [vmem:[%s5318_s0 + $0x40] sm:$0xff] }
  0x59   :  { %151 = vmatmul.f32.gmra.mxu0 %v3122_v62  ;;  %5420 = vst [vmem:[#allocation43_spill] sm:$0xff] %v3240_v55 }
  0x5a   :  { %321 = vmatpush.msrb.mxu3 %v3225_v54  ;;  %v3248_v54 = vld [vmem:[%s5318_s0 + $0x18] sm:$0xff] }
  0x5b   :  { %5421 = vst [vmem:[#allocation44_spill] sm:$0xff] %v3248_v54 }
  0x5c   :  { %322 = vmatpush.msrb.mxu3 %v3232_v57  ;;  %v3255_v57 = vld [vmem:[%s5318_s0 + $0x278] sm:$0xff] }
  0x5d   :  { %5422 = vst [vmem:[#allocation45_spill] sm:$0xff] %v3255_v57  ;;  %374 = vmatpush.msra.mxu0 %v3255_v57  ;;  %v3279_v57 = vld [vmem:[%s5318_s0 + $0x200] sm:$0xff] }
  0x5e   :  { %323 = vmatpush.msrb.mxu3 %v3240_v55  ;;  %v3264_v55 = vld [vmem:[%s5318_s0 + $0x250] sm:$0xff]  ;;  %5426 = vst [vmem:[#allocation49_spill] sm:$0xff] %v3279_v57 }
  0x5f   :  { %281 = vmatmul.f32.gmra.mxu2 %v3122_v62  ;;  %5423 = vst [vmem:[#allocation46_spill] sm:$0xff] %v3264_v55  ;;  %375 = vmatpush.msra.mxu0 %v3264_v55 }
  0x60   :  { %324 = vmatpush.msrb.mxu3 %v3248_v54 }
  0x61   :  { %154 = vmatmul.f32.gmra.mxu0 %v3129_v63  ;;  %325 = vmatmul.f32.vlgmr.msrb.gmra.mxu3 %v2909_v28 }
  0x62   :  { %376 = vmatpush.msra.mxu0 %v3274_v45 }
  0x64   :  { %377 = vmatpush.msra.mxu0 %v3279_v57 }
  0x66   :  { %378 = vmatpush.msra.mxu0 %v3286_v44  ;;  %v3311_v44 = vld [vmem:[%s5318_s0 + $0x160] sm:$0xff] }
  0x67   :  { %284 = vmatmul.f32.gmra.mxu2 %v3129_v63  ;;  %5431 = vst [vmem:[#allocation54_spill] sm:$0xff] %v3311_v44 }
  0x68   :  { %379 = vmatpush.msra.mxu0 %v3296_v43  ;;  %v3320_v43 = vld [vmem:[%s5318_s0 + $0x138] sm:$0xff] }
  0x69   :  { %195 = vmatmul.f32.vlgmr.msrb.gmra.mxu0 %v2909_v28  ;;  %328 = vmatmul.f32.gmra.mxu3 %v2946_v34  ;;  %5432 = vst [vmem:[#allocation55_spill] sm:$0xff] %v3320_v43 }
  0x6a   :  { %380 = vmatpush.msra.mxu0 %v3306_v39 }
  0x6c   :  { %381 = vmatpush.msra.mxu0 %v3311_v44  ;;  %v47_v44 = vld [vmem:[%s5318_s0 + $0xe8] sm:$0xff] }
  0x6e   :  { %382 = vmatpush.msra.mxu0 %v3320_v43  ;;  %v42_v43 = vld [vmem:[%s5318_s0 + $0xc0] sm:$0xff] }
  0x6f   :  { %287 = vmatmul.f32.gmra.mxu2 %v2914_v29 }
  0x70   :  { %383 = vmatpush.msra.mxu0 %v3326_v38  ;;  %v32_v38 = vld [vmem:[%s5318_s0 + $0x70] sm:$0xff] }
  0x71   :  { %198 = vmatmul.f32.gmra.mxu0 %v2946_v34  ;;  %331 = vmatmul.f32.gmra.mxu3 %v2983_v40 }
  0x72   :  { %384 = vmatpush.msra.mxu0 %v47_v44 }
  0x74   :  { %385 = vmatpush.msra.mxu0 %v42_v43  ;;  %v27_v43 = vld [vmem:[%s5318_s0 + $0x48] sm:$0xff] }
  0x76   :  { %386 = vmatpush.msra.mxu0 %v37_v37 }
  0x77   :  { %290 = vmatmul.f32.gmra.mxu2 %v2951_v35 }
  0x78   :  { %387 = vmatpush.msra.mxu0 %v32_v38 }
  0x79   :  { %201 = vmatmul.f32.gmra.mxu0 %v2983_v40  ;;  %334 = vmatmul.f32.gmra.mxu3 %v3020_v46 }
  0x7a   :  { %388 = vmatpush.msra.mxu0 %v27_v43 }
  0x7c   :  { %389 = vmatpush.msra.mxu0 %v22_v31 }
  0x7f   :  { %293 = vmatmul.f32.gmra.mxu2 %v2988_v41 }
  0x81   :  { %204 = vmatmul.f32.gmra.mxu0 %v3020_v46  ;;  %337 = vmatmul.f32.gmra.mxu3 %v3057_v52 }
  0x87   :  { %296 = vmatmul.f32.gmra.mxu2 %v3025_v47 }
  0x89   :  { %207 = vmatmul.f32.gmra.mxu0 %v3057_v52  ;;  %340 = vmatmul.f32.gmra.mxu3 %v3094_v58 }
  0x8f   :  { %299 = vmatmul.f32.gmra.mxu2 %v3062_v53 }
  0x91   :  { %210 = vmatmul.f32.gmra.mxu0 %v3094_v58  ;;  %343 = vmatmul.f32.gmra.mxu3 %v3109_v60 }
  0x97   :  { %302 = vmatmul.f32.gmra.mxu2 %v3099_v59 }
  0x99   :  { %213 = vmatmul.f32.gmra.mxu0 %v3109_v60  ;;  %346 = vmatmul.f32.gmra.mxu3 %v3122_v62 }
  0x9e   :  { %v3212_v56 = vpop.f32.mrf.mxu0 }
  0x9f   :  { %305 = vmatmul.f32.gmra.mxu2 %v3114_v61 }
  0xa1   :  { %216 = vmatmul.f32.gmra.mxu0 %v3122_v62  ;;  %349 = vmatmul.f32.gmra.mxu3 %v3129_v63 }
  0xa4   :  { %v3234_v51 = vpop.f32.mrf.mxu3 }
  0xa6   :  { %v3242_v50 = vpop.f32.mrf.mxu0 }
  0xa9   :  { %219 = vmatmul.f32.gmra.mxu0 %v3129_v63  ;;  %352 = vmatmul.f32.gmra.mxu3 %v2914_v29 }
  0xaa   :  { %v3266_v48 = vpop.f32.mrf.mxu2 }
  0xab   :  { %5424 = vst [vmem:[#allocation47_spill] sm:$0xff] %v3266_v48 }
  0xac   :  { %v3259_v49 = vpop.f32.mrf.mxu3 }
  0xae   :  { %v3268_v54 = vpop.f32.mrf.mxu0 }
  0xb1   :  { %222 = vmatmul.f32.gmra.mxu0 %v2914_v29  ;;  %355 = vmatmul.f32.gmra.mxu3 %v2951_v35 }
  0xb2   :  { %v3298_v45 = vpop.f32.mrf.mxu2 }
  0xb3   :  { %5429 = vst [vmem:[#allocation52_spill] sm:$0xff] %v3298_v45 }
  0xb4   :  { %v3290_v55 = vpop.f32.mrf.mxu3 }
  0xb5   :  { %v494_v43 = vmax.f32 %v3290_v55, 0.0 }
  0xb6   :  { %v3300_v42 = vpop.f32.mrf.mxu0 }
  0xb9   :  { %225 = vmatmul.f32.gmra.mxu0 %v2951_v35  ;;  %358 = vmatmul.f32.gmra.mxu3 %v2988_v41 }
  0xba   :  { %v3328_v39 = vpop.f32.mrf.mxu2 }
  0xbb   :  { %5434 = vst [vmem:[#allocation57_spill] sm:$0xff] %v3328_v39 }
  0xbc   :  { %v167_v57 = vpop.f32.mrf.mxu3 }
  0xbd   :  { %v499_v20 = vmax.f32 %v167_v57, 0.0 }
  0xbe   :  { %v3330_v36 = vpop.f32.mrf.mxu0 }
  0xc1   :  { %228 = vmatmul.f32.gmra.mxu0 %v2988_v41  ;;  %361 = vmatmul.f32.gmra.mxu3 %v3025_v47 }
  0xc2   :  { %v3347_v44 = vpop.f32.mrf.mxu2 }
  0xc3   :  { %5435 = vst [vmem:[#allocation58_spill] sm:$0xff] %v3347_v44 }
  0xc4   :  { %v170_v33 = vpop.f32.mrf.mxu3 }
  0xc5   :  { %v504_v44 = vmax.f32 %v170_v33, 0.0 }
  0xc6   :  { %v3349_v32 = vpop.f32.mrf.mxu0 }
  0xc7   :  { %v464_v57 = vmax.f32 %v3349_v32, 0.0  ;;  %v449_v32 = vmax.f32 %v3268_v54, 0.0 }
  0xc9   :  { %231 = vmatmul.f32.gmra.mxu0 %v3025_v47  ;;  %364 = vmatmul.f32.gmra.mxu3 %v3062_v53 }
  0xca   :  { %v3359_v48 = vpop.f32.mrf.mxu2 }
  0xcc   :  { %v173_v37 = vpop.f32.mrf.mxu3 }
  0xcd   :  { %v509_v45 = vmax.f32 %v173_v37, 0.0  ;;  %v584_v37 = vadd.f32 %v504_v44, %v2740_v2 }
  0xce   :  { %v149_v30 = vpop.f32.mrf.mxu0 }
  0xcf   :  { %v589_v31 = vadd.f32 %v509_v45, %v2733_v1  ;;  %v484_v1 = vmax.f32 %v3234_v51, 0.0  ;;  %v574_v45 = vadd.f32 %v494_v43, %v2754_v4  ;;  %v469_v51 = vmax.f32 %v149_v30, 0.0 }
  0xd0   :  { %v544_v30 = vadd.f32 %v464_v57, %v2836_v17  ;;  %v529_v17 = vadd.f32 %v449_v32, %v2875_v23  ;;  %v3423_v23 = vld [vmem:[%s5320_s2 + $0x8] sm:$0xff] }
  0xd1   :  { %234 = vmatmul.f32.gmra.mxu0 %v3062_v53  ;;  %367 = vmatmul.f32.gmra.mxu3 %v3099_v59 }
  0xd2   :  { %v3363_v39 = vpop.f32.mrf.mxu2 }
  0xd4   :  { %v176_v38 = vpop.f32.mrf.mxu3 }
  0xd5   :  { %v514_v26 = vmax.f32 %v176_v38, 0.0  ;;  %v489_v38 = vmax.f32 %v3259_v49, 0.0 }
  0xd6   :  { %v152_v24 = vpop.f32.mrf.mxu0 }
  0xd7   :  { %v594_v22 = vadd.f32 %v514_v26, %v2728_v0  ;;  %v579_v0 = vadd.f32 %v499_v20, %v2747_v3  ;;  %v569_v2 = vadd.f32 %v489_v38, %v2771_v7  ;;  %v474_v3 = vmax.f32 %v152_v24, 0.0  ;;  %v653_v38 = vld [vmem:[%s5320_s2 + $0x1b0] sm:$0xff] }
  0xd8   :  { %v564_v20 = vadd.f32 %v484_v1, %v2784_v9  ;;  %v459_v24 = vmax.f32 %v3330_v36, 0.0  ;;  %v549_v9 = vadd.f32 %v469_v51, %v2823_v15  ;;  %v444_v15 = vmax.f32 %v3242_v50, 0.0  ;;  %v3469_v1 = vld [vmem:[%s5320_s2 + $0x28] sm:$0xff] }
  0xd9   :  { %237 = vmatmul.f32.gmra.mxu0 %v3099_v59  ;;  %663 = vmatpush.msra.mxu1 %v594_v22  ;;  %v554_v7 = vadd.f32 %v474_v3, %v2810_v13  ;;  %v3482_v3 = vld [vmem:[%s5320_s2 + $0x30] sm:$0xff] }
  0xda   :  { %2552 = vmatpush.msrb.mxu2 %v594_v22  ;;  %v3373_v26 = vpop.f32.mrf.mxu2  ;;  %v539_v13 = vadd.f32 %v459_v24, %v2849_v19  ;;  %v524_v19 = vadd.f32 %v444_v15, %v2888_v25  ;;  %370 = vmatmul.f32.gmra.mxu3 %v3114_v61  ;;  %5436 = vst [vmem:[#allocation59_spill] sm:$0xff] %v3482_v3 }
  0xdb   :  { %664 = vmatpush.msra.mxu1 %v589_v31 }
  0xdc   :  { %2553 = vmatpush.msrb.mxu2 %v589_v31 }
  0xdd   :  { %665 = vmatpush.msra.mxu1 %v584_v37 }
  0xde   :  { %2554 = vmatpush.msrb.mxu2 %v584_v37  ;;  %v155_v33 = vpop.f32.mrf.mxu0 }
  0xdf   :  { %v479_v22 = vmax.f32 %v155_v33, 0.0  ;;  %666 = vmatpush.msra.mxu1 %v579_v0 }
  0xe0   :  { %2555 = vmatpush.msrb.mxu2 %v579_v0 }
  0xe1   :  { %240 = vmatmul.f32.gmra.mxu0 %v3114_v61  ;;  %667 = vmatpush.msra.mxu1 %v574_v45  ;;  %v559_v49 = vadd.f32 %v479_v22, %v2797_v11  ;;  %v454_v11 = vmax.f32 %v3300_v42, 0.0  ;;  %v439_v42 = vmax.f32 %v3212_v56, 0.0 }
  0xe2   :  { %2556 = vmatpush.msrb.mxu2 %v574_v45  ;;  %v3382_v55 = vpop.f32.mrf.mxu2 }
  0xe3   :  { %668 = vmatpush.msra.mxu1 %v569_v2  ;;  %v534_v44 = vadd.f32 %v454_v11, %v2862_v21  ;;  %v519_v50 = vadd.f32 %v439_v42, %v2901_v27  ;;  %v3411_v21 = vld [vmem:[%s5320_s2] sm:$0xff]  ;;  %v476_v42 = vmax.f32 %v3382_v55, 0.0 }
  0xe4   :  { %2557 = vmatpush.msrb.mxu2 %v569_v2  ;;  %v3524_v55 = vpop.f32.mrf.mxu3 }
  0xe5   :  { %669 = vmatpush.msra.mxu1 %v564_v20 }
  0xe6   :  { %2558 = vmatpush.msrb.mxu2 %v564_v20  ;;  %v3384_v4 = vpop.f32.mrf.mxu0 }
  0xe7   :  { %670 = vmatpush.msra.mxu1 %v559_v49 }
  0xe8   :  { %2559 = vmatpush.msrb.mxu2 %v559_v49 }
  0xe9   :  { %390 = vmatmul.f32.vlgmr.msra.gmra.mxu0 %v2909_v28  ;;  %671 = vmatpush.msra.mxu1 %v554_v7 }
  0xea   :  { %2560 = vmatpush.msrb.mxu2 %v554_v7  ;;  %v3396_v36 = vpop.f32.mrf.mxu2 }
  0xeb   :  { %672 = vmatpush.msra.mxu1 %v549_v9 }
  0xec   :  { %2561 = vmatpush.msrb.mxu2 %v549_v9  ;;  %v656_v9 = vld [vmem:[%s5320_s2 + $0x1c8] sm:$0xff] }
  0xed   :  { %673 = vmatpush.msra.mxu1 %v544_v30 }
  0xee   :  { %2562 = vmatpush.msrb.mxu2 %v544_v30  ;;  %v3398_v28 = vpop.f32.mrf.mxu0 }
  0xef   :  { %674 = vmatpush.msra.mxu1 %v539_v13 }
  0xf0   :  { %2563 = vmatpush.msrb.mxu2 %v539_v13 }
  0xf1   :  { %393 = vmatmul.f32.gmra.mxu0 %v2946_v34  ;;  %675 = vmatpush.msra.mxu1 %v534_v44 }
  0xf2   :  { %2564 = vmatpush.msrb.mxu2 %v534_v44  ;;  %v3413_v54 = vpop.f32.mrf.mxu2  ;;  %v481_v44 = vmax.f32 %v3396_v36, 0.0 }
  0xf3   :  { %676 = vmatpush.msra.mxu1 %v529_v17 }
  0xf4   :  { %2565 = vmatpush.msrb.mxu2 %v529_v17  ;;  %v561_v36 = vadd.f32 %v481_v44, %v2844_v18  ;;  %v658_v18 = vld [vmem:[%s5320_s2 + $0x1d8] sm:$0xff]  ;;  %v3560_v44 = vld [vmem:[%s5320_s2 + $0x50] sm:$0xff] }
  0xf5   :  { %677 = vmatpush.msra.mxu1 %v524_v19 }
  0xf6   :  { %2566 = vmatpush.msrb.mxu2 %v524_v19  ;;  %v3415_v34 = vpop.f32.mrf.mxu0  ;;  %v466_v19 = vmax.f32 %v3363_v39, 0.0 }
  0xf7   :  { %678 = vmatpush.msra.mxu1 %v519_v50 }
  0xf8   :  { %2567 = vmatpush.msrb.mxu2 %v519_v50  ;;  %679 = vmatmul.f32.vlgmr.msra.gmra.mxu1 %v3411_v21  ;;  %v5437_v50 = vld [vmem:[#allocation5_spill] sm:$0xff] }
  0xf9   :  { %396 = vmatmul.f32.gmra.mxu0 %v2983_v40  ;;  %v3433_v40 = vld [vmem:[%s5320_s2 + $0x10] sm:$0xff]  ;;  %841 = vmatmul.f32.vlgmr.msrb.gmra.mxu2 %v653_v38 }
  0xfa   :  { %v291_v25 = vpop.f32.mrf.mxu2 }
  0xfb   :  { %v491_v32 = vmax.f32 %v291_v25, 0.0 }
  0xfe   :  { %v3425_v27 = vpop.f32.mrf.mxu0 }
 0x100   :  { %682 = vmatmul.f32.gmra.mxu1 %v3423_v23 }
 0x101   :  { %399 = vmatmul.f32.gmra.mxu0 %v3020_v46  ;;  %v3443_v46 = vld [vmem:[%s5320_s2 + $0x18] sm:$0xff] }
 0x102   :  { %v294_v56 = vpop.f32.mrf.mxu2 }
 0x103   :  { %v496_v11 = vmax.f32 %v294_v56, 0.0  ;;  %v5439_v56 = vld [vmem:[#allocation58_spill] sm:$0xff] }
 0x104   :  { %v456_v39 = vmax.f32 %v5439_v56, 0.0 }
 0x105   :  { %v576_v15 = vadd.f32 %v496_v11, %v2805_v12  ;;  %v471_v12 = vmax.f32 %v3373_v26, 0.0  ;;  %v5438_v26 = vld [vmem:[#allocation6_spill] sm:$0xff] }
 0x106   :  { %v3435_v31 = vpop.f32.mrf.mxu0 }
 0x107   :  { %v551_v25 = vadd.f32 %v471_v12, %v5438_v26 }
 0x108   :  { %685 = vmatmul.f32.gmra.mxu1 %v3433_v40 }
 0x109   :  { %402 = vmatmul.f32.gmra.mxu0 %v3057_v52  ;;  %v3456_v52 = vld [vmem:[%s5320_s2 + $0x20] sm:$0xff] }
 0x10a   :  { %v297_v43 = vpop.f32.mrf.mxu2 }
 0x10b   :  { %v501_v7 = vmax.f32 %v297_v43, 0.0  ;;  %v5440_v43 = vld [vmem:[#allocation7_spill] sm:$0xff] }
 0x10c   :  { %v546_v38 = vadd.f32 %v466_v19, %v5440_v43 }
 0x10d   :  { %v581_v13 = vadd.f32 %v501_v7, %v2792_v10  ;;  %v657_v10 = vld [vmem:[%s5320_s2 + $0x1d0] sm:$0xff]  ;;  %v3546_v7 = vpop.f32.mrf.mxu3 }
 0x10e   :  { %v3445_v37 = vpop.f32.mrf.mxu0 }
 0x110   :  { %688 = vmatmul.f32.gmra.mxu1 %v3443_v46 }
 0x111   :  { %405 = vmatmul.f32.gmra.mxu0 %v3094_v58  ;;  %v654_v58 = vld [vmem:[%s5320_s2 + $0x1b8] sm:$0xff] }
 0x112   :  { %v300_v0 = vpop.f32.mrf.mxu2  ;;  %844 = vmatmul.f32.gmra.mxu2 %v654_v58 }
 0x113   :  { %v506_v51 = vmax.f32 %v300_v0, 0.0  ;;  %v5441_v0 = vld [vmem:[#allocation57_spill] sm:$0xff] }
 0x114   :  { %v451_v58 = vmax.f32 %v5441_v0, 0.0 }
 0x115   :  { %v586_v30 = vadd.f32 %v506_v51, %v2779_v8  ;;  %v571_v8 = vadd.f32 %v491_v32, %v2818_v14  ;;  %v3518_v14 = vld [vmem:[%s5320_s2 + $0x40] sm:$0xff]  ;;  %v5447_v32 = vld [vmem:[#allocation11_spill] sm:$0xff] }
 0x116   :  { %v3458_v33 = vpop.f32.mrf.mxu0 }
 0x118   :  { %691 = vmatmul.f32.gmra.mxu1 %v3456_v52 }
 0x119   :  { %408 = vmatmul.f32.gmra.mxu0 %v3109_v60  ;;  %v655_v60 = vld [vmem:[%s5320_s2 + $0x1c0] sm:$0xff] }
 0x11a   :  { %v303_v22 = vpop.f32.mrf.mxu2  ;;  %847 = vmatmul.f32.gmra.mxu2 %v655_v60  ;;  %v3540_v60 = vld [vmem:[%s5320_s2 + $0x48] sm:$0xff] }
 0x11b   :  { %v511_v2 = vmax.f32 %v303_v22, 0.0 }
 0x11e   :  { %v3471_v45 = vpop.f32.mrf.mxu0 }
 0x120   :  { %694 = vmatmul.f32.gmra.mxu1 %v3469_v1 }
 0x121   :  { %411 = vmatmul.f32.gmra.mxu0 %v3122_v62  ;;  %v591_v62 = vadd.f32 %v511_v2, %v2766_v6  ;;  %v3498_v6 = vld [vmem:[%s5320_s2 + $0x38] sm:$0xff] }
 0x122   :  { %v306_v20 = vpop.f32.mrf.mxu2  ;;  %850 = vmatmul.f32.gmra.mxu2 %v656_v9  ;;  %v5446_v9 = vld [vmem:[#allocation10_spill] sm:$0xff] }
 0x123   :  { %v516_v57 = vmax.f32 %v306_v20, 0.0  ;;  %v5444_v20 = vld [vmem:[#allocation9_spill] sm:$0xff]  ;;  %v531_v11 = vadd.f32 %v451_v58, %v5446_v9 }
 0x124   :  { %v536_v51 = vadd.f32 %v456_v39, %v5444_v20  ;;  %v5449_v39 = vld [vmem:[#allocation14_spill] sm:$0xff] }
 0x125   :  { %v596_v24 = vadd.f32 %v516_v57, %v2759_v5 }
 0x126   :  { %v3484_v49 = vpop.f32.mrf.mxu0 }
 0x127   :  { %1081 = vmatpush.msra.mxu3 %v596_v24 }
 0x128   :  { %697 = vmatmul.f32.gmra.mxu1 %v3482_v3 }
 0x129   :  { %414 = vmatmul.f32.gmra.mxu0 %v3129_v63  ;;  %1082 = vmatpush.msra.mxu3 %v591_v62  ;;  %v486_v63 = vmax.f32 %v3413_v54, 0.0  ;;  %v556_v54 = vadd.f32 %v476_v42, %v5437_v50  ;;  %v5445_v62 = vld [vmem:[#allocation47_spill] sm:$0xff] }
 0x12a   :  { %853 = vmatmul.f32.gmra.mxu2 %v657_v10  ;;  %v441_v24 = vmax.f32 %v5445_v62, 0.0  ;;  %v3562_v10 = vpop.f32.mrf.mxu3  ;;  %v3573_v42 = vld [vmem:[%s5320_s2 + $0x58] sm:$0xff] }
 0x12b   :  { %1083 = vmatpush.msra.mxu3 %v586_v30  ;;  %v566_v17 = vadd.f32 %v486_v63, %v2831_v16  ;;  %v461_v16 = vmax.f32 %v3359_v48, 0.0  ;;  %v5442_v48 = vld [vmem:[#allocation8_spill] sm:$0xff] }
 0x12c   :  { %v659_v30 = vld [vmem:[%s5320_s2 + $0x1e0] sm:$0xff] }
 0x12d   :  { %1084 = vmatpush.msra.mxu3 %v581_v13  ;;  %v541_v22 = vadd.f32 %v461_v16, %v5442_v48  ;;  %v5448_v63 = vld [vmem:[#allocation12_spill] sm:$0xff]  ;;  %v3599_v16 = vld [vmem:[%s5320_s2 + $0x68] sm:$0xff]  ;;  %v5451_v48 = vld [vmem:[#allocation15_spill] sm:$0xff] }
 0x12e   :  { %v3500_v5 = vpop.f32.mrf.mxu0 }
 0x12f   :  { %1085 = vmatpush.msra.mxu3 %v576_v15  ;;  %v521_v15 = vadd.f32 %v441_v24, %v5448_v63  ;;  %v485_v24 = vmax.f32 %v3500_v5, 0.0  ;;  %v5456_v5 = vld [vmem:[#allocation20_spill] sm:$0xff] }
 0x130   :  { %700 = vmatmul.f32.gmra.mxu1 %v3498_v6 }
 0x131   :  { %417 = vmatmul.f32.gmra.mxu0 %v2914_v29  ;;  %1086 = vmatpush.msra.mxu3 %v571_v8 }
 0x132   :  { %856 = vmatmul.f32.gmra.mxu2 %v658_v18  ;;  %v3575_v12 = vpop.f32.mrf.mxu3 }
 0x133   :  { %1087 = vmatpush.msra.mxu3 %v566_v17 }
 0x135   :  { %1088 = vmatpush.msra.mxu3 %v561_v36  ;;  %v3586_v36 = vld [vmem:[%s5320_s2 + $0x60] sm:$0xff] }
 0x136   :  { %v3520_v29 = vpop.f32.mrf.mxu0 }
 0x137   :  { %1089 = vmatpush.msra.mxu3 %v556_v54 }
 0x138   :  { %703 = vmatmul.f32.gmra.mxu1 %v3518_v14 }
 0x139   :  { %420 = vmatmul.f32.gmra.mxu0 %v2951_v35  ;;  %1090 = vmatpush.msra.mxu3 %v551_v25  ;;  %v5443_v35 = vld [vmem:[#allocation52_spill] sm:$0xff] }
 0x13a   :  { %v446_v2 = vmax.f32 %v5443_v35, 0.0  ;;  %859 = vmatmul.f32.gmra.mxu2 %v659_v30  ;;  %v3588_v50 = vpop.f32.mrf.mxu3  ;;  %v490_v35 = vmax.f32 %v3520_v29, 0.0  ;;  %v480_v29 = vmax.f32 %v3484_v49, 0.0 }
 0x13b   :  { %1091 = vmatpush.msra.mxu3 %v546_v38  ;;  %v5450_v38 = vld [vmem:[#allocation13_spill] sm:$0xff] }
 0x13c   :  { %v526_v13 = vadd.f32 %v446_v2, %v5447_v32  ;;  %v5452_v2 = vld [vmem:[#allocation16_spill] sm:$0xff]  ;;  %v475_v32 = vmax.f32 %v3471_v45, 0.0  ;;  %v5457_v45 = vld [vmem:[#allocation21_spill] sm:$0xff] }
 0x13d   :  { %1092 = vmatpush.msra.mxu3 %v541_v22 }
 0x13e   :  { %v3544_v57 = vpop.f32.mrf.mxu0 }
 0x13f   :  { %1093 = vmatpush.msra.mxu3 %v536_v51  ;;  %v495_v58 = vmax.f32 %v3544_v57, 0.0  ;;  %v3615_v51 = vld [vmem:[%s5320_s2 + $0x70] sm:$0xff]  ;;  %v5453_v57 = vld [vmem:[#allocation17_spill] sm:$0xff] }
 0x140   :  { %706 = vmatmul.f32.gmra.mxu1 %v3540_v60 }
 0x141   :  { %423 = vmatmul.f32.gmra.mxu0 %v2988_v41  ;;  %1094 = vmatpush.msra.mxu3 %v531_v11  ;;  %v660_v41 = vld [vmem:[%s5320_s2 + $0x1e8] sm:$0xff]  ;;  %v575_v9 = vadd.f32 %v495_v58, %v5453_v57  ;;  %v5454_v11 = vld [vmem:[#allocation18_spill] sm:$0xff] }
 0x142   :  { %862 = vmatmul.f32.gmra.mxu2 %v660_v41  ;;  %v3601_v25 = vpop.f32.mrf.mxu3  ;;  %v570_v30 = vadd.f32 %v490_v35, %v5454_v11  ;;  %v3634_v41 = vld [vmem:[%s5320_s2 + $0x78] sm:$0xff]  ;;  %v5462_v58 = vld [vmem:[#allocation25_spill] sm:$0xff] }
 0x143   :  { %1095 = vmatpush.msra.mxu3 %v526_v13  ;;  %v5455_v13 = vld [vmem:[#allocation19_spill] sm:$0xff] }
 0x144   :  { %v565_v63 = vadd.f32 %v485_v24, %v5455_v13  ;;  %v5465_v24 = vld [vmem:[#allocation28_spill] sm:$0xff] }
 0x145   :  { %1096 = vmatpush.msra.mxu3 %v521_v15  ;;  %v470_v15 = vmax.f32 %v3458_v33, 0.0  ;;  %v460_v33 = vmax.f32 %v3435_v31, 0.0  ;;  %v3655_v31 = vld [vmem:[%s5320_s2 + $0x80] sm:$0xff] }
 0x146   :  { %v232_v8 = vpop.f32.mrf.mxu0  ;;  %1097 = vmatmul.f32.vlgmr.msra.gmra.mxu3 %v3411_v21 }
 0x148   :  { %709 = vmatmul.f32.gmra.mxu1 %v3560_v44 }
 0x149   :  { %426 = vmatmul.f32.gmra.mxu0 %v3025_v47  ;;  %v661_v47 = vld [vmem:[%s5320_s2 + $0x1f0] sm:$0xff] }
 0x14a   :  { %865 = vmatmul.f32.gmra.mxu2 %v661_v47  ;;  %v465_v47 = vmax.f32 %v3445_v37, 0.0  ;;  %v5460_v37 = vld [vmem:[#allocation24_spill] sm:$0xff] }
 0x14e   :  { %v235_v17 = vpop.f32.mrf.mxu0  ;;  %1100 = vmatmul.f32.gmra.mxu3 %v3423_v23 }
 0x14f   :  { %v505_v18 = vmax.f32 %v235_v17, 0.0 }
 0x150   :  { %712 = vmatmul.f32.gmra.mxu1 %v3573_v42 }
 0x151   :  { %429 = vmatmul.f32.gmra.mxu0 %v3062_v53  ;;  %v662_v53 = vld [vmem:[%s5320_s2 + $0x1f8] sm:$0xff]  ;;  %v585_v22 = vadd.f32 %v505_v18, %v5451_v48 }
 0x152   :  { %868 = vmatmul.f32.gmra.mxu2 %v662_v53  ;;  %v5458_v53 = vld [vmem:[#allocation22_spill] sm:$0xff]  ;;  %v5459_v18 = vld [vmem:[#allocation23_spill] sm:$0xff] }
 0x156   :  { %v238_v19 = vpop.f32.mrf.mxu0  ;;  %1103 = vmatmul.f32.gmra.mxu3 %v3433_v40 }
 0x157   :  { %v510_v54 = vmax.f32 %v238_v19, 0.0  ;;  %v555_v19 = vadd.f32 %v475_v32, %v5457_v45  ;;  %v3714_v45 = vld [vmem:[%s5320_s2 + $0xa0] sm:$0xff] }
 0x158   :  { %715 = vmatmul.f32.gmra.mxu1 %v3586_v36 }
 0x159   :  { %432 = vmatmul.f32.gmra.mxu0 %v3099_v59  ;;  %v500_v59 = vmax.f32 %v232_v8, 0.0  ;;  %v590_v43 = vadd.f32 %v510_v54, %v5449_v39  ;;  %v560_v8 = vadd.f32 %v480_v29, %v5456_v5  ;;  %v550_v54 = vadd.f32 %v470_v15, %v5458_v53  ;;  %v3702_v15 = vld [vmem:[%s5320_s2 + $0x98] sm:$0xff] }
 0x15a   :  { %v540_v39 = vadd.f32 %v460_v33, %v5460_v37  ;;  %v3740_v37 = vld [vmem:[%s5320_s2 + $0xb0] sm:$0xff] }
 0x15b   :  { %v580_v20 = vadd.f32 %v500_v59, %v5452_v2  ;;  %v450_v59 = vmax.f32 %v3415_v34, 0.0  ;;  %v440_v34 = vmax.f32 %v3384_v4, 0.0  ;;  %v5464_v2 = vld [vmem:[#allocation27_spill] sm:$0xff] }
 0x15d   :  { %v520_v57 = vadd.f32 %v440_v34, %v5465_v24  ;;  %v3754_v34 = vld [vmem:[%s5320_s2 + $0xb8] sm:$0xff]  ;;  %v5472_v24 = vld [vmem:[#allocation29_spill] sm:$0xff] }
 0x15e   :  { %v241_v26 = vpop.f32.mrf.mxu0  ;;  %1106 = vmatmul.f32.gmra.mxu3 %v3443_v46 }
 0x15f   :  { %v515_v56 = vmax.f32 %v241_v26, 0.0  ;;  %v455_v26 = vmax.f32 %v3425_v27, 0.0  ;;  %v445_v27 = vmax.f32 %v3398_v28, 0.0  ;;  %v3674_v28 = vld [vmem:[%s5320_s2 + $0x88] sm:$0xff] }
 0x160   :  { %718 = vmatmul.f32.gmra.mxu1 %v3599_v16 }
 0x161   :  { %v595_v0 = vadd.f32 %v515_v56, %v5450_v38  ;;  %435 = vmatmul.f32.gmra.mxu0 %v3114_v61  ;;  %v3619_v61 = vpop.f32.mrf.mxu3  ;;  %v545_v56 = vadd.f32 %v465_v47, %v5459_v18  ;;  %v535_v48 = vadd.f32 %v455_v26, %v5462_v58 }
 0x163   :  { %872 = vmatpush.msra.mxu2 %v595_v0 }
 0x165   :  { %873 = vmatpush.msra.mxu2 %v590_v43 }
 0x166   :  { %v3617_v62 = vpop.f32.mrf.mxu0  ;;  %1109 = vmatmul.f32.gmra.mxu3 %v3456_v52 }
 0x167   :  { %874 = vmatpush.msra.mxu2 %v585_v22  ;;  %v5463_v22 = vld [vmem:[#allocation26_spill] sm:$0xff] }
 0x168   :  { %721 = vmatmul.f32.gmra.mxu1 %v3615_v51  ;;  %v530_v35 = vadd.f32 %v450_v59, %v5463_v22 }
 0x169   :  { %875 = vmatpush.msra.mxu2 %v580_v20  ;;  %v3638_v17 = vpop.f32.mrf.mxu3  ;;  %v525_v20 = vadd.f32 %v445_v27, %v5464_v2 }
 0x16b   :  { %876 = vmatpush.msra.mxu2 %v575_v9 }
 0x16d   :  { %877 = vmatpush.msra.mxu2 %v570_v30  ;;  %v3688_v30 = vld [vmem:[%s5320_s2 + $0x90] sm:$0xff] }
 0x16e   :  { %v3636_v49 = vpop.f32.mrf.mxu0  ;;  %1112 = vmatmul.f32.gmra.mxu3 %v3469_v1 }
 0x16f   :  { %878 = vmatpush.msra.mxu2 %v565_v63 }
 0x170   :  { %724 = vmatmul.f32.gmra.mxu1 %v3634_v41 }
 0x171   :  { %879 = vmatpush.msra.mxu2 %v560_v8  ;;  %v3659_v0 = vpop.f32.mrf.mxu3 }
 0x173   :  { %880 = vmatpush.msra.mxu2 %v555_v19 }
 0x175   :  { %881 = vmatpush.msra.mxu2 %v550_v54  ;;  %v3650_v43 = vpop.f32.mrf.mxu1  ;;  %v3726_v54 = vld [vmem:[%s5320_s2 + $0xa8] sm:$0xff] }
 0x176   :  { %5461 = vst [vmem:[#allocation5_spill] sm:$0xff] %v3650_v43  ;;  %v3657_v38 = vpop.f32.mrf.mxu0  ;;  %1115 = vmatmul.f32.gmra.mxu3 %v3482_v3 }
 0x177   :  { %882 = vmatpush.msra.mxu2 %v545_v56 }
 0x178   :  { %727 = vmatmul.f32.gmra.mxu1 %v3655_v31 }
 0x179   :  { %883 = vmatpush.msra.mxu2 %v540_v39  ;;  %v3678_v4 = vpop.f32.mrf.mxu3 }
 0x17b   :  { %884 = vmatpush.msra.mxu2 %v535_v48 }
 0x17c   :  { %v3731_v56 = vpop.f32.mrf.mxu2 }
 0x17d   :  { %885 = vmatpush.msra.mxu2 %v530_v35  ;;  %v3669_v9 = vpop.f32.mrf.mxu1  ;;  %5470 = vst [vmem:[#allocation8_spill] sm:$0xff] %v3731_v56 }
 0x17e   :  { %5466 = vst [vmem:[#allocation6_spill] sm:$0xff] %v3669_v9  ;;  %v3676_v29 = vpop.f32.mrf.mxu0  ;;  %1118 = vmatmul.f32.gmra.mxu3 %v3498_v6 }
 0x17f   :  { %886 = vmatpush.msra.mxu2 %v525_v20 }
 0x180   :  { %730 = vmatmul.f32.gmra.mxu1 %v3674_v28 }
 0x181   :  { %887 = vmatpush.msra.mxu2 %v520_v57  ;;  %v3692_v13 = vpop.f32.mrf.mxu3 }
 0x182   :  { %888 = vmatmul.f32.vlgmr.msra.gmra.mxu2 %v3411_v21 }
 0x185   :  { %v3683_v11 = vpop.f32.mrf.mxu1 }
 0x186   :  { %5467 = vst [vmem:[#allocation58_spill] sm:$0xff] %v3683_v11  ;;  %v3690_v32 = vpop.f32.mrf.mxu0  ;;  %1121 = vmatmul.f32.gmra.mxu3 %v3518_v14 }
 0x188   :  { %733 = vmatmul.f32.gmra.mxu1 %v3688_v30 }
 0x189   :  { %v359_v8 = vpop.f32.mrf.mxu3 }
 0x18a   :  { %891 = vmatmul.f32.gmra.mxu2 %v3423_v23 }
 0x18d   :  { %v3697_v63 = vpop.f32.mrf.mxu1 }
 0x18e   :  { %5468 = vst [vmem:[#allocation7_spill] sm:$0xff] %v3697_v63  ;;  %v3704_v5 = vpop.f32.mrf.mxu0  ;;  %1124 = vmatmul.f32.gmra.mxu3 %v3540_v60 }
 0x190   :  { %736 = vmatmul.f32.gmra.mxu1 %v3702_v15 }
 0x191   :  { %v362_v33 = vpop.f32.mrf.mxu3 }
 0x192   :  { %894 = vmatmul.f32.gmra.mxu2 %v3433_v40  ;;  %v502_v63 = vmax.f32 %v362_v33, 0.0 }
 0x195   :  { %v3709_v47 = vpop.f32.mrf.mxu1  ;;  %v3747_v58 = vpop.f32.mrf.mxu2 }
 0x196   :  { %5469 = vst [vmem:[#allocation57_spill] sm:$0xff] %v3709_v47  ;;  %v3716_v19 = vpop.f32.mrf.mxu0  ;;  %1127 = vmatmul.f32.gmra.mxu3 %v3560_v44  ;;  %v5475_v47 = vld [vmem:[#allocation31_spill] sm:$0xff] }
 0x197   :  { %5471 = vst [vmem:[#allocation52_spill] sm:$0xff] %v3747_v58  ;;  %v5473_v58 = vld [vmem:[#allocation30_spill] sm:$0xff] }
 0x198   :  { %739 = vmatmul.f32.gmra.mxu1 %v3714_v45 }
 0x199   :  { %v365_v18 = vpop.f32.mrf.mxu3 }
 0x19a   :  { %897 = vmatmul.f32.gmra.mxu2 %v3443_v46  ;;  %v507_v56 = vmax.f32 %v365_v18, 0.0  ;;  %v5476_v18 = vld [vmem:[#allocation32_spill] sm:$0xff] }
 0x19d   :  { %v3721_v53 = vpop.f32.mrf.mxu1  ;;  %v3763_v9 = vpop.f32.mrf.mxu2 }
 0x19e   :  { %v3728_v26 = vpop.f32.mrf.mxu0  ;;  %1130 = vmatmul.f32.gmra.mxu3 %v3573_v42  ;;  %5474 = vst [vmem:[#allocation9_spill] sm:$0xff] %v3763_v9 }
 0x1a0   :  { %742 = vmatmul.f32.gmra.mxu1 %v3726_v54 }
 0x1a1   :  { %v368_v27 = vpop.f32.mrf.mxu3 }
 0x1a2   :  { %900 = vmatmul.f32.gmra.mxu2 %v3456_v52  ;;  %v512_v20 = vmax.f32 %v368_v27, 0.0  ;;  %v587_v27 = vadd.f32 %v507_v56, %v5475_v47  ;;  %v487_v47 = vmax.f32 %v3678_v4, 0.0  ;;  %v467_v4 = vmax.f32 %v3601_v25, 0.0 }
 0x1a3   :  { %v457_v25 = vmax.f32 %v3575_v12, 0.0  ;;  %v447_v12 = vmax.f32 %v3546_v7, 0.0 }
 0x1a4   :  { %v592_v43 = vadd.f32 %v512_v20, %v5473_v58  ;;  %v492_v58 = vmax.f32 %v3692_v13, 0.0  ;;  %v5477_v20 = vld [vmem:[#allocation33_spill] sm:$0xff] }
 0x1a5   :  { %v3735_v59 = vpop.f32.mrf.mxu1  ;;  %v3790_v13 = vld [vmem:[%s5320_s2 + $0xc8] sm:$0xff] }
 0x1a6   :  { %v3742_v39 = vpop.f32.mrf.mxu0  ;;  %1133 = vmatmul.f32.gmra.mxu3 %v3586_v36 }
 0x1a8   :  { %745 = vmatmul.f32.gmra.mxu1 %v3740_v37 }
 0x1a9   :  { %v371_v35 = vpop.f32.mrf.mxu3 }
 0x1aa   :  { %903 = vmatmul.f32.gmra.mxu2 %v3469_v1  ;;  %v517_v2 = vmax.f32 %v371_v35, 0.0  ;;  %v3770_v35 = vld [vmem:[%s5320_s2 + $0xc0] sm:$0xff] }
 0x1ac   :  { %v597_v57 = vadd.f32 %v517_v2, %v5472_v24  ;;  %v497_v24 = vmax.f32 %v359_v8, 0.0  ;;  %v482_v8 = vmax.f32 %v3659_v0, 0.0 }
 0x1ad   :  { %v3749_v48 = vpop.f32.mrf.mxu1 }
 0x1ae   :  { %v3756_v22 = vpop.f32.mrf.mxu0  ;;  %1136 = vmatmul.f32.gmra.mxu3 %v3599_v16  ;;  %1290 = vmatpush.msrb.mxu0 %v597_v57  ;;  %v577_v57 = vadd.f32 %v497_v24, %v5477_v20  ;;  %v3794_v24 = vpop.f32.mrf.mxu2  ;;  %v462_v20 = vmax.f32 %v3588_v50, 0.0 }
 0x1af   :  { %5480 = vst [vmem:[#allocation47_spill] sm:$0xff] %v3794_v24  ;;  %v5498_v24 = vld [vmem:[#allocation48_spill] sm:$0xff] }
 0x1b0   :  { %748 = vmatmul.f32.gmra.mxu1 %v3754_v34  ;;  %1291 = vmatpush.msrb.mxu0 %v592_v43  ;;  %v5478_v43 = vld [vmem:[#allocation34_spill] sm:$0xff] }
 0x1b1   :  { %v572_v33 = vadd.f32 %v492_v58, %v5478_v43  ;;  %v5481_v58 = vld [vmem:[#allocation36_spill] sm:$0xff] }
 0x1b2   :  { %906 = vmatmul.f32.gmra.mxu2 %v3482_v3  ;;  %v582_v3 = vadd.f32 %v502_v63, %v5476_v18  ;;  %1292 = vmatpush.msrb.mxu0 %v587_v27  ;;  %v5479_v63 = vld [vmem:[#allocation35_spill] sm:$0xff]  ;;  %v477_v18 = vmax.f32 %v3638_v17, 0.0  ;;  %v562_v0 = vadd.f32 %v482_v8, %v5481_v58  ;;  %v5485_v58 = vld [vmem:[#allocation40_spill] sm:$0xff] }
 0x1b3   :  { %v567_v56 = vadd.f32 %v487_v47, %v5479_v63  ;;  %v5482_v47 = vld [vmem:[#allocation37_spill] sm:$0xff]  ;;  %v5484_v63 = vld [vmem:[#allocation38_spill] sm:$0xff]  ;;  %v542_v50 = vadd.f32 %v462_v20, %v5485_v58 }
 0x1b4   :  { %1293 = vmatpush.msrb.mxu0 %v582_v3  ;;  %v557_v43 = vadd.f32 %v477_v18, %v5482_v47 }
 0x1b5   :  { %v3765_v11 = vpop.f32.mrf.mxu1 }
 0x1b6   :  { %v3773_v2 = vpop.f32.mrf.mxu0  ;;  %1139 = vmatmul.f32.gmra.mxu3 %v3615_v51  ;;  %1294 = vmatpush.msrb.mxu0 %v577_v57  ;;  %v472_v57 = vmax.f32 %v3619_v61, 0.0  ;;  %v3815_v61 = vld [vmem:[%s5320_s2 + $0xd0] sm:$0xff]  ;;  %v3822_v47 = vpop.f32.mrf.mxu2 }
 0x1b7   :  { %5488 = vst [vmem:[#allocation10_spill] sm:$0xff] %v3822_v47 }
 0x1b8   :  { %751 = vmatmul.f32.gmra.mxu1 %v3770_v35  ;;  %1295 = vmatpush.msrb.mxu0 %v572_v33  ;;  %v5483_v33 = vld [vmem:[#allocation39_spill] sm:$0xff]  ;;  %v552_v8 = vadd.f32 %v472_v57, %v5484_v63  ;;  %v5487_v57 = vld [vmem:[#allocation42_spill] sm:$0xff] }
 0x1b9   :  { %v547_v17 = vadd.f32 %v467_v4, %v5483_v33 }
 0x1ba   :  { %909 = vmatmul.f32.gmra.mxu2 %v3498_v6  ;;  %1296 = vmatpush.msrb.mxu0 %v567_v56  ;;  %v452_v56 = vmax.f32 %v3562_v10, 0.0  ;;  %v442_v10 = vmax.f32 %v3524_v55, 0.0  ;;  %v3835_v55 = vld [vmem:[%s5320_s2 + $0xd8] sm:$0xff] }
 0x1bc   :  { %1297 = vmatpush.msrb.mxu0 %v562_v0  ;;  %v5486_v0 = vld [vmem:[#allocation41_spill] sm:$0xff]  ;;  %v532_v20 = vadd.f32 %v452_v56, %v5487_v57 }
 0x1bd   :  { %v3785_v27 = vpop.f32.mrf.mxu1  ;;  %v537_v4 = vadd.f32 %v457_v25, %v5486_v0  ;;  %v5491_v25 = vld [vmem:[#allocation44_spill] sm:$0xff] }
 0x1be   :  { %v3792_v3 = vpop.f32.mrf.mxu0  ;;  %1142 = vmatmul.f32.gmra.mxu3 %v3634_v41  ;;  %1298 = vmatpush.msrb.mxu0 %v557_v43  ;;  %v5489_v43 = vld [vmem:[#allocation43_spill] sm:$0xff]  ;;  %v3841_v56 = vpop.f32.mrf.mxu2 }
 0x1bf   :  { %v527_v33 = vadd.f32 %v447_v12, %v5489_v43  ;;  %v3850_v12 = vld [vmem:[%s5320_s2 + $0xe0] sm:$0xff] }
 0x1c0   :  { %754 = vmatmul.f32.gmra.mxu1 %v3790_v13  ;;  %1299 = vmatpush.msrb.mxu0 %v552_v8  ;;  %5493 = vst [vmem:[#allocation14_spill] sm:$0xff] %v3850_v12 }
 0x1c2   :  { %912 = vmatmul.f32.gmra.mxu2 %v3518_v14  ;;  %1300 = vmatpush.msrb.mxu0 %v547_v17  ;;  %v522_v17 = vadd.f32 %v442_v10, %v5491_v25 }
 0x1c4   :  { %1301 = vmatpush.msrb.mxu0 %v542_v50 }
 0x1c5   :  { %v3810_v9 = vpop.f32.mrf.mxu1 }
 0x1c6   :  { %v427_v18 = vpop.f32.mrf.mxu0  ;;  %1145 = vmatmul.f32.gmra.mxu3 %v3655_v31  ;;  %1302 = vmatpush.msrb.mxu0 %v537_v4  ;;  %v3858_v10 = vpop.f32.mrf.mxu2 }
 0x1c8   :  { %757 = vmatmul.f32.gmra.mxu1 %v3815_v61  ;;  %1303 = vmatpush.msrb.mxu0 %v532_v20  ;;  %v3865_v20 = vld [vmem:[%s5320_s2 + $0xe8] sm:$0xff] }
 0x1c9   :  { %v3827_v7 = vpop.f32.mrf.mxu3  ;;  %5495 = vst [vmem:[#allocation15_spill] sm:$0xff] %v3865_v20 }
 0x1ca   :  { %915 = vmatmul.f32.gmra.mxu2 %v3540_v60  ;;  %5490 = vst [vmem:[#allocation11_spill] sm:$0xff] %v3827_v7  ;;  %1304 = vmatpush.msrb.mxu0 %v527_v33  ;;  %v5496_v7 = vld [vmem:[#allocation45_spill] sm:$0xff] }
 0x1cc   :  { %1305 = vmatpush.msrb.mxu0 %v522_v17  ;;  %v503_v17 = vmax.f32 %v427_v18, 0.0  ;;  %v5499_v18 = vld [vmem:[#allocation49_spill] sm:$0xff] }
 0x1cd   :  { %v3830_v63 = vpop.f32.mrf.mxu1  ;;  %1306 = vmatmul.f32.vlgmr.msrb.gmra.mxu0 %v3411_v21 }
 0x1ce   :  { %v430_v8 = vpop.f32.mrf.mxu0  ;;  %1148 = vmatmul.f32.gmra.mxu3 %v3674_v28 }
 0x1cf   :  { %v508_v33 = vmax.f32 %v430_v8, 0.0 }
 0x1d0   :  { %760 = vmatmul.f32.gmra.mxu1 %v3835_v55 }
 0x1d1   :  { %v3843_v58 = vpop.f32.mrf.mxu3  ;;  %v588_v47 = vadd.f32 %v508_v33, %v5498_v24  ;;  %v5501_v24 = vld [vmem:[#allocation51_spill] sm:$0xff] }
 0x1d2   :  { %918 = vmatmul.f32.gmra.mxu2 %v3560_v44  ;;  %5492 = vst [vmem:[#allocation12_spill] sm:$0xff] %v3843_v58  ;;  %v5497_v58 = vld [vmem:[#allocation46_spill] sm:$0xff] }
 0x1d5   :  { %v3845_v50 = vpop.f32.mrf.mxu1  ;;  %1309 = vmatmul.f32.gmra.mxu0 %v3423_v23 }
 0x1d6   :  { %v433_v0 = vpop.f32.mrf.mxu0  ;;  %1151 = vmatmul.f32.gmra.mxu3 %v3688_v30 }
 0x1d7   :  { %v513_v4 = vmax.f32 %v433_v0, 0.0  ;;  %v498_v0 = vmax.f32 %v3792_v3, 0.0  ;;  %v5500_v3 = vld [vmem:[#allocation50_spill] sm:$0xff] }
 0x1d8   :  { %763 = vmatmul.f32.gmra.mxu1 %v3850_v12 }
 0x1d9   :  { %v3856_v21 = vpop.f32.mrf.mxu3 }
 0x1da   :  { %921 = vmatmul.f32.gmra.mxu2 %v3573_v42  ;;  %5494 = vst [vmem:[#allocation13_spill] sm:$0xff] %v3856_v21  ;;  %v593_v21 = vadd.f32 %v513_v4, %v5497_v58  ;;  %v3882_v58 = vld [vmem:[%s5320_s2 + $0xf0] sm:$0xff]  ;;  %v578_v4 = vadd.f32 %v498_v0, %v5500_v3  ;;  %v473_v0 = vmax.f32 %v3716_v19, 0.0  ;;  %v463_v19 = vmax.f32 %v3690_v32, 0.0 }
 0x1dd   :  { %v3860_v57 = vpop.f32.mrf.mxu1  ;;  %1312 = vmatmul.f32.gmra.mxu0 %v3433_v40  ;;  %v488_v40 = vmax.f32 %v3756_v22, 0.0  ;;  %v478_v22 = vmax.f32 %v3728_v26, 0.0  ;;  %v5504_v26 = vld [vmem:[#allocation55_spill] sm:$0xff] }
 0x1de   :  { %v436_v43 = vpop.f32.mrf.mxu0  ;;  %1154 = vmatmul.f32.gmra.mxu3 %v3702_v15 }
 0x1df   :  { %v518_v25 = vmax.f32 %v436_v43, 0.0  ;;  %v493_v43 = vmax.f32 %v3773_v2, 0.0  ;;  %v483_v2 = vmax.f32 %v3742_v39, 0.0  ;;  %v5503_v39 = vld [vmem:[#allocation54_spill] sm:$0xff] }
 0x1e0   :  { %766 = vmatmul.f32.gmra.mxu1 %v3865_v20 }
 0x1e1   :  { %v598_v23 = vadd.f32 %v518_v25, %v5496_v7  ;;  %v3875_v8 = vpop.f32.mrf.mxu3  ;;  %v583_v7 = vadd.f32 %v503_v17, %v5499_v18  ;;  %v563_v18 = vadd.f32 %v483_v2, %v5503_v39  ;;  %v5505_v2 = vld [vmem:[#allocation56_spill] sm:$0xff] }
 0x1e2   :  { %924 = vmatmul.f32.gmra.mxu2 %v3586_v36 }
 0x1e3   :  { %1499 = vmatpush.msrb.mxu1 %v598_v23  ;;  %v3886_v23 = vpop.f32.mrf.mxu2 }
 0x1e5   :  { %1500 = vmatpush.msrb.mxu1 %v593_v21  ;;  %v722_v25 = vpop.f32.mrf.mxu1  ;;  %v573_v21 = vadd.f32 %v493_v43, %v5501_v24  ;;  %1315 = vmatmul.f32.gmra.mxu0 %v3443_v46  ;;  %v3903_v43 = vld [vmem:[%s5320_s2 + $0xf8] sm:$0xff]  ;;  %v468_v46 = vmax.f32 %v3704_v5, 0.0  ;;  %v553_v24 = vadd.f32 %v473_v0, %v5505_v2  ;;  %v458_v5 = vmax.f32 %v3676_v29, 0.0 }
 0x1e6   :  { %1157 = vmatmul.f32.gmra.mxu3 %v3714_v45  ;;  %v1768_v29 = vmax.f32 %v3845_v50, 0.0  ;;  %v443_v50 = vmax.f32 %v3617_v62, 0.0  ;;  %v2593_v62 = vld [vmem:[%s5318_s0 + $0x48] sm:$0xff] }
 0x1e7   :  { %1501 = vmatpush.msrb.mxu1 %v588_v47  ;;  %v5502_v47 = vld [vmem:[#allocation53_spill] sm:$0xff] }
 0x1e8   :  { %769 = vmatmul.f32.gmra.mxu1 %v3882_v58  ;;  %v568_v33 = vadd.f32 %v488_v40, %v5502_v47  ;;  %v1773_v47 = vmax.f32 %v3860_v57, 0.0  ;;  %v3932_v57 = vld [vmem:[%s5320_s2 + $0x100] sm:$0xff] }
 0x1e9   :  { %1502 = vmatpush.msrb.mxu1 %v583_v7  ;;  %v3896_v17 = vpop.f32.mrf.mxu3 }
 0x1ea   :  { %927 = vmatmul.f32.gmra.mxu2 %v3599_v16 }
 0x1eb   :  { %1503 = vmatpush.msrb.mxu1 %v578_v4  ;;  %v558_v4 = vadd.f32 %v478_v22, %v5504_v26  ;;  %v3909_v40 = vpop.f32.mrf.mxu2  ;;  %v2589_v22 = vld [vmem:[%s5318_s0 + $0xe8] sm:$0xff] }
 0x1ec   :  { %v548_v32 = vadd.f32 %v2589_v22, %v468_v46  ;;  %v2592_v46 = vld [vmem:[%s5318_s0 + $0x70] sm:$0xff]  ;;  %v1743_v22 = vmax.f32 %v3749_v48, 0.0 }
 0x1ed   :  { %1504 = vmatpush.msrb.mxu1 %v573_v21  ;;  %v725_v7 = vpop.f32.mrf.mxu1  ;;  %v1778_v21 = vmax.f32 %v722_v25, 0.0  ;;  %1318 = vmatmul.f32.gmra.mxu0 %v3456_v52  ;;  %v453_v25 = vmax.f32 %v3657_v38, 0.0  ;;  %v2590_v52 = vld [vmem:[%s5318_s0 + $0xc0] sm:$0xff]  ;;  %v2591_v38 = vld [vmem:[%s5318_s0 + $0x98] sm:$0xff] }
 0x1ee   :  { %v1783_v3 = vmax.f32 %v725_v7, 0.0  ;;  %1160 = vmatmul.f32.gmra.mxu3 %v3726_v54  ;;  %v543_v0 = vadd.f32 %v2590_v52, %v463_v19  ;;  %v538_v7 = vadd.f32 %v2591_v38, %v458_v5  ;;  %v1753_v19 = vmax.f32 %v3785_v27, 0.0  ;;  %v3965_v27 = vld [vmem:[%s5320_s2 + $0x108] sm:$0xff] }
 0x1ef   :  { %1505 = vmatpush.msrb.mxu1 %v568_v33  ;;  %v533_v26 = vadd.f32 %v2592_v46, %v453_v25  ;;  %v5507_v25 = vld [vmem:[#allocation57_spill] sm:$0xff] }
 0x1f0   :  { %772 = vmatmul.f32.gmra.mxu1 %v3903_v43  ;;  %2032 = vmatpush.msrb.mxu2 %v1783_v3  ;;  %v1763_v3 = vmax.f32 %v3830_v63, 0.0  ;;  %v1728_v48 = vmax.f32 %v5507_v25, 0.0  ;;  %v5512_v46 = vld [vmem:[#allocation5_spill] sm:$0xff]  ;;  %v4048_v25 = vld [vmem:[%s5320_s2 + $0x130] sm:$0xff] }
 0x1f1   :  { %1506 = vmatpush.msrb.mxu1 %v563_v18  ;;  %v3920_v33 = vpop.f32.mrf.mxu3  ;;  %v448_v18 = vmax.f32 %v3636_v49, 0.0  ;;  %v1758_v49 = vmax.f32 %v3810_v9, 0.0  ;;  %v2594_v9 = vld [vmem:[%s5318_s0 + $0x20] sm:$0xff] }
 0x1f2   :  { %930 = vmatmul.f32.gmra.mxu2 %v3615_v51 }
 0x1f3   :  { %1507 = vmatpush.msrb.mxu1 %v558_v4  ;;  %2033 = vmatpush.msrb.mxu2 %v1778_v21  ;;  %v3947_v63 = vpop.f32.mrf.mxu2  ;;  %v528_v4 = vadd.f32 %v2593_v62, %v448_v18  ;;  %v1748_v21 = vmax.f32 %v3765_v11, 0.0  ;;  %v1733_v11 = vmax.f32 %v3721_v53, 0.0  ;;  %v5510_v53 = vld [vmem:[#allocation58_spill] sm:$0xff] }
 0x1f4   :  { %v1718_v38 = vmax.f32 %v5510_v53, 0.0 }
 0x1f5   :  { %1508 = vmatpush.msrb.mxu1 %v553_v24  ;;  %2034 = vmatpush.msrb.mxu2 %v1773_v47  ;;  %v3927_v39 = vpop.f32.mrf.mxu1  ;;  %v523_v24 = vadd.f32 %v2594_v9, %v443_v50  ;;  %v5506_v47 = vld [vmem:[#allocation59_spill] sm:$0xff] }
 0x1f6   :  { %1163 = vmatmul.f32.gmra.mxu3 %v3740_v37  ;;  %1321 = vmatmul.f32.gmra.mxu0 %v3469_v1  ;;  %v1738_v1 = vmax.f32 %v3735_v59, 0.0  ;;  %v3984_v59 = vld [vmem:[%s5320_s2 + $0x110] sm:$0xff] }
 0x1f7   :  { %1509 = vmatpush.msrb.mxu1 %v548_v32  ;;  %2035 = vmatpush.msrb.mxu2 %v1768_v29  ;;  %v5509_v29 = vld [vmem:[#allocation7_spill] sm:$0xff] }
 0x1f8   :  { %775 = vmatmul.f32.gmra.mxu1 %v3932_v57  ;;  %v1723_v18 = vmax.f32 %v5509_v29, 0.0 }
 0x1f9   :  { %1510 = vmatpush.msrb.mxu1 %v543_v0  ;;  %2036 = vmatpush.msrb.mxu2 %v1763_v3  ;;  %v3953_v2 = vpop.f32.mrf.mxu3 }
 0x1fa   :  { %933 = vmatmul.f32.gmra.mxu2 %v3634_v41 }
 0x1fb   :  { %1511 = vmatpush.msrb.mxu1 %v538_v7  ;;  %2037 = vmatpush.msrb.mxu2 %v1758_v49  ;;  %v5511_v7 = vld [vmem:[#allocation6_spill] sm:$0xff] }
 0x1fc   :  { %v1713_v3 = vmax.f32 %v5511_v7, 0.0  ;;  %v4078_v7 = vld [vmem:[%s5320_s2 + $0x140] sm:$0xff] }
 0x1fd   :  { %1512 = vmatpush.msrb.mxu1 %v533_v26  ;;  %2038 = vmatpush.msrb.mxu2 %v1753_v19  ;;  %v3960_v5 = vpop.f32.mrf.mxu1  ;;  %v1708_v26 = vmax.f32 %v5512_v46, 0.0 }
 0x1fe   :  { %1166 = vmatmul.f32.gmra.mxu3 %v3754_v34  ;;  %1324 = vmatmul.f32.gmra.mxu0 %v5506_v47 }
 0x1ff   :  { %1513 = vmatpush.msrb.mxu1 %v528_v4  ;;  %2039 = vmatpush.msrb.mxu2 %v1748_v21  ;;  %v4003_v4 = vld [vmem:[%s5320_s2 + $0x118] sm:$0xff] }
 0x200   :  { %778 = vmatmul.f32.gmra.mxu1 %v3965_v27 }
 0x201   :  { %1514 = vmatpush.msrb.mxu1 %v523_v24  ;;  %2040 = vmatpush.msrb.mxu2 %v1743_v22  ;;  %v3973_v32 = vpop.f32.mrf.mxu3  ;;  %v4018_v24 = vld [vmem:[%s5320_s2 + $0x120] sm:$0xff] }
 0x202   :  { %936 = vmatmul.f32.gmra.mxu2 %v3655_v31 }
 0x203   :  { %2041 = vmatpush.msrb.mxu2 %v1738_v1  ;;  %v4033_v1 = vld [vmem:[%s5320_s2 + $0x128] sm:$0xff] }
 0x205   :  { %v3977_v52 = vpop.f32.mrf.mxu2  ;;  %2042 = vmatpush.msrb.mxu2 %v1733_v11  ;;  %v3979_v0 = vpop.f32.mrf.mxu1 }
 0x206   :  { %5508 = vst [vmem:[#allocation16_spill] sm:$0xff] %v3977_v52  ;;  %1169 = vmatmul.f32.gmra.mxu3 %v3770_v35  ;;  %1327 = vmatmul.f32.gmra.mxu0 %v3498_v6 }
 0x207   :  { %2043 = vmatpush.msrb.mxu2 %v1728_v48 }
 0x208   :  { %781 = vmatmul.f32.gmra.mxu1 %v3984_v59 }
 0x209   :  { %2044 = vmatpush.msrb.mxu2 %v1723_v18  ;;  %v3992_v50 = vpop.f32.mrf.mxu3  ;;  %v4063_v18 = vld [vmem:[%s5320_s2 + $0x138] sm:$0xff] }
 0x20a   :  { %939 = vmatmul.f32.gmra.mxu2 %v3674_v28 }
 0x20b   :  { %2045 = vmatpush.msrb.mxu2 %v1718_v38 }
 0x20d   :  { %v3996_v49 = vpop.f32.mrf.mxu2  ;;  %2046 = vmatpush.msrb.mxu2 %v1713_v3  ;;  %v3998_v62 = vpop.f32.mrf.mxu1 }
 0x20e   :  { %5513 = vst [vmem:[#allocation17_spill] sm:$0xff] %v3996_v49  ;;  %1172 = vmatmul.f32.gmra.mxu3 %v3790_v13  ;;  %1330 = vmatmul.f32.gmra.mxu0 %v3518_v14 }
 0x20f   :  { %2047 = vmatpush.msrb.mxu2 %v1708_v26  ;;  %v4093_v26 = vld [vmem:[%s5320_s2 + $0x148] sm:$0xff] }
 0x210   :  { %784 = vmatmul.f32.gmra.mxu1 %v4003_v4 }
 0x211   :  { %v4008_v6 = vpop.f32.mrf.mxu3 }
 0x212   :  { %942 = vmatmul.f32.gmra.mxu2 %v3688_v30 }
 0x215   :  { %v4011_v19 = vpop.f32.mrf.mxu2  ;;  %v4013_v9 = vpop.f32.mrf.mxu1 }
 0x216   :  { %5514 = vst [vmem:[#allocation18_spill] sm:$0xff] %v4011_v19  ;;  %1175 = vmatmul.f32.gmra.mxu3 %v3815_v61  ;;  %1333 = vmatmul.f32.gmra.mxu0 %v3540_v60  ;;  %v4108_v19 = vld [vmem:[%s5320_s2 + $0x150] sm:$0xff] }
 0x218   :  { %787 = vmatmul.f32.gmra.mxu1 %v4018_v24 }
 0x219   :  { %v4023_v21 = vpop.f32.mrf.mxu3 }
 0x21a   :  { %945 = vmatmul.f32.gmra.mxu2 %v3702_v15 }
 0x21d   :  { %v4026_v14 = vpop.f32.mrf.mxu2  ;;  %v4028_v22 = vpop.f32.mrf.mxu1 }
 0x21e   :  { %5515 = vst [vmem:[#allocation19_spill] sm:$0xff] %v4026_v14  ;;  %1178 = vmatmul.f32.gmra.mxu3 %v3835_v55  ;;  %1336 = vmatmul.f32.gmra.mxu0 %v3560_v44 }
 0x220   :  { %790 = vmatmul.f32.gmra.mxu1 %v4033_v1 }
 0x221   :  { %v4038_v11 = vpop.f32.mrf.mxu3 }
 0x222   :  { %948 = vmatmul.f32.gmra.mxu2 %v3714_v45 }
 0x225   :  { %v4041_v60 = vpop.f32.mrf.mxu2  ;;  %v4043_v47 = vpop.f32.mrf.mxu1 }
 0x226   :  { %5516 = vst [vmem:[#allocation20_spill] sm:$0xff] %v4041_v60  ;;  %1181 = vmatmul.f32.gmra.mxu3 %v3850_v12  ;;  %1339 = vmatmul.f32.gmra.mxu0 %v3573_v42 }
 0x228   :  { %793 = vmatmul.f32.gmra.mxu1 %v4048_v25 }
 0x229   :  { %v4053_v48 = vpop.f32.mrf.mxu3 }
 0x22a   :  { %951 = vmatmul.f32.gmra.mxu2 %v3726_v54 }
 0x22d   :  { %v4056_v44 = vpop.f32.mrf.mxu2  ;;  %v4058_v29 = vpop.f32.mrf.mxu1 }
 0x22e   :  { %5517 = vst [vmem:[#allocation21_spill] sm:$0xff] %v4056_v44  ;;  %1184 = vmatmul.f32.gmra.mxu3 %v3865_v20  ;;  %1342 = vmatmul.f32.gmra.mxu0 %v3586_v36  ;;  %v4121_v44 = vld [vmem:[%s5320_s2 + $0x158] sm:$0xff] }
 0x230   :  { %796 = vmatmul.f32.gmra.mxu1 %v4063_v18 }
 0x231   :  { %v4068_v53 = vpop.f32.mrf.mxu3 }
 0x232   :  { %954 = vmatmul.f32.gmra.mxu2 %v3740_v37 }
 0x235   :  { %v4071_v42 = vpop.f32.mrf.mxu2  ;;  %v4073_v38 = vpop.f32.mrf.mxu1 }
 0x236   :  { %5518 = vst [vmem:[#allocation22_spill] sm:$0xff] %v4071_v42  ;;  %1187 = vmatmul.f32.gmra.mxu3 %v3882_v58  ;;  %1345 = vmatmul.f32.gmra.mxu0 %v3599_v16 }
 0x238   :  { %799 = vmatmul.f32.gmra.mxu1 %v4078_v7 }
 0x239   :  { %v4083_v3 = vpop.f32.mrf.mxu3 }
 0x23a   :  { %957 = vmatmul.f32.gmra.mxu2 %v3754_v34 }
 0x23d   :  { %v4086_v36 = vpop.f32.mrf.mxu2  ;;  %v4088_v46 = vpop.f32.mrf.mxu1 }
 0x23e   :  { %5519 = vst [vmem:[#allocation23_spill] sm:$0xff] %v4086_v36  ;;  %1190 = vmatmul.f32.gmra.mxu3 %v3903_v43  ;;  %1348 = vmatmul.f32.gmra.mxu0 %v3615_v51  ;;  %v4134_v36 = vld [vmem:[%s5320_s2 + $0x160] sm:$0xff] }
 0x23f   :  { %5525 = vst [vmem:[#allocation29_spill] sm:$0xff] %v4134_v36 }
 0x240   :  { %802 = vmatmul.f32.gmra.mxu1 %v4093_v26 }
 0x241   :  { %v4098_v52 = vpop.f32.mrf.mxu3 }
 0x242   :  { %960 = vmatmul.f32.gmra.mxu2 %v3770_v35 }
 0x245   :  { %v4101_v16 = vpop.f32.mrf.mxu2  ;;  %v4103_v49 = vpop.f32.mrf.mxu1 }
 0x246   :  { %5520 = vst [vmem:[#allocation24_spill] sm:$0xff] %v4101_v16  ;;  %1193 = vmatmul.f32.gmra.mxu3 %v3932_v57  ;;  %1351 = vmatmul.f32.gmra.mxu0 %v3634_v41 }
 0x248   :  { %805 = vmatmul.f32.gmra.mxu1 %v4108_v19 }
 0x249   :  { %v4113_v14 = vpop.f32.mrf.mxu3 }
 0x24a   :  { %963 = vmatmul.f32.gmra.mxu2 %v3790_v13  ;;  %5521 = vst [vmem:[#allocation25_spill] sm:$0xff] %v4113_v14  ;;  %v4137_v16 = vpop.f32.mrf.mxu0 }
 0x24b   :  { %5526 = vst [vmem:[#allocation30_spill] sm:$0xff] %v4137_v16 }
 0x24d   :  { %v4116_v51 = vpop.f32.mrf.mxu2  ;;  %v761_v60 = vpop.f32.mrf.mxu1 }
 0x24e   :  { %5522 = vst [vmem:[#allocation26_spill] sm:$0xff] %v4116_v51  ;;  %1196 = vmatmul.f32.gmra.mxu3 %v3965_v27  ;;  %1354 = vmatmul.f32.gmra.mxu0 %v3655_v31 }
 0x250   :  { %808 = vmatmul.f32.gmra.mxu1 %v4121_v44 }
 0x251   :  { %v4126_v42 = vpop.f32.mrf.mxu3 }
 0x252   :  { %966 = vmatmul.f32.gmra.mxu2 %v3815_v61  ;;  %5523 = vst [vmem:[#allocation27_spill] sm:$0xff] %v4126_v42 }
 0x255   :  { %v4129_v14 = vpop.f32.mrf.mxu2  ;;  %v764_v41 = vpop.f32.mrf.mxu1 }
 0x256   :  { %5524 = vst [vmem:[#allocation28_spill] sm:$0xff] %v4129_v14  ;;  %1199 = vmatmul.f32.gmra.mxu3 %v3984_v59  ;;  %1357 = vmatmul.f32.gmra.mxu0 %v3674_v28  ;;  %v4149_v14 = vld [vmem:[%s5320_s2 + $0x168] sm:$0xff] }
 0x257   :  { %5529 = vst [vmem:[#allocation33_spill] sm:$0xff] %v4149_v14 }
 0x258   :  { %811 = vmatmul.f32.gmra.mxu1 %v4134_v36  ;;  %v4152_v36 = vpop.f32.mrf.mxu0 }
 0x259   :  { %v4141_v51 = vpop.f32.mrf.mxu3  ;;  %5530 = vst [vmem:[#allocation34_spill] sm:$0xff] %v4152_v36 }
 0x25a   :  { %969 = vmatmul.f32.gmra.mxu2 %v3835_v55  ;;  %5527 = vst [vmem:[#allocation31_spill] sm:$0xff] %v4141_v51 }
 0x25d   :  { %v4144_v31 = vpop.f32.mrf.mxu2  ;;  %v767_v42 = vpop.f32.mrf.mxu1 }
 0x25e   :  { %5528 = vst [vmem:[#allocation32_spill] sm:$0xff] %v4144_v31  ;;  %1202 = vmatmul.f32.gmra.mxu3 %v4003_v4  ;;  %1360 = vmatmul.f32.gmra.mxu0 %v3688_v30  ;;  %v4164_v31 = vld [vmem:[%s5320_s2 + $0x170] sm:$0xff] }
 0x25f   :  { %5533 = vst [vmem:[#allocation37_spill] sm:$0xff] %v4164_v31 }
 0x260   :  { %814 = vmatmul.f32.gmra.mxu1 %v4149_v14  ;;  %v4167_v14 = vpop.f32.mrf.mxu0 }
 0x261   :  { %v4156_v16 = vpop.f32.mrf.mxu3  ;;  %5534 = vst [vmem:[#allocation39_spill] sm:$0xff] %v4167_v14 }
 0x262   :  { %972 = vmatmul.f32.gmra.mxu2 %v3850_v12  ;;  %5531 = vst [vmem:[#allocation35_spill] sm:$0xff] %v4156_v16 }
 0x265   :  { %v4159_v28 = vpop.f32.mrf.mxu2  ;;  %v770_v51 = vpop.f32.mrf.mxu1 }
 0x266   :  { %5532 = vst [vmem:[#allocation36_spill] sm:$0xff] %v4159_v28  ;;  %1205 = vmatmul.f32.gmra.mxu3 %v4018_v24  ;;  %1363 = vmatmul.f32.gmra.mxu0 %v3702_v15  ;;  %v4179_v28 = vld [vmem:[%s5320_s2 + $0x178] sm:$0xff]  ;;  %v1848_v15 = vmax.f32 %v764_v41, 0.0  ;;  %v1828_v41 = vmax.f32 %v4073_v38, 0.0  ;;  %v1813_v38 = vmax.f32 %v4028_v22, 0.0  ;;  %v1803_v22 = vmax.f32 %v3998_v62, 0.0 }
 0x267   :  { %v1788_v62 = vmax.f32 %v3927_v39, 0.0  ;;  %v2013_v39 = vmax.f32 %v3886_v23, 0.0  ;;  %v1775_v23 = vmax.f32 %v4068_v53, 0.0  ;;  %v1765_v53 = vmax.f32 %v4038_v11, 0.0 }
 0x268   :  { %817 = vmatmul.f32.gmra.mxu1 %v4164_v31  ;;  %v1858_v31 = vmax.f32 %v770_v51, 0.0  ;;  %v4182_v14 = vpop.f32.mrf.mxu0  ;;  %v1843_v51 = vmax.f32 %v761_v60, 0.0  ;;  %v1755_v11 = vmax.f32 %v4008_v6, 0.0 }
 0x269   :  { %v4171_v36 = vpop.f32.mrf.mxu3  ;;  %5537 = vst [vmem:[#allocation41_spill] sm:$0xff] %v4182_v14  ;;  %v5549_v14 = vld [vmem:[#allocation47_spill] sm:$0xff] }
 0x26a   :  { %975 = vmatmul.f32.gmra.mxu2 %v3865_v20  ;;  %5535 = vst [vmem:[#allocation38_spill] sm:$0xff] %v4171_v36  ;;  %v1853_v36 = vmax.f32 %v767_v42, 0.0  ;;  %v1838_v42 = vmax.f32 %v4103_v49, 0.0 }
 0x26d   :  { %v4174_v30 = vpop.f32.mrf.mxu2  ;;  %v773_v16 = vpop.f32.mrf.mxu1 }
 0x26e   :  { %5536 = vst [vmem:[#allocation40_spill] sm:$0xff] %v4174_v30  ;;  %v1863_v12 = vmax.f32 %v773_v16, 0.0  ;;  %1208 = vmatmul.f32.gmra.mxu3 %v4033_v1  ;;  %1366 = vmatmul.f32.gmra.mxu0 %v3714_v45  ;;  %v1833_v45 = vmax.f32 %v4088_v46, 0.0 }
 0x270   :  { %820 = vmatmul.f32.gmra.mxu1 %v4179_v28  ;;  %2052 = vmatpush.msrb.mxu3 %v1863_v12  ;;  %v4196_v12 = vld [vmem:[%s5320_s2 + $0x180] sm:$0xff] }
 0x271   :  { %v4186_v30 = vpop.f32.mrf.mxu3 }
 0x272   :  { %978 = vmatmul.f32.gmra.mxu2 %v3882_v58  ;;  %2053 = vmatpush.msrb.mxu3 %v1858_v31  ;;  %5538 = vst [vmem:[#allocation42_spill] sm:$0xff] %v4186_v30  ;;  %v4214_v31 = vld [vmem:[%s5320_s2 + $0x188] sm:$0xff] }
 0x274   :  { %2054 = vmatpush.msrb.mxu3 %v1853_v36  ;;  %v4200_v36 = vpop.f32.mrf.mxu0 }
 0x275   :  { %v4189_v20 = vpop.f32.mrf.mxu2  ;;  %v4191_v16 = vpop.f32.mrf.mxu1  ;;  %5539 = vst [vmem:[#allocation43_spill] sm:$0xff] %v4200_v36 }
 0x276   :  { %2055 = vmatpush.msrb.mxu3 %v1848_v15  ;;  %1369 = vmatmul.f32.gmra.mxu0 %v3726_v54  ;;  %v1823_v15 = vmax.f32 %v4058_v29, 0.0 }
 0x277   :  { %1211 = vmatmul.f32.gmra.mxu3 %v4048_v25 }
 0x278   :  { %823 = vmatmul.f32.gmra.mxu1 %v4196_v12  ;;  %2056 = vmatpush.msrb.mxu3 %v1843_v51  ;;  %v1818_v51 = vmax.f32 %v4043_v47, 0.0 }
 0x279   :  { %v4217_v46 = vpop.f32.mrf.mxu3 }
 0x27a   :  { %981 = vmatmul.f32.gmra.mxu2 %v3903_v43  ;;  %2057 = vmatpush.msrb.mxu3 %v1838_v42  ;;  %5540 = vst [vmem:[#allocation44_spill] sm:$0xff] %v4217_v46  ;;  %v1808_v42 = vmax.f32 %v4013_v9, 0.0  ;;  %v1793_v9 = vmax.f32 %v3960_v5, 0.0  ;;  %v4258_v5 = vld [vmem:[%s5320_s2 + $0x198] sm:$0xff] }
 0x27c   :  { %2058 = vmatpush.msrb.mxu3 %v1833_v45  ;;  %v4221_v54 = vpop.f32.mrf.mxu0  ;;  %v4235_v45 = vld [vmem:[%s5320_s2 + $0x190] sm:$0xff] }
 0x27d   :  { %v4207_v60 = vpop.f32.mrf.mxu2  ;;  %v4209_v49 = vpop.f32.mrf.mxu1  ;;  %5541 = vst [vmem:[#allocation45_spill] sm:$0xff] %v4221_v54  ;;  %v2598_v54 = vld [vmem:[%s5320_s2 + $0x18] sm:$0xff] }
 0x27e   :  { %2059 = vmatpush.msrb.mxu3 %v1828_v41  ;;  %1372 = vmatmul.f32.gmra.mxu0 %v3740_v37 }
 0x27f   :  { %1214 = vmatmul.f32.gmra.mxu3 %v4063_v18 }
 0x280   :  { %826 = vmatmul.f32.gmra.mxu1 %v4214_v31  ;;  %2060 = vmatpush.msrb.mxu3 %v1823_v15  ;;  %v1798_v15 = vmax.f32 %v3979_v0, 0.0  ;;  %v2018_v0 = vmax.f32 %v3909_v40, 0.0  ;;  %v1785_v40 = vmax.f32 %v4098_v52, 0.0  ;;  %v2003_v52 = vmax.f32 %v3841_v56, 0.0 }
 0x281   :  { %v4238_v41 = vpop.f32.mrf.mxu3  ;;  %v1760_v56 = vmax.f32 %v4023_v21, 0.0  ;;  %v5551_v21 = vld [vmem:[#allocation52_spill] sm:$0xff] }
 0x282   :  { %984 = vmatmul.f32.gmra.mxu2 %v3932_v57  ;;  %2061 = vmatpush.msrb.mxu3 %v1818_v51  ;;  %5542 = vst [vmem:[#allocation46_spill] sm:$0xff] %v4238_v41  ;;  %v2023_v51 = vmax.f32 %v3947_v63, 0.0 }
 0x283   :  { %2192 = vmatpush.msra.mxu0 %v1785_v40  ;;  %v1993_v40 = vmax.f32 %v5549_v14, 0.0  ;;  %v4305_v14 = vld [vmem:[%s5320_s2 + $0x1a8] sm:$0xff] }
 0x284   :  { %2062 = vmatpush.msrb.mxu3 %v1813_v38  ;;  %v4242_v37 = vpop.f32.mrf.mxu0 }
 0x285   :  { %v4228_v29 = vpop.f32.mrf.mxu2  ;;  %v4230_v47 = vpop.f32.mrf.mxu1  ;;  %5543 = vst [vmem:[#allocation48_spill] sm:$0xff] %v4242_v37 }
 0x286   :  { %2063 = vmatpush.msrb.mxu3 %v1808_v42  ;;  %1375 = vmatmul.f32.gmra.mxu0 %v3754_v34 }
 0x287   :  { %1217 = vmatmul.f32.gmra.mxu3 %v4078_v7 }
 0x288   :  { %829 = vmatmul.f32.gmra.mxu1 %v4235_v45  ;;  %2064 = vmatpush.msrb.mxu3 %v1803_v22  ;;  %v1780_v22 = vmax.f32 %v4083_v3, 0.0 }
 0x289   :  { %v4260_v63 = vpop.f32.mrf.mxu3 }
 0x28a   :  { %987 = vmatmul.f32.gmra.mxu2 %v3965_v27  ;;  %2065 = vmatpush.msrb.mxu3 %v1798_v15  ;;  %5544 = vst [vmem:[#allocation49_spill] sm:$0xff] %v4260_v63  ;;  %v2008_v15 = vmax.f32 %v3858_v10, 0.0  ;;  %v5547_v10 = vld [vmem:[#allocation10_spill] sm:$0xff] }
 0x28b   :  { %2193 = vmatpush.msra.mxu0 %v1780_v22 }
 0x28c   :  { %2066 = vmatpush.msrb.mxu3 %v1793_v9  ;;  %v4264_v34 = vpop.f32.mrf.mxu0 }
 0x28d   :  { %v4251_v38 = vpop.f32.mrf.mxu2  ;;  %v4253_v42 = vpop.f32.mrf.mxu1  ;;  %5545 = vst [vmem:[#allocation50_spill] sm:$0xff] %v4264_v34  ;;  %2194 = vmatpush.msra.mxu0 %v1775_v23 }
 0x28e   :  { %2067 = vmatpush.msrb.mxu3 %v1788_v62  ;;  %1378 = vmatmul.f32.gmra.mxu0 %v3770_v35  ;;  %v4280_v62 = vld [vmem:[%s5320_s2 + $0x1a0] sm:$0xff]  ;;  %v1770_v35 = vmax.f32 %v4053_v48, 0.0  ;;  %v5550_v48 = vld [vmem:[#allocation9_spill] sm:$0xff] }
 0x28f   :  { %1220 = vmatmul.f32.gmra.mxu3 %v4093_v26  ;;  %v1988_v22 = vmax.f32 %v5550_v48, 0.0 }
 0x290   :  { %2092 = vmatpush.msra.mxu3 %v2023_v51  ;;  %832 = vmatmul.f32.gmra.mxu1 %v4258_v5 }
 0x291   :  { %v4283_v3 = vpop.f32.mrf.mxu3  ;;  %2195 = vmatpush.msra.mxu0 %v1770_v35 }
 0x292   :  { %2093 = vmatpush.msra.mxu3 %v2018_v0  ;;  %990 = vmatmul.f32.gmra.mxu2 %v3984_v59  ;;  %5546 = vst [vmem:[#allocation51_spill] sm:$0xff] %v4283_v3  ;;  %v1998_v0 = vmax.f32 %v5547_v10, 0.0  ;;  %v5552_v10 = vld [vmem:[#allocation8_spill] sm:$0xff] }
 0x293   :  { %2196 = vmatpush.msra.mxu0 %v1765_v53  ;;  %v1978_v6 = vmax.f32 %v5552_v10, 0.0  ;;  %v1740_v53 = vmax.f32 %v3953_v2, 0.0  ;;  %v2595_v2 = vld [vmem:[%s5320_s2] sm:$0xff] }
 0x294   :  { %2094 = vmatpush.msra.mxu3 %v2013_v39  ;;  %v4289_v39 = vpop.f32.mrf.mxu0 }
 0x295   :  { %v4272_v9 = vpop.f32.mrf.mxu2  ;;  %v4275_v51 = vpop.f32.mrf.mxu1  ;;  %5548 = vst [vmem:[#allocation53_spill] sm:$0xff] %v4289_v39  ;;  %2197 = vmatpush.msra.mxu0 %v1760_v56  ;;  %v2599_v39 = vld [vmem:[%s5320_s2 + $0x20] sm:$0xff] }
 0x296   :  { %2095 = vmatpush.msra.mxu3 %v2008_v15  ;;  %1381 = vmatmul.f32.gmra.mxu0 %v3790_v13  ;;  %v1750_v13 = vmax.f32 %v3992_v50, 0.0  ;;  %v1735_v50 = vmax.f32 %v3920_v33, 0.0  ;;  %v5555_v33 = vld [vmem:[#allocation13_spill] sm:$0xff] }
 0x297   :  { %1223 = vmatmul.f32.gmra.mxu3 %v4108_v19  ;;  %2198 = vmatpush.msra.mxu0 %v1755_v11  ;;  %v1725_v11 = vmax.f32 %v3875_v8, 0.0 }
 0x298   :  { %835 = vmatmul.f32.gmra.mxu1 %v4280_v62  ;;  %2096 = vmatpush.msra.mxu3 %v2003_v52  ;;  %v1983_v52 = vmax.f32 %v5551_v21, 0.0  ;;  %v1720_v21 = vmax.f32 %v5555_v33, 0.0 }
 0x299   :  { %v4308_v35 = vpop.f32.mrf.mxu3  ;;  %2199 = vmatpush.msra.mxu0 %v1750_v13 }
 0x29a   :  { %993 = vmatmul.f32.gmra.mxu2 %v4003_v4  ;;  %2097 = vmatpush.msra.mxu3 %v1998_v0  ;;  %v1745_v0 = vmax.f32 %v3973_v32, 0.0 }
 0x29c   :  { %2098 = vmatpush.msra.mxu3 %v1993_v40  ;;  %v4314_v40 = vpop.f32.mrf.mxu0  ;;  %2200 = vmatpush.msra.mxu0 %v1745_v0  ;;  %v5558_v0 = vld [vmem:[#allocation11_spill] sm:$0xff] }
 0x29d   :  { %v4298_v15 = vpop.f32.mrf.mxu2  ;;  %v4300_v23 = vpop.f32.mrf.mxu1  ;;  %5553 = vst [vmem:[#allocation54_spill] sm:$0xff] %v4314_v40 }
 0x29e   :  { %2099 = vmatpush.msra.mxu3 %v1988_v22  ;;  %1384 = vmatmul.f32.gmra.mxu0 %v3815_v61  ;;  %v1730_v22 = vmax.f32 %v3896_v17, 0.0  ;;  %v5557_v17 = vld [vmem:[#allocation12_spill] sm:$0xff] }
 0x29f   :  { %1226 = vmatmul.f32.gmra.mxu3 %v4121_v44  ;;  %2201 = vmatpush.msra.mxu0 %v1740_v53  ;;  %v1715_v13 = vmax.f32 %v5557_v17, 0.0  ;;  %v1710_v53 = vmax.f32 %v5558_v0, 0.0  ;;  %v2597_v17 = vld [vmem:[%s5320_s2 + $0x10] sm:$0xff] }
 0x2a0   :  { %838 = vmatmul.f32.gmra.mxu1 %v4305_v14  ;;  %2100 = vmatpush.msra.mxu3 %v1983_v52  ;;  %v5556_v52 = vld [vmem:[#allocation29_spill] sm:$0xff] }
 0x2a1   :  { %v4325_v32 = vpop.f32.mrf.mxu3  ;;  %2202 = vmatpush.msra.mxu0 %v1735_v50  ;;  %v2596_v50 = vld [vmem:[%s5320_s2 + $0x8] sm:$0xff] }
 0x2a2   :  { %996 = vmatmul.f32.gmra.mxu2 %v4018_v24  ;;  %2101 = vmatpush.msra.mxu3 %v1978_v6 }
 0x2a3   :  { %2203 = vmatpush.msra.mxu0 %v1730_v22 }
 0x2a4   :  { %v4332_v61 = vpop.f32.mrf.mxu0 }
 0x2a5   :  { %v4321_v56 = vpop.f32.mrf.mxu2  ;;  %v4323_v48 = vpop.f32.mrf.mxu1  ;;  %5554 = vst [vmem:[#allocation55_spill] sm:$0xff] %v4332_v61  ;;  %2204 = vmatpush.msra.mxu0 %v1725_v11 }
 0x2a6   :  { %1387 = vmatmul.f32.gmra.mxu0 %v3835_v55  ;;  %v5560_v55 = vld [vmem:[#allocation33_spill] sm:$0xff] }
 0x2a7   :  { %1229 = vmatmul.f32.gmra.mxu3 %v5556_v52  ;;  %2205 = vmatpush.msra.mxu0 %v1720_v21 }
 0x2a8   :  { %1515 = vmatmul.f32.vlgmr.msrb.gmra.mxu1 %v2595_v2  ;;  %v5561_v2 = vld [vmem:[#allocation14_spill] sm:$0xff] }
 0x2a9   :  { %v4343_v8 = vpop.f32.mrf.mxu3  ;;  %2206 = vmatpush.msra.mxu0 %v1715_v13  ;;  %v5563_v13 = vld [vmem:[#allocation37_spill] sm:$0xff] }
 0x2aa   :  { %999 = vmatmul.f32.gmra.mxu2 %v4033_v1 }
 0x2ab   :  { %2207 = vmatpush.msra.mxu0 %v1710_v53  ;;  %v5564_v53 = vld [vmem:[#allocation15_spill] sm:$0xff] }
 0x2ac   :  { %v4349_v22 = vpop.f32.mrf.mxu0 }
 0x2ad   :  { %v4339_v10 = vpop.f32.mrf.mxu2  ;;  %v4341_v6 = vpop.f32.mrf.mxu1  ;;  %5559 = vst [vmem:[#allocation56_spill] sm:$0xff] %v4349_v22  ;;  %v2600_v22 = vld [vmem:[%s5320_s2 + $0x28] sm:$0xff] }
 0x2ae   :  { %1390 = vmatmul.f32.gmra.mxu0 %v5561_v2 }
 0x2af   :  { %1232 = vmatmul.f32.gmra.mxu3 %v5560_v55 }
 0x2b0   :  { %1518 = vmatmul.f32.gmra.mxu1 %v2596_v50 }
 0x2b1   :  { %v4358_v21 = vpop.f32.mrf.mxu3 }
 0x2b2   :  { %1002 = vmatmul.f32.gmra.mxu2 %v4048_v25 }
 0x2b4   :  { %v4363_v0 = vpop.f32.mrf.mxu0 }
 0x2b5   :  { %v4354_v11 = vpop.f32.mrf.mxu2  ;;  %v4356_v33 = vpop.f32.mrf.mxu1  ;;  %5562 = vst [vmem:[#allocation59_spill] sm:$0xff] %v4363_v0 }
 0x2b6   :  { %1393 = vmatmul.f32.gmra.mxu0 %v5564_v53 }
 0x2b7   :  { %1235 = vmatmul.f32.gmra.mxu3 %v5563_v13 }
 0x2b8   :  { %1521 = vmatmul.f32.gmra.mxu1 %v2597_v17 }
 0x2b9   :  { %v4372_v36 = vpop.f32.mrf.mxu3 }
 0x2ba   :  { %1005 = vmatmul.f32.gmra.mxu2 %v4063_v18 }
 0x2bc   :  { %v4377_v17 = vpop.f32.mrf.mxu0 }
 0x2bd   :  { %v4368_v50 = vpop.f32.mrf.mxu2  ;;  %v4370_v2 = vpop.f32.mrf.mxu1  ;;  %5565 = vst [vmem:[#allocation57_spill] sm:$0xff] %v4377_v17 }
 0x2be   :  { %1396 = vmatmul.f32.gmra.mxu0 %v3882_v58 }
 0x2bf   :  { %1238 = vmatmul.f32.gmra.mxu3 %v4179_v28 }
 0x2c0   :  { %1524 = vmatmul.f32.gmra.mxu1 %v2598_v54 }
 0x2c1   :  { %v4386_v34 = vpop.f32.mrf.mxu3 }
 0x2c2   :  { %1008 = vmatmul.f32.gmra.mxu2 %v4078_v7 }
 0x2c4   :  { %v4391_v54 = vpop.f32.mrf.mxu0 }
 0x2c5   :  { %v4382_v53 = vpop.f32.mrf.mxu2  ;;  %v4384_v37 = vpop.f32.mrf.mxu1  ;;  %5566 = vst [vmem:[#allocation7_spill] sm:$0xff] %v4391_v54 }
 0x2c6   :  { %1399 = vmatmul.f32.gmra.mxu0 %v3903_v43 }
 0x2c7   :  { %1241 = vmatmul.f32.gmra.mxu3 %v4196_v12 }
 0x2c8   :  { %1527 = vmatmul.f32.gmra.mxu1 %v2599_v39 }
 0x2c9   :  { %v4398_v61 = vpop.f32.mrf.mxu3 }
 0x2ca   :  { %1011 = vmatmul.f32.gmra.mxu2 %v4093_v26  ;;  %5567 = vst [vmem:[#allocation58_spill] sm:$0xff] %v4398_v61  ;;  %v2601_v61 = vld [vmem:[%s5320_s2 + $0x30] sm:$0xff] }
 0x2cc   :  { %v4403_v0 = vpop.f32.mrf.mxu0 }
 0x2cd   :  { %v4396_v58 = vpop.f32.mrf.mxu2  ;;  %v809_v40 = vpop.f32.mrf.mxu1  ;;  %5568 = vst [vmem:[#allocation6_spill] sm:$0xff] %v4403_v0 }
 0x2ce   :  { %1402 = vmatmul.f32.gmra.mxu0 %v3932_v57 }
 0x2cf   :  { %1244 = vmatmul.f32.gmra.mxu3 %v4214_v31 }
 0x2d0   :  { %1530 = vmatmul.f32.gmra.mxu1 %v2600_v22 }
 0x2d1   :  { %v4410_v17 = vpop.f32.mrf.mxu3 }
 0x2d2   :  { %1014 = vmatmul.f32.gmra.mxu2 %v4108_v19  ;;  %5569 = vst [vmem:[#allocation5_spill] sm:$0xff] %v4410_v17  ;;  %v2602_v17 = vld [vmem:[%s5320_s2 + $0x38] sm:$0xff] }
 0x2d4   :  { %v4415_v54 = vpop.f32.mrf.mxu0 }
 0x2d5   :  { %v4408_v39 = vpop.f32.mrf.mxu2  ;;  %v812_v43 = vpop.f32.mrf.mxu1  ;;  %5570 = vst [vmem:[#allocation10_spill] sm:$0xff] %v4415_v54 }
 0x2d6   :  { %1405 = vmatmul.f32.gmra.mxu0 %v3965_v27 }
 0x2d7   :  { %1247 = vmatmul.f32.gmra.mxu3 %v4235_v45 }
 0x2d8   :  { %1533 = vmatmul.f32.gmra.mxu1 %v2601_v61 }
 0x2d9   :  { %v4422_v0 = vpop.f32.mrf.mxu3 }
 0x2da   :  { %1017 = vmatmul.f32.gmra.mxu2 %v4121_v44  ;;  %5571 = vst [vmem:[#allocation47_spill] sm:$0xff] %v4422_v0  ;;  %v2603_v0 = vld [vmem:[%s5320_s2 + $0x40] sm:$0xff] }
 0x2dc   :  { %v4427_v30 = vpop.f32.mrf.mxu0 }
 0x2dd   :  { %v4420_v22 = vpop.f32.mrf.mxu2  ;;  %v815_v57 = vpop.f32.mrf.mxu1  ;;  %5572 = vst [vmem:[#allocation9_spill] sm:$0xff] %v4427_v30 }
 0x2de   :  { %1408 = vmatmul.f32.gmra.mxu0 %v3984_v59  ;;  %v1933_v63 = vmax.f32 %v815_v57, 0.0  ;;  %v1918_v57 = vmax.f32 %v4384_v37, 0.0  ;;  %v1908_v37 = vmax.f32 %v4356_v33, 0.0  ;;  %v1893_v33 = vmax.f32 %v4300_v23, 0.0 }
 0x2df   :  { %1250 = vmatmul.f32.gmra.mxu3 %v4258_v5  ;;  %v1883_v23 = vmax.f32 %v4253_v42, 0.0  ;;  %v4517_v42 = vld [vmem:[%s5320_s2 + $0x1c0] sm:$0xff] }
 0x2e0   :  { %1536 = vmatmul.f32.gmra.mxu1 %v2602_v17 }
 0x2e1   :  { %v4434_v54 = vpop.f32.mrf.mxu3 }
 0x2e2   :  { %1020 = vmatmul.f32.gmra.mxu2 %v5556_v52  ;;  %5573 = vst [vmem:[#allocation52_spill] sm:$0xff] %v4434_v54  ;;  %v2604_v54 = vld [vmem:[%s5320_s2 + $0x48] sm:$0xff] }
 0x2e4   :  { %v4439_v46 = vpop.f32.mrf.mxu0 }
 0x2e5   :  { %v4432_v61 = vpop.f32.mrf.mxu2  ;;  %v818_v27 = vpop.f32.mrf.mxu1  ;;  %5574 = vst [vmem:[#allocation8_spill] sm:$0xff] %v4439_v46 }
 0x2e6   :  { %1411 = vmatmul.f32.gmra.mxu0 %v4003_v4 }
 0x2e7   :  { %1253 = vmatmul.f32.gmra.mxu3 %v4280_v62 }
 0x2e8   :  { %1539 = vmatmul.f32.gmra.mxu1 %v2603_v0  ;;  %v1938_v0 = vmax.f32 %v818_v27, 0.0 }
 0x2e9   :  { %v4446_v41 = vpop.f32.mrf.mxu3 }
 0x2ea   :  { %1023 = vmatmul.f32.gmra.mxu2 %v5560_v55  ;;  %5575 = vst [vmem:[#allocation13_spill] sm:$0xff] %v4446_v41 }
 0x2ec   :  { %v4451_v46 = vpop.f32.mrf.mxu0 }
 0x2ed   :  { %v4444_v17 = vpop.f32.mrf.mxu2  ;;  %v821_v59 = vpop.f32.mrf.mxu1  ;;  %5576 = vst [vmem:[#allocation29_spill] sm:$0xff] %v4451_v46 }
 0x2ee   :  { %v1943_v30 = vmax.f32 %v821_v59, 0.0  ;;  %1414 = vmatmul.f32.gmra.mxu0 %v4018_v24  ;;  %v1928_v59 = vmax.f32 %v812_v43, 0.0  ;;  %v1913_v24 = vmax.f32 %v4370_v2, 0.0  ;;  %v1903_v2 = vmax.f32 %v4341_v6, 0.0  ;;  %v4496_v6 = vld [vmem:[%s5320_s2 + $0x1b8] sm:$0xff] }
 0x2ef   :  { %1256 = vmatmul.f32.gmra.mxu3 %v4305_v14 }
 0x2f0   :  { %1542 = vmatmul.f32.gmra.mxu1 %v2604_v54  ;;  %2072 = vmatpush.msra.mxu2 %v1943_v30  ;;  %v1923_v30 = vmax.f32 %v809_v40, 0.0  ;;  %v2605_v54 = vld [vmem:[%s5320_s2 + $0x50] sm:$0xff] }
 0x2f1   :  { %v4460_v3 = vpop.f32.mrf.mxu3 }
 0x2f2   :  { %1026 = vmatmul.f32.gmra.mxu2 %v5563_v13  ;;  %5577 = vst [vmem:[#allocation12_spill] sm:$0xff] %v4460_v3 }
 0x2f3   :  { %2073 = vmatpush.msra.mxu2 %v1938_v0 }
 0x2f4   :  { %v4466_v27 = vpop.f32.mrf.mxu0 }
 0x2f5   :  { %v4456_v4 = vpop.f32.mrf.mxu2  ;;  %2074 = vmatpush.msra.mxu2 %v1933_v63  ;;  %v4458_v41 = vpop.f32.mrf.mxu1  ;;  %5578 = vst [vmem:[#allocation11_spill] sm:$0xff] %v4466_v27  ;;  %v4473_v63 = vld [vmem:[%s5320_s2 + $0x1b0] sm:$0xff] }
 0x2f6   :  { %1417 = vmatmul.f32.gmra.mxu0 %v4033_v1 }
 0x2f7   :  { %2075 = vmatpush.msra.mxu2 %v1928_v59  ;;  %1259 = vmatmul.f32.gmra.mxu3 %v4473_v63  ;;  %v2607_v59 = vld [vmem:[%s5320_s2 + $0x58] sm:$0xff] }
 0x2f8   :  { %1545 = vmatmul.f32.gmra.mxu1 %v2605_v54  ;;  %v1888_v54 = vmax.f32 %v4275_v51, 0.0  ;;  %v1873_v51 = vmax.f32 %v4209_v49, 0.0  ;;  %v2611_v49 = vld [vmem:[%s5320_s2 + $0x68] sm:$0xff] }
 0x2f9   :  { %2076 = vmatpush.msra.mxu2 %v1923_v30  ;;  %v1898_v30 = vmax.f32 %v4323_v48, 0.0 }
 0x2fa   :  { %1029 = vmatmul.f32.gmra.mxu2 %v4179_v28  ;;  %v4482_v0 = vpop.f32.mrf.mxu3 }
 0x2fb   :  { %2077 = vmatpush.msra.mxu2 %v1918_v57  ;;  %5579 = vst [vmem:[#allocation33_spill] sm:$0xff] %v4482_v0  ;;  %v4664_v0 = vld [vmem:[%s5321_s3 + $0x8] sm:$0xff] }
 0x2fc   :  { %v4489_v1 = vpop.f32.mrf.mxu0 }
 0x2fd   :  { %v4477_v40 = vpop.f32.mrf.mxu2  ;;  %2078 = vmatpush.msra.mxu2 %v1913_v24  ;;  %v4480_v43 = vpop.f32.mrf.mxu1  ;;  %5580 = vst [vmem:[#allocation14_spill] sm:$0xff] %v4489_v1  ;;  %v2615_v1 = vld [vmem:[%s5320_s2 + $0x78] sm:$0xff] }
 0x2fe   :  { %1420 = vmatmul.f32.gmra.mxu0 %v4048_v25 }
 0x2ff   :  { %2079 = vmatpush.msra.mxu2 %v1908_v37  ;;  %1262 = vmatmul.f32.gmra.mxu3 %v4496_v6  ;;  %v2609_v37 = vld [vmem:[%s5320_s2 + $0x60] sm:$0xff] }
 0x300   :  { %1548 = vmatmul.f32.gmra.mxu1 %v2607_v59  ;;  %v1868_v59 = vmax.f32 %v4191_v16, 0.0 }
 0x301   :  { %2080 = vmatpush.msra.mxu2 %v1903_v2  ;;  %v1878_v2 = vmax.f32 %v4230_v47, 0.0 }
 0x302   :  { %1032 = vmatmul.f32.gmra.mxu2 %v4196_v12  ;;  %v4503_v24 = vpop.f32.mrf.mxu3 }
 0x303   :  { %2081 = vmatpush.msra.mxu2 %v1898_v30  ;;  %5581 = vst [vmem:[#allocation37_spill] sm:$0xff] %v4503_v24 }
 0x304   :  { %v4510_v25 = vpop.f32.mrf.mxu0 }
 0x305   :  { %v4501_v48 = vpop.f32.mrf.mxu2  ;;  %2082 = vmatpush.msra.mxu2 %v1893_v33  ;;  %v830_v57 = vpop.f32.mrf.mxu1  ;;  %5582 = vst [vmem:[#allocation15_spill] sm:$0xff] %v4510_v25 }
 0x306   :  { %1423 = vmatmul.f32.gmra.mxu0 %v4063_v18  ;;  %v4535_v18 = vld [vmem:[%s5320_s2 + $0x1c8] sm:$0xff] }
 0x307   :  { %2083 = vmatpush.msra.mxu2 %v1888_v54  ;;  %1265 = vmatmul.f32.gmra.mxu3 %v4517_v42 }
 0x308   :  { %1551 = vmatmul.f32.gmra.mxu1 %v2609_v37 }
 0x309   :  { %2084 = vmatpush.msra.mxu2 %v1883_v23 }
 0x30a   :  { %1035 = vmatmul.f32.gmra.mxu2 %v4214_v31  ;;  %v4524_v33 = vpop.f32.mrf.mxu3 }
 0x30b   :  { %2085 = vmatpush.msra.mxu2 %v1878_v2  ;;  %5583 = vst [vmem:[#allocation60_spill] sm:$0xff] %v4524_v33  ;;  %v2613_v2 = vld [vmem:[%s5320_s2 + $0x70] sm:$0xff]  ;;  %v1849_v33 = vmax.f32 %v4432_v61, 0.0  ;;  %v1834_v61 = vmax.f32 %v4396_v58, 0.0 }
 0x30c   :  { %v4529_v54 = vpop.f32.mrf.mxu0 }
 0x30d   :  { %v4522_v47 = vpop.f32.mrf.mxu2  ;;  %2086 = vmatpush.msra.mxu2 %v1873_v51  ;;  %v833_v30 = vpop.f32.mrf.mxu1  ;;  %5584 = vst [vmem:[#allocation61_spill] sm:$0xff] %v4529_v54 }
 0x30e   :  { %1426 = vmatmul.f32.gmra.mxu0 %v4078_v7  ;;  %v1963_v54 = vmax.f32 %v833_v30, 0.0  ;;  %v1948_v30 = vmax.f32 %v4458_v41, 0.0 }
 0x30f   :  { %2087 = vmatpush.msra.mxu2 %v1868_v59  ;;  %1268 = vmatmul.f32.gmra.mxu3 %v4535_v18  ;;  %v4552_v59 = vld [vmem:[%s5320_s2 + $0x1d0] sm:$0xff] }
 0x310   :  { %1554 = vmatmul.f32.gmra.mxu1 %v2611_v49 }
 0x312   :  { %1038 = vmatmul.f32.gmra.mxu2 %v4235_v45  ;;  %v4541_v37 = vpop.f32.mrf.mxu3 }
 0x313   :  { %5585 = vst [vmem:[#allocation62_spill] sm:$0xff] %v4541_v37 }
 0x314   :  { %v4546_v51 = vpop.f32.mrf.mxu0 }
 0x315   :  { %v4539_v16 = vpop.f32.mrf.mxu2  ;;  %v836_v23 = vpop.f32.mrf.mxu1  ;;  %5586 = vst [vmem:[#allocation63_spill] sm:$0xff] %v4546_v51 }
 0x316   :  { %1429 = vmatmul.f32.gmra.mxu0 %v4093_v26  ;;  %v4569_v26 = vld [vmem:[%s5320_s2 + $0x1d8] sm:$0xff] }
 0x317   :  { %1271 = vmatmul.f32.gmra.mxu3 %v4552_v59 }
 0x318   :  { %1557 = vmatmul.f32.gmra.mxu1 %v2613_v2  ;;  %v1968_v2 = vmax.f32 %v836_v23, 0.0  ;;  %v1958_v23 = vmax.f32 %v830_v57, 0.0 }
 0x31a   :  { %1041 = vmatmul.f32.gmra.mxu2 %v4258_v5  ;;  %v4558_v27 = vpop.f32.mrf.mxu3 }
 0x31b   :  { %5587 = vst [vmem:[#allocation64_spill] sm:$0xff] %v4558_v27 }
 0x31c   :  { %v4563_v25 = vpop.f32.mrf.mxu0 }
 0x31d   :  { %v4556_v7 = vpop.f32.mrf.mxu2  ;;  %v839_v49 = vpop.f32.mrf.mxu1  ;;  %5588 = vst [vmem:[#allocation65_spill] sm:$0xff] %v4563_v25  ;;  %v4628_v25 = vld [vmem:[%s5320_s2 + $0x1f0] sm:$0xff] }
 0x31e   :  { %v1973_v46 = vmax.f32 %v839_v49, 0.0  ;;  %1432 = vmatmul.f32.gmra.mxu0 %v4108_v19  ;;  %v4590_v19 = vld [vmem:[%s5320_s2 + $0x1e0] sm:$0xff] }
 0x31f   :  { %1274 = vmatmul.f32.gmra.mxu3 %v4569_v26 }
 0x320   :  { %1560 = vmatmul.f32.gmra.mxu1 %v2615_v1  ;;  %2102 = vmatpush.msra.mxu3 %v1973_v46  ;;  %v1953_v1 = vmax.f32 %v4480_v43, 0.0 }
 0x322   :  { %1044 = vmatmul.f32.gmra.mxu2 %v4280_v62  ;;  %2103 = vmatpush.msra.mxu3 %v1968_v2  ;;  %v4578_v51 = vpop.f32.mrf.mxu3  ;;  %v2617_v2 = vld [vmem:[%s5320_s2 + $0x80] sm:$0xff] }
 0x323   :  { %5590 = vst [vmem:[#allocation67_spill] sm:$0xff] %v4578_v51 }
 0x324   :  { %2104 = vmatpush.msra.mxu3 %v1963_v54  ;;  %v4584_v57 = vpop.f32.mrf.mxu0 }
 0x325   :  { %v4573_v49 = vpop.f32.mrf.mxu2  ;;  %v4575_v46 = vpop.f32.mrf.mxu1  ;;  %5591 = vst [vmem:[#allocation68_spill] sm:$0xff] %v4584_v57 }
 0x326   :  { %5589 = vst [vmem:[#allocation66_spill] sm:$0xff] %v4575_v46  ;;  %2105 = vmatpush.msra.mxu3 %v1958_v23  ;;  %1435 = vmatmul.f32.gmra.mxu0 %v4121_v44  ;;  %v2619_v23 = vld [vmem:[%s5320_s2 + $0x88] sm:$0xff] }
 0x327   :  { %1277 = vmatmul.f32.gmra.mxu3 %v4590_v19 }
 0x328   :  { %1563 = vmatmul.f32.gmra.mxu1 %v2617_v2  ;;  %2106 = vmatpush.msra.mxu3 %v1953_v1 }
 0x32a   :  { %1047 = vmatmul.f32.gmra.mxu2 %v4305_v14  ;;  %2107 = vmatpush.msra.mxu3 %v1948_v30  ;;  %v4598_v54 = vpop.f32.mrf.mxu3  ;;  %v4609_v30 = vld [vmem:[%s5320_s2 + $0x1e8] sm:$0xff] }
 0x32b   :  { %5593 = vst [vmem:[#allocation70_spill] sm:$0xff] %v4598_v54  ;;  %v2634_v54 = vld [vmem:[%s5320_s2 + $0xe8] sm:$0xff] }
 0x32c   :  { %v4603_v1 = vpop.f32.mrf.mxu0 }
 0x32d   :  { %v4594_v41 = vpop.f32.mrf.mxu2  ;;  %v4596_v43 = vpop.f32.mrf.mxu1  ;;  %5594 = vst [vmem:[#allocation71_spill] sm:$0xff] %v4603_v1 }
 0x32e   :  { %5592 = vst [vmem:[#allocation69_spill] sm:$0xff] %v4596_v43  ;;  %1438 = vmatmul.f32.gmra.mxu0 %v5556_v52 }
 0x32f   :  { %1280 = vmatmul.f32.gmra.mxu3 %v4609_v30 }
 0x330   :  { %1566 = vmatmul.f32.gmra.mxu1 %v2619_v23  ;;  %v2621_v23 = vld [vmem:[%s5320_s2 + $0x90] sm:$0xff] }
 0x332   :  { %1050 = vmatmul.f32.gmra.mxu2 %v4473_v63  ;;  %v4617_v46 = vpop.f32.mrf.mxu3 }
 0x333   :  { %5596 = vst [vmem:[#allocation73_spill] sm:$0xff] %v4617_v46 }
 0x334   :  { %v4622_v43 = vpop.f32.mrf.mxu0 }
 0x335   :  { %v4613_v44 = vpop.f32.mrf.mxu2  ;;  %v4615_v2 = vpop.f32.mrf.mxu1  ;;  %5597 = vst [vmem:[#allocation74_spill] sm:$0xff] %v4622_v43  ;;  %v4647_v43 = vld [vmem:[%s5320_s2 + $0x1f8] sm:$0xff] }
 0x336   :  { %5595 = vst [vmem:[#allocation72_spill] sm:$0xff] %v4615_v2  ;;  %1441 = vmatmul.f32.gmra.mxu0 %v5560_v55 }
 0x337   :  { %1283 = vmatmul.f32.gmra.mxu3 %v4628_v25 }
 0x338   :  { %1569 = vmatmul.f32.gmra.mxu1 %v2621_v23  ;;  %v2623_v23 = vld [vmem:[%s5320_s2 + $0x98] sm:$0xff] }
 0x33a   :  { %1053 = vmatmul.f32.gmra.mxu2 %v4496_v6  ;;  %v4636_v57 = vpop.f32.mrf.mxu3 }
 0x33b   :  { %5599 = vst [vmem:[#allocation76_spill] sm:$0xff] %v4636_v57 }
 0x33c   :  { %v4641_v1 = vpop.f32.mrf.mxu0 }
 0x33d   :  { %v4632_v52 = vpop.f32.mrf.mxu2  ;;  %v4634_v2 = vpop.f32.mrf.mxu1  ;;  %5600 = vst [vmem:[#allocation77_spill] sm:$0xff] %v4641_v1  ;;  %v2625_v1 = vld [vmem:[%s5320_s2 + $0xa0] sm:$0xff] }
 0x33e   :  { %5598 = vst [vmem:[#allocation75_spill] sm:$0xff] %v4634_v2  ;;  %1444 = vmatmul.f32.gmra.mxu0 %v5563_v13  ;;  %v1859_v13 = vmax.f32 %v4456_v4, 0.0  ;;  %v1844_v4 = vmax.f32 %v4420_v22, 0.0 }
 0x33f   :  { %1286 = vmatmul.f32.gmra.mxu3 %v4647_v43 }
 0x340   :  { %1572 = vmatmul.f32.gmra.mxu1 %v2623_v23  ;;  %v1864_v23 = vmax.f32 %v4477_v40, 0.0  ;;  %v1854_v40 = vmax.f32 %v4444_v17, 0.0 }
 0x342   :  { %1056 = vmatmul.f32.gmra.mxu2 %v4517_v42  ;;  %v4655_v3 = vpop.f32.mrf.mxu3 }
 0x343   :  { %5602 = vst [vmem:[#allocation79_spill] sm:$0xff] %v4655_v3 }
 0x344   :  { %v4666_v24 = vpop.f32.mrf.mxu0 }
 0x345   :  { %v4651_v55 = vpop.f32.mrf.mxu2  ;;  %v4653_v2 = vpop.f32.mrf.mxu1  ;;  %5603 = vst [vmem:[#allocation80_spill] sm:$0xff] %v4666_v24  ;;  %v2626_v24 = vld [vmem:[%s5320_s2 + $0xa8] sm:$0xff] }
 0x346   :  { %5601 = vst [vmem:[#allocation78_spill] sm:$0xff] %v4653_v2  ;;  %1447 = vmatmul.f32.gmra.mxu0 %v4179_v28  ;;  %v1839_v28 = vmax.f32 %v4408_v39, 0.0  ;;  %v2627_v39 = vld [vmem:[%s5320_s2 + $0xb0] sm:$0xff] }
 0x347   :  { %2068 = vmatmul.f32.vlgmr.msrb.gmra.mxu3 %v4664_v0 }
 0x348   :  { %1575 = vmatmul.f32.gmra.mxu1 %v2625_v1  ;;  %2132 = vmatpush.msrb.mxu3 %v1864_v23 }
 0x34a   :  { %1059 = vmatmul.f32.gmra.mxu2 %v4535_v18  ;;  %v4678_v37 = vpop.f32.mrf.mxu3  ;;  %2133 = vmatpush.msrb.mxu3 %v1859_v13  ;;  %v1829_v13 = vmax.f32 %v4382_v53, 0.0  ;;  %v1814_v53 = vmax.f32 %v4339_v10, 0.0  ;;  %v1804_v10 = vmax.f32 %v4298_v15, 0.0  ;;  %v1789_v15 = vmax.f32 %v4228_v29, 0.0  ;;  %v2630_v29 = vld [vmem:[%s5320_s2 + $0xc8] sm:$0xff] }
 0x34c   :  { %2134 = vmatpush.msrb.mxu3 %v1854_v40  ;;  %v4684_v17 = vpop.f32.mrf.mxu0  ;;  %v1824_v40 = vmax.f32 %v4368_v50, 0.0 }
 0x34d   :  { %v4673_v2 = vpop.f32.mrf.mxu2  ;;  %v4675_v1 = vpop.f32.mrf.mxu1  ;;  %5605 = vst [vmem:[#allocation82_spill] sm:$0xff] %v4684_v17  ;;  %v4795_v17 = vld [vmem:[%s5321_s3 + $0x10] sm:$0xff] }
 0x34e   :  { %5604 = vst [vmem:[#allocation81_spill] sm:$0xff] %v4675_v1  ;;  %2135 = vmatpush.msrb.mxu3 %v1849_v33  ;;  %1450 = vmatmul.f32.gmra.mxu0 %v4196_v12  ;;  %v1819_v12 = vmax.f32 %v4354_v11, 0.0  ;;  %v2628_v11 = vld [vmem:[%s5320_s2 + $0xb8] sm:$0xff]  ;;  %v1784_v1 = vmax.f32 %v4207_v60, 0.0 }
 0x350   :  { %1578 = vmatmul.f32.gmra.mxu1 %v2626_v24  ;;  %2136 = vmatpush.msrb.mxu3 %v1844_v4 }
 0x352   :  { %1062 = vmatmul.f32.gmra.mxu2 %v4552_v59  ;;  %v4695_v24 = vpop.f32.mrf.mxu3  ;;  %2137 = vmatpush.msrb.mxu3 %v1839_v28  ;;  %v1809_v28 = vmax.f32 %v4321_v56, 0.0 }
 0x354   :  { %2138 = vmatpush.msrb.mxu3 %v1834_v61  ;;  %v4701_v58 = vpop.f32.mrf.mxu0  ;;  %v1799_v61 = vmax.f32 %v4272_v9, 0.0 }
 0x355   :  { %v4690_v23 = vpop.f32.mrf.mxu2  ;;  %v4692_v22 = vpop.f32.mrf.mxu1 }
 0x356   :  { %5606 = vst [vmem:[#allocation83_spill] sm:$0xff] %v4692_v22  ;;  %2139 = vmatpush.msrb.mxu3 %v1829_v13  ;;  %1453 = vmatmul.f32.gmra.mxu0 %v4214_v31  ;;  %v1779_v22 = vmax.f32 %v4189_v20, 0.0  ;;  %v2633_v20 = vld [vmem:[%s5320_s2 + $0xe0] sm:$0xff] }
 0x358   :  { %1581 = vmatmul.f32.gmra.mxu1 %v2627_v39  ;;  %2140 = vmatpush.msrb.mxu3 %v1824_v40  ;;  %v1794_v40 = vmax.f32 %v4251_v38, 0.0 }
 0x35a   :  { %1065 = vmatmul.f32.gmra.mxu2 %v4569_v26  ;;  %v4711_v4 = vpop.f32.mrf.mxu3  ;;  %2141 = vmatpush.msrb.mxu3 %v1819_v12  ;;  %v2629_v12 = vld [vmem:[%s5320_s2 + $0xc0] sm:$0xff] }
 0x35c   :  { %2142 = vmatpush.msrb.mxu3 %v1814_v53  ;;  %v4719_v31 = vpop.f32.mrf.mxu0 }
 0x35d   :  { %v4707_v33 = vpop.f32.mrf.mxu2  ;;  %v4709_v50 = vpop.f32.mrf.mxu1 }
 0x35e   :  { %5607 = vst [vmem:[#allocation84_spill] sm:$0xff] %v4709_v50  ;;  %2143 = vmatpush.msrb.mxu3 %v1809_v28  ;;  %1456 = vmatmul.f32.gmra.mxu0 %v4235_v45  ;;  %v5612_v50 = vld [vmem:[#allocation40_spill] sm:$0xff] }
 0x360   :  { %1584 = vmatmul.f32.gmra.mxu1 %v2628_v11  ;;  %2144 = vmatpush.msrb.mxu3 %v1804_v10 }
 0x362   :  { %1068 = vmatmul.f32.gmra.mxu2 %v4590_v19  ;;  %v4728_v39 = vpop.f32.mrf.mxu3  ;;  %2145 = vmatpush.msrb.mxu3 %v1799_v61  ;;  %v2631_v61 = vld [vmem:[%s5320_s2 + $0xd0] sm:$0xff] }
 0x364   :  { %2146 = vmatpush.msrb.mxu3 %v1794_v40  ;;  %v4735_v45 = vpop.f32.mrf.mxu0 }
 0x365   :  { %v4723_v13 = vpop.f32.mrf.mxu2  ;;  %v4725_v56 = vpop.f32.mrf.mxu1 }
 0x366   :  { %5608 = vst [vmem:[#allocation85_spill] sm:$0xff] %v4725_v56  ;;  %2147 = vmatpush.msrb.mxu3 %v1789_v15  ;;  %1459 = vmatmul.f32.gmra.mxu0 %v4258_v5  ;;  %v1774_v56 = vmax.f32 %v5612_v50, 0.0  ;;  %v5617_v50 = vld [vmem:[#allocation28_spill] sm:$0xff] }
 0x368   :  { %1587 = vmatmul.f32.gmra.mxu1 %v2629_v12 }
 0x36a   :  { %1071 = vmatmul.f32.gmra.mxu2 %v4609_v30  ;;  %v4742_v53 = vpop.f32.mrf.mxu3 }
 0x36c   :  { %v4748_v28 = vpop.f32.mrf.mxu0 }
 0x36d   :  { %v4738_v9 = vpop.f32.mrf.mxu2  ;;  %v4740_v38 = vpop.f32.mrf.mxu1 }
 0x36e   :  { %5609 = vst [vmem:[#allocation86_spill] sm:$0xff] %v4740_v38  ;;  %1462 = vmatmul.f32.gmra.mxu0 %v4280_v62 }
 0x370   :  { %1590 = vmatmul.f32.gmra.mxu1 %v2630_v29  ;;  %v4773_v29 = vld [vmem:[%s5321_s3] sm:$0xff] }
 0x372   :  { %1074 = vmatmul.f32.gmra.mxu2 %v4628_v25  ;;  %v4755_v10 = vpop.f32.mrf.mxu3 }
 0x374   :  { %v4761_v40 = vpop.f32.mrf.mxu0 }
 0x375   :  { %v4751_v11 = vpop.f32.mrf.mxu2  ;;  %v4753_v5 = vpop.f32.mrf.mxu1 }
 0x376   :  { %5610 = vst [vmem:[#allocation87_spill] sm:$0xff] %v4753_v5  ;;  %1465 = vmatmul.f32.gmra.mxu0 %v4305_v14 }
 0x378   :  { %1593 = vmatmul.f32.gmra.mxu1 %v2631_v61  ;;  %v2632_v61 = vld [vmem:[%s5320_s2 + $0xd8] sm:$0xff] }
 0x37a   :  { %1077 = vmatmul.f32.gmra.mxu2 %v4647_v43  ;;  %v4768_v12 = vpop.f32.mrf.mxu3 }
 0x37c   :  { %v4780_v14 = vpop.f32.mrf.mxu0 }
 0x37d   :  { %v4764_v15 = vpop.f32.mrf.mxu2  ;;  %v4766_v62 = vpop.f32.mrf.mxu1 }
 0x37e   :  { %5611 = vst [vmem:[#allocation88_spill] sm:$0xff] %v4766_v62  ;;  %1468 = vmatmul.f32.gmra.mxu0 %v4473_v63  ;;  %v5616_v63 = vld [vmem:[#allocation32_spill] sm:$0xff] }
 0x380   :  { %1596 = vmatmul.f32.gmra.mxu1 %v2632_v61  ;;  %v5615_v61 = vld [vmem:[#allocation36_spill] sm:$0xff] }
 0x381   :  { %v1769_v60 = vmax.f32 %v5615_v61, 0.0  ;;  %v1759_v61 = vmax.f32 %v5617_v50, 0.0 }
 0x382   :  { %2048 = vmatmul.f32.vlgmr.msrb.gmra.mxu2 %v4773_v29  ;;  %v4789_v62 = vpop.f32.mrf.mxu3 }
 0x383   :  { %2112 = vmatpush.msrb.mxu2 %v1784_v1  ;;  %v1764_v1 = vmax.f32 %v5616_v63, 0.0  ;;  %v5621_v63 = vld [vmem:[#allocation24_spill] sm:$0xff] }
 0x385   :  { %2113 = vmatpush.msrb.mxu2 %v1779_v22  ;;  %v4785_v38 = vpop.f32.mrf.mxu2  ;;  %v4787_v5 = vpop.f32.mrf.mxu1 }
 0x386   :  { %5613 = vst [vmem:[#allocation40_spill] sm:$0xff] %v4785_v38  ;;  %v4802_v22 = vpop.f32.mrf.mxu0  ;;  %1471 = vmatmul.f32.gmra.mxu0 %v4496_v6  ;;  %v1944_v38 = vmax.f32 %v4764_v15, 0.0  ;;  %v1929_v15 = vmax.f32 %v4723_v13, 0.0  ;;  %v1909_v13 = vmax.f32 %v4651_v55, 0.0  ;;  %v1894_v55 = vmax.f32 %v4594_v41, 0.0  ;;  %v2639_v41 = vld [vmem:[%s5320_s2 + $0x110] sm:$0xff] }
 0x387   :  { %5614 = vst [vmem:[#allocation89_spill] sm:$0xff] %v4787_v5  ;;  %2114 = vmatpush.msrb.mxu2 %v1774_v56  ;;  %v5618_v56 = vld [vmem:[#allocation26_spill] sm:$0xff] }
 0x388   :  { %1599 = vmatmul.f32.gmra.mxu1 %v2633_v20  ;;  %v1754_v5 = vmax.f32 %v5618_v56, 0.0 }
 0x389   :  { %2115 = vmatpush.msrb.mxu2 %v1769_v60  ;;  %v1749_v60 = vmax.f32 %v5621_v63, 0.0 }
 0x38a   :  { %2088 = vmatmul.f32.vlgmr.msra.gmra.mxu2 %v4795_v17  ;;  %v4811_v20 = vpop.f32.mrf.mxu3 }
 0x38b   :  { %2116 = vmatpush.msrb.mxu2 %v1764_v1  ;;  %v5622_v1 = vld [vmem:[#allocation23_spill] sm:$0xff] }
 0x38c   :  { %v1744_v50 = vmax.f32 %v5622_v1, 0.0  ;;  %v5627_v1 = vld [vmem:[#allocation19_spill] sm:$0xff] }
 0x38d   :  { %2117 = vmatpush.msrb.mxu2 %v1759_v61  ;;  %v4807_v27 = vpop.f32.mrf.mxu2  ;;  %v4809_v51 = vpop.f32.mrf.mxu1  ;;  %v5623_v61 = vld [vmem:[#allocation22_spill] sm:$0xff] }
 0x38e   :  { %5619 = vst [vmem:[#allocation36_spill] sm:$0xff] %v4807_v27  ;;  %v4818_v6 = vpop.f32.mrf.mxu0  ;;  %v1739_v56 = vmax.f32 %v5623_v61, 0.0  ;;  %1474 = vmatmul.f32.gmra.mxu0 %v4517_v42  ;;  %v1939_v27 = vmax.f32 %v4751_v11, 0.0 }
 0x38f   :  { %5620 = vst [vmem:[#allocation32_spill] sm:$0xff] %v4809_v51  ;;  %2118 = vmatpush.msrb.mxu2 %v1754_v5  ;;  %v5624_v51 = vld [vmem:[#allocation21_spill] sm:$0xff] }
 0x390   :  { %1602 = vmatmul.f32.gmra.mxu1 %v2634_v54  ;;  %v1734_v46 = vmax.f32 %v5624_v51, 0.0  ;;  %v5626_v54 = vld [vmem:[#allocation20_spill] sm:$0xff]  ;;  %v5628_v51 = vld [vmem:[#allocation18_spill] sm:$0xff] }
 0x391   :  { %2119 = vmatpush.msrb.mxu2 %v1749_v60  ;;  %v1729_v3 = vmax.f32 %v5626_v54, 0.0  ;;  %v2635_v60 = vld [vmem:[%s5320_s2 + $0xf0] sm:$0xff]  ;;  %v1719_v61 = vmax.f32 %v5628_v51, 0.0 }
 0x392   :  { %v4827_v57 = vpop.f32.mrf.mxu3 }
 0x393   :  { %2120 = vmatpush.msrb.mxu2 %v1744_v50  ;;  %v1724_v50 = vmax.f32 %v5627_v1, 0.0  ;;  %v5630_v1 = vld [vmem:[#allocation16_spill] sm:$0xff] }
 0x395   :  { %2121 = vmatpush.msrb.mxu2 %v1739_v56  ;;  %v4823_v63 = vpop.f32.mrf.mxu2  ;;  %v4825_v5 = vpop.f32.mrf.mxu1  ;;  %v5629_v56 = vld [vmem:[#allocation17_spill] sm:$0xff] }
 0x396   :  { %5625 = vst [vmem:[#allocation28_spill] sm:$0xff] %v4825_v5  ;;  %v4834_v42 = vpop.f32.mrf.mxu0  ;;  %1477 = vmatmul.f32.gmra.mxu0 %v4535_v18  ;;  %v1714_v5 = vmax.f32 %v5629_v56, 0.0  ;;  %v2636_v18 = vld [vmem:[%s5320_s2 + $0xf8] sm:$0xff] }
 0x397   :  { %2122 = vmatpush.msrb.mxu2 %v1734_v46 }
 0x398   :  { %1605 = vmatmul.f32.gmra.mxu1 %v2635_v60 }
 0x399   :  { %2123 = vmatpush.msrb.mxu2 %v1729_v3  ;;  %v1709_v3 = vmax.f32 %v5630_v1, 0.0 }
 0x39a   :  { %v4844_v60 = vpop.f32.mrf.mxu3 }
 0x39b   :  { %2124 = vmatpush.msrb.mxu2 %v1724_v50  ;;  %v1934_v50 = vmax.f32 %v4738_v9, 0.0  ;;  %v1919_v9 = vmax.f32 %v4690_v23, 0.0  ;;  %v1904_v23 = vmax.f32 %v4632_v52, 0.0 }
 0x39d   :  { %2125 = vmatpush.msrb.mxu2 %v1719_v61  ;;  %v4839_v54 = vpop.f32.mrf.mxu2  ;;  %v4841_v46 = vpop.f32.mrf.mxu1  ;;  %v1924_v61 = vmax.f32 %v4707_v33, 0.0 }
 0x39e   :  { %v4852_v51 = vpop.f32.mrf.mxu0  ;;  %1480 = vmatmul.f32.gmra.mxu0 %v4552_v59 }
 0x39f   :  { %2126 = vmatpush.msrb.mxu2 %v1714_v5 }
 0x3a0   :  { %1608 = vmatmul.f32.gmra.mxu1 %v2636_v18  ;;  %v1899_v18 = vmax.f32 %v4613_v44, 0.0  ;;  %v1884_v44 = vmax.f32 %v4556_v7, 0.0  ;;  %v1865_v7 = vmax.f32 %v4386_v34, 0.0 }
 0x3a1   :  { %2127 = vmatpush.msrb.mxu2 %v1709_v3 }
 0x3a2   :  { %2128 = vmatmul.f32.vlgmr.msrb.gmra.mxu2 %v4773_v29  ;;  %v4862_v56 = vpop.f32.mrf.mxu3 }
 0x3a3   :  { %2152 = vmatpush.msra.mxu2 %v1944_v38  ;;  %v2637_v38 = vld [vmem:[%s5320_s2 + $0x100] sm:$0xff] }
 0x3a5   :  { %2153 = vmatpush.msra.mxu2 %v1939_v27  ;;  %v4857_v5 = vpop.f32.mrf.mxu2  ;;  %v4859_v11 = vpop.f32.mrf.mxu1  ;;  %v1914_v27 = vmax.f32 %v4673_v2, 0.0  ;;  %v2638_v2 = vld [vmem:[%s5320_s2 + $0x108] sm:$0xff] }
 0x3a6   :  { %v4869_v59 = vpop.f32.mrf.mxu0  ;;  %1483 = vmatmul.f32.gmra.mxu0 %v4569_v26 }
 0x3a7   :  { %2154 = vmatpush.msra.mxu2 %v1934_v50  ;;  %v1889_v50 = vmax.f32 %v4573_v49, 0.0 }
 0x3a8   :  { %1611 = vmatmul.f32.gmra.mxu1 %v2637_v38 }
 0x3a9   :  { %2155 = vmatpush.msra.mxu2 %v1929_v15 }
 0x3aa   :  { %v4878_v3 = vpop.f32.mrf.mxu3 }
 0x3ab   :  { %2156 = vmatpush.msra.mxu2 %v1924_v61 }
 0x3ad   :  { %2157 = vmatpush.msra.mxu2 %v1919_v9  ;;  %v4873_v33 = vpop.f32.mrf.mxu2  ;;  %v4875_v1 = vpop.f32.mrf.mxu1  ;;  %v1879_v9 = vmax.f32 %v4539_v16, 0.0  ;;  %v1869_v16 = vmax.f32 %v4501_v48, 0.0 }
 0x3ae   :  { %v4885_v26 = vpop.f32.mrf.mxu0  ;;  %1486 = vmatmul.f32.gmra.mxu0 %v4590_v19  ;;  %v1874_v19 = vmax.f32 %v4522_v47, 0.0  ;;  %v2640_v47 = vld [vmem:[%s5320_s2 + $0x118] sm:$0xff] }
 0x3af   :  { %2158 = vmatpush.msra.mxu2 %v1914_v27 }
 0x3b0   :  { %1614 = vmatmul.f32.gmra.mxu1 %v2638_v2 }
 0x3b1   :  { %2159 = vmatpush.msra.mxu2 %v1909_v13 }
 0x3b2   :  { %v1281_v61 = vpop.f32.mrf.mxu3 }
 0x3b3   :  { %2160 = vmatpush.msra.mxu2 %v1904_v23  ;;  %v1860_v23 = vmax.f32 %v4372_v36, 0.0 }
 0x3b5   :  { %2161 = vmatpush.msra.mxu2 %v1899_v18  ;;  %v4889_v52 = vpop.f32.mrf.mxu2  ;;  %v4891_v15 = vpop.f32.mrf.mxu1  ;;  %v1850_v18 = vmax.f32 %v4343_v8, 0.0  ;;  %v1840_v8 = vmax.f32 %v4308_v35, 0.0  ;;  %v2005_v35 = vmax.f32 %v4862_v56, 0.0 }
 0x3b6   :  { %v4898_v49 = vpop.f32.mrf.mxu0  ;;  %1489 = vmatmul.f32.gmra.mxu0 %v4609_v30  ;;  %v1855_v30 = vmax.f32 %v4358_v21, 0.0 }
 0x3b7   :  { %2162 = vmatpush.msra.mxu2 %v1894_v55  ;;  %v1845_v55 = vmax.f32 %v4325_v32, 0.0  ;;  %v2010_v32 = vmax.f32 %v4878_v3, 0.0  ;;  %v5634_v3 = vld [vmem:[#allocation44_spill] sm:$0xff] }
 0x3b8   :  { %1617 = vmatmul.f32.gmra.mxu1 %v2639_v41  ;;  %v5631_v41 = vld [vmem:[#allocation51_spill] sm:$0xff] }
 0x3b9   :  { %2163 = vmatpush.msra.mxu2 %v1889_v50 }
 0x3ba   :  { %v1284_v13 = vpop.f32.mrf.mxu3 }
 0x3bb   :  { %2164 = vmatpush.msra.mxu2 %v1884_v44  ;;  %v2020_v21 = vmax.f32 %v1284_v13, 0.0  ;;  %v2641_v44 = vld [vmem:[%s5320_s2 + $0x120] sm:$0xff] }
 0x3bd   :  { %2165 = vmatpush.msra.mxu2 %v1879_v9  ;;  %v4903_v38 = vpop.f32.mrf.mxu2  ;;  %v4905_v27 = vpop.f32.mrf.mxu1 }
 0x3be   :  { %v4914_v34 = vpop.f32.mrf.mxu0  ;;  %1492 = vmatmul.f32.gmra.mxu0 %v4628_v25  ;;  %v2015_v25 = vmax.f32 %v1281_v61, 0.0  ;;  %v5633_v61 = vld [vmem:[#allocation46_spill] sm:$0xff] }
 0x3bf   :  { %2166 = vmatpush.msra.mxu2 %v1874_v19  ;;  %v1835_v19 = vmax.f32 %v5631_v41, 0.0 }
 0x3c0   :  { %1620 = vmatmul.f32.gmra.mxu1 %v2640_v47  ;;  %v1825_v47 = vmax.f32 %v5633_v61, 0.0  ;;  %v5639_v61 = vld [vmem:[#allocation27_spill] sm:$0xff] }
 0x3c1   :  { %2167 = vmatpush.msra.mxu2 %v1869_v16 }
 0x3c2   :  { %2168 = vmatmul.f32.vlgmr.msra.gmra.mxu2 %v4795_v17  ;;  %v1287_v2 = vpop.f32.mrf.mxu3 }
 0x3c3   :  { %2212 = vmatpush.msrb.mxu2 %v1865_v7  ;;  %v2025_v50 = vmax.f32 %v1287_v2, 0.0  ;;  %v5632_v7 = vld [vmem:[#allocation49_spill] sm:$0xff]  ;;  %v1995_v2 = vmax.f32 %v4827_v57, 0.0  ;;  %v5637_v57 = vld [vmem:[#allocation35_spill] sm:$0xff] }
 0x3c4   :  { %v1830_v16 = vmax.f32 %v5632_v7, 0.0  ;;  %v5638_v7 = vld [vmem:[#allocation31_spill] sm:$0xff] }
 0x3c5   :  { %2213 = vmatpush.msrb.mxu2 %v1860_v23  ;;  %v4918_v36 = vpop.f32.mrf.mxu2  ;;  %v4920_v48 = vpop.f32.mrf.mxu1  ;;  %2252 = vmatpush.msrb.mxu0 %v2025_v50  ;;  %v1990_v50 = vmax.f32 %v4811_v20, 0.0  ;;  %v2643_v20 = vld [vmem:[%s5320_s2 + $0x130] sm:$0xff] }
 0x3c6   :  { %v4927_v9 = vpop.f32.mrf.mxu0  ;;  %1495 = vmatmul.f32.gmra.mxu0 %v4647_v43  ;;  %v2642_v43 = vld [vmem:[%s5320_s2 + $0x128] sm:$0xff] }
 0x3c7   :  { %2214 = vmatpush.msrb.mxu2 %v1855_v30  ;;  %2253 = vmatpush.msrb.mxu0 %v2020_v21  ;;  %v2000_v30 = vmax.f32 %v4844_v60, 0.0  ;;  %v5636_v60 = vld [vmem:[#allocation38_spill] sm:$0xff] }
 0x3c8   :  { %1623 = vmatmul.f32.gmra.mxu1 %v2641_v44  ;;  %v1810_v44 = vmax.f32 %v5636_v60, 0.0  ;;  %v2644_v60 = vld [vmem:[%s5320_s2 + $0x138] sm:$0xff] }
 0x3c9   :  { %2215 = vmatpush.msrb.mxu2 %v1850_v18  ;;  %2254 = vmatpush.msrb.mxu0 %v2015_v25  ;;  %v1820_v18 = vmax.f32 %v5634_v3, 0.0  ;;  %v1985_v25 = vmax.f32 %v4789_v62, 0.0 }
 0x3cb   :  { %2216 = vmatpush.msrb.mxu2 %v1845_v55  ;;  %2255 = vmatpush.msrb.mxu0 %v2010_v32  ;;  %v5635_v55 = vld [vmem:[#allocation42_spill] sm:$0xff]  ;;  %v1980_v32 = vmax.f32 %v4768_v12, 0.0 }
 0x3cc   :  { %v1815_v21 = vmax.f32 %v5635_v55, 0.0 }
 0x3cd   :  { %2217 = vmatpush.msrb.mxu2 %v1840_v8  ;;  %v4933_v13 = vpop.f32.mrf.mxu2  ;;  %v4936_v23 = vpop.f32.mrf.mxu1  ;;  %2256 = vmatpush.msrb.mxu0 %v2005_v35  ;;  %v1975_v35 = vmax.f32 %v4755_v10, 0.0  ;;  %v4976_v10 = vld [vmem:[%s5321_s3 + $0x18] sm:$0xff] }
 0x3ce   :  { %v4945_v56 = vpop.f32.mrf.mxu0  ;;  %2208 = vmatmul.f32.vlgmr.msra.gmra.mxu0 %v4773_v29  ;;  %2108 = vmatmul.f32.vlgmr.msra.gmra.mxu3 %v4976_v10 }
 0x3cf   :  { %2218 = vmatpush.msrb.mxu2 %v1835_v19  ;;  %2257 = vmatpush.msrb.mxu0 %v2000_v30  ;;  %v1805_v19 = vmax.f32 %v5637_v57, 0.0  ;;  %v5640_v30 = vld [vmem:[#allocation25_spill] sm:$0xff] }
 0x3d0   :  { %1626 = vmatmul.f32.gmra.mxu1 %v2642_v43  ;;  %v1790_v12 = vmax.f32 %v5640_v30, 0.0  ;;  %v1970_v43 = vmax.f32 %v4742_v53, 0.0 }
 0x3d1   :  { %2219 = vmatpush.msrb.mxu2 %v1830_v16  ;;  %2258 = vmatpush.msrb.mxu0 %v1995_v2  ;;  %v1800_v16 = vmax.f32 %v5638_v7, 0.0  ;;  %v5641_v2 = vld [vmem:[#allocation6_spill] sm:$0xff]  ;;  %v1950_v7 = vmax.f32 %v4678_v37, 0.0  ;;  %v2645_v37 = vld [vmem:[%s5320_s2 + $0x140] sm:$0xff] }
 0x3d2   :  { %v1786_v55 = vmax.f32 %v5641_v2, 0.0 }
 0x3d3   :  { %2220 = vmatpush.msrb.mxu2 %v1825_v47  ;;  %2259 = vmatpush.msrb.mxu0 %v1990_v50  ;;  %v1795_v47 = vmax.f32 %v5639_v61, 0.0  ;;  %v5642_v50 = vld [vmem:[#allocation7_spill] sm:$0xff] }
 0x3d4   :  { %v1781_v53 = vmax.f32 %v5642_v50, 0.0 }
 0x3d5   :  { %2221 = vmatpush.msrb.mxu2 %v1820_v18  ;;  %v4951_v8 = vpop.f32.mrf.mxu2  ;;  %v4954_v41 = vpop.f32.mrf.mxu1  ;;  %2260 = vmatpush.msrb.mxu0 %v1985_v25  ;;  %v5643_v25 = vld [vmem:[#allocation57_spill] sm:$0xff] }
 0x3d6   :  { %v4963_v62 = vpop.f32.mrf.mxu0  ;;  %v1776_v57 = vmax.f32 %v5643_v25, 0.0  ;;  %2148 = vmatmul.f32.vlgmr.msrb.gmra.mxu3 %v4664_v0 }
 0x3d7   :  { %2222 = vmatpush.msrb.mxu2 %v1815_v21  ;;  %2261 = vmatpush.msrb.mxu0 %v1980_v32  ;;  %v1965_v21 = vmax.f32 %v4728_v39, 0.0  ;;  %v5644_v32 = vld [vmem:[#allocation59_spill] sm:$0xff] }
 0x3d8   :  { %1629 = vmatmul.f32.gmra.mxu1 %v2643_v20  ;;  %v1771_v20 = vmax.f32 %v5644_v32, 0.0  ;;  %v2646_v32 = vld [vmem:[%s5320_s2 + $0x148] sm:$0xff] }
 0x3d9   :  { %2223 = vmatpush.msrb.mxu2 %v1810_v44  ;;  %2262 = vmatpush.msrb.mxu0 %v1975_v35  ;;  %v1960_v44 = vmax.f32 %v4711_v4, 0.0  ;;  %v5645_v4 = vld [vmem:[#allocation56_spill] sm:$0xff] }
 0x3da   :  { %v1766_v61 = vmax.f32 %v5645_v4, 0.0 }
 0x3db   :  { %2224 = vmatpush.msrb.mxu2 %v1805_v19  ;;  %2263 = vmatpush.msrb.mxu0 %v1970_v43  ;;  %v1955_v19 = vmax.f32 %v4695_v24, 0.0  ;;  %v5646_v24 = vld [vmem:[#allocation55_spill] sm:$0xff]  ;;  %v5647_v43 = vld [vmem:[#allocation54_spill] sm:$0xff] }
 0x3dc   :  { %v1761_v30 = vmax.f32 %v5646_v24, 0.0  ;;  %v1756_v2 = vmax.f32 %v5647_v43, 0.0  ;;  %v1906_v43 = vmax.f32 %v4818_v6, 0.0  ;;  %v5656_v6 = vld [vmem:[#allocation30_spill] sm:$0xff] }
 0x3dd   :  { %2225 = vmatpush.msrb.mxu2 %v1800_v16  ;;  %v4968_v3 = vpop.f32.mrf.mxu2  ;;  %v4970_v18 = vpop.f32.mrf.mxu1  ;;  %2264 = vmatpush.msrb.mxu0 %v1965_v21  ;;  %v5648_v21 = vld [vmem:[#allocation53_spill] sm:$0xff] }
 0x3de   :  { %v4987_v39 = vpop.f32.mrf.mxu0  ;;  %v1751_v50 = vmax.f32 %v5648_v21, 0.0  ;;  %v1901_v21 = vmax.f32 %v4802_v22, 0.0 }
 0x3df   :  { %2226 = vmatpush.msrb.mxu2 %v1795_v47  ;;  %2265 = vmatpush.msrb.mxu0 %v1960_v44  ;;  %v1946_v47 = vmax.f32 %v4945_v56, 0.0  ;;  %v5649_v44 = vld [vmem:[#allocation50_spill] sm:$0xff] }
 0x3e0   :  { %1632 = vmatmul.f32.gmra.mxu1 %v2644_v60  ;;  %v1931_v60 = vmax.f32 %v4898_v49, 0.0  ;;  %v1746_v25 = vmax.f32 %v5649_v44, 0.0  ;;  %v5651_v49 = vld [vmem:[#allocation45_spill] sm:$0xff]  ;;  %v1896_v44 = vmax.f32 %v4780_v14, 0.0 }
 0x3e1   :  { %2227 = vmatpush.msrb.mxu2 %v1790_v12  ;;  %2266 = vmatpush.msrb.mxu0 %v1955_v19  ;;  %v1941_v12 = vmax.f32 %v4927_v9, 0.0 }
 0x3e2   :  { %2228 = vmatmul.f32.vlgmr.msrb.gmra.mxu2 %v4664_v0 }
 0x3e3   :  { %2272 = vmatpush.msra.mxu2 %v1786_v55  ;;  %2267 = vmatpush.msrb.mxu0 %v1950_v7  ;;  %v1936_v55 = vmax.f32 %v4914_v34, 0.0  ;;  %v1926_v34 = vmax.f32 %v4885_v26, 0.0  ;;  %v1736_v7 = vmax.f32 %v5651_v49, 0.0  ;;  %v5652_v26 = vld [vmem:[#allocation43_spill] sm:$0xff] }
 0x3e4   :  { %2268 = vmatmul.f32.vlgmr.msrb.gmra.mxu0 %v4976_v10  ;;  %v2648_v49 = vld [vmem:[%s5320_s2 + $0x158] sm:$0xff] }
 0x3e5   :  { %2273 = vmatpush.msra.mxu2 %v1781_v53  ;;  %v4992_v16 = vpop.f32.mrf.mxu2  ;;  %v4994_v35 = vpop.f32.mrf.mxu1  ;;  %2312 = vmatpush.msra.mxu0 %v1946_v47  ;;  %v1731_v47 = vmax.f32 %v5652_v26, 0.0 }
 0x3e6   :  { %v5006_v56 = vpop.f32.mrf.mxu0 }
 0x3e7   :  { %2274 = vmatpush.msra.mxu2 %v1776_v57  ;;  %2313 = vmatpush.msra.mxu0 %v1941_v12  ;;  %v5650_v57 = vld [vmem:[#allocation48_spill] sm:$0xff]  ;;  %v5653_v12 = vld [vmem:[#allocation41_spill] sm:$0xff] }
 0x3e8   :  { %1635 = vmatmul.f32.gmra.mxu1 %v2645_v37  ;;  %v1741_v19 = vmax.f32 %v5650_v57, 0.0 }
 0x3e9   :  { %2275 = vmatpush.msra.mxu2 %v1771_v20  ;;  %2314 = vmatpush.msra.mxu0 %v1936_v55  ;;  %v1921_v20 = vmax.f32 %v4869_v59, 0.0  ;;  %v1726_v59 = vmax.f32 %v5653_v12, 0.0 }
 0x3eb   :  { %2276 = vmatpush.msra.mxu2 %v1766_v61  ;;  %2315 = vmatpush.msra.mxu0 %v1931_v60  ;;  %v1916_v61 = vmax.f32 %v4852_v51, 0.0  ;;  %v2647_v51 = vld [vmem:[%s5320_s2 + $0x150] sm:$0xff] }
 0x3ed   :  { %2277 = vmatpush.msra.mxu2 %v1761_v30  ;;  %v5010_v53 = vpop.f32.mrf.mxu2  ;;  %v5013_v9 = vpop.f32.mrf.mxu1  ;;  %2316 = vmatpush.msra.mxu0 %v1926_v34  ;;  %v1911_v30 = vmax.f32 %v4834_v42, 0.0  ;;  %v5655_v42 = vld [vmem:[#allocation34_spill] sm:$0xff]  ;;  %v1891_v34 = vmax.f32 %v4761_v40, 0.0  ;;  %v1881_v40 = vmax.f32 %v4735_v45, 0.0  ;;  %v1994_v45 = vmax.f32 %v4933_v13, 0.0 }
 0x3ee   :  { %v5023_v4 = vpop.f32.mrf.mxu0  ;;  %v2014_v14 = vmax.f32 %v5010_v53, 0.0  ;;  %v1871_v53 = vmax.f32 %v4701_v58, 0.0  ;;  %v1979_v13 = vmax.f32 %v4889_v52, 0.0  ;;  %v1959_v52 = vmax.f32 %v4823_v63, 0.0 }
 0x3ef   :  { %2278 = vmatpush.msra.mxu2 %v1756_v2  ;;  %2317 = vmatpush.msra.mxu0 %v1921_v20  ;;  %v5654_v2 = vld [vmem:[#allocation39_spill] sm:$0xff]  ;;  %v1886_v20 = vmax.f32 %v4748_v28, 0.0  ;;  %v1876_v28 = vmax.f32 %v4719_v31, 0.0  ;;  %v2649_v31 = vld [vmem:[%s5320_s2 + $0x160] sm:$0xff] }
 0x3f0   :  { %1638 = vmatmul.f32.gmra.mxu1 %v2646_v32  ;;  %v1721_v55 = vmax.f32 %v5654_v2, 0.0  ;;  %v2651_v2 = vld [vmem:[%s5320_s2 + $0x170] sm:$0xff] }
 0x3f1   :  { %2279 = vmatpush.msra.mxu2 %v1751_v50  ;;  %2318 = vmatpush.msra.mxu0 %v1916_v61  ;;  %v1716_v50 = vmax.f32 %v5655_v42, 0.0  ;;  %v5660_v42 = vld [vmem:[#allocation76_spill] sm:$0xff] }
 0x3f3   :  { %2280 = vmatpush.msra.mxu2 %v1746_v25  ;;  %2319 = vmatpush.msra.mxu0 %v1911_v30  ;;  %v1711_v25 = vmax.f32 %v5656_v6, 0.0  ;;  %v2650_v30 = vld [vmem:[%s5320_s2 + $0x168] sm:$0xff] }
 0x3f4   :  { %v5661_v6 = vld [vmem:[#allocation73_spill] sm:$0xff] }
 0x3f5   :  { %2281 = vmatpush.msra.mxu2 %v1741_v19  ;;  %v1075_v24 = vpop.f32.mrf.mxu2  ;;  %v5028_v37 = vpop.f32.mrf.mxu1  ;;  %2320 = vmatpush.msra.mxu0 %v1906_v43  ;;  %v5657_v43 = vld [vmem:[#allocation36_spill] sm:$0xff] }
 0x3f6   :  { %v5038_v60 = vpop.f32.mrf.mxu0  ;;  %v2019_v32 = vmax.f32 %v1075_v24, 0.0  ;;  %v1974_v24 = vmax.f32 %v4873_v33, 0.0  ;;  %v1954_v33 = vmax.f32 %v5657_v43, 0.0  ;;  %v2654_v43 = vld [vmem:[%s5320_s2 + $0x188] sm:$0xff] }
 0x3f7   :  { %2282 = vmatpush.msra.mxu2 %v1736_v7  ;;  %2321 = vmatpush.msra.mxu0 %v1901_v21  ;;  %v2009_v7 = vmax.f32 %v4992_v16, 0.0  ;;  %v5659_v21 = vld [vmem:[#allocation79_spill] sm:$0xff] }
 0x3f8   :  { %1641 = vmatmul.f32.gmra.mxu1 %v2647_v51 }
 0x3f9   :  { %2283 = vmatpush.msra.mxu2 %v1731_v47  ;;  %2322 = vmatpush.msra.mxu0 %v1896_v44  ;;  %v1999_v47 = vmax.f32 %v4951_v8, 0.0  ;;  %v1984_v8 = vmax.f32 %v4903_v38, 0.0  ;;  %v1964_v38 = vmax.f32 %v4839_v54, 0.0  ;;  %v1945_v54 = vmax.f32 %v5659_v21, 0.0 }
 0x3fa   :  { %v1817_v21 = vmax.f32 %v4936_v23, 0.0  ;;  %v2655_v23 = vld [vmem:[%s5320_s2 + $0x190] sm:$0xff] }
 0x3fb   :  { %2284 = vmatpush.msra.mxu2 %v1726_v59  ;;  %2323 = vmatpush.msra.mxu0 %v1891_v34  ;;  %v2652_v34 = vld [vmem:[%s5320_s2 + $0x178] sm:$0xff] }
 0x3fd   :  { %2285 = vmatpush.msra.mxu2 %v1721_v55  ;;  %v1078_v57 = vpop.f32.mrf.mxu2  ;;  %v5043_v19 = vpop.f32.mrf.mxu1  ;;  %2324 = vmatpush.msra.mxu0 %v1886_v20  ;;  %v5658_v55 = vld [vmem:[#allocation40_spill] sm:$0xff] }
 0x3fe   :  { %v2024_v22 = vmax.f32 %v1078_v57, 0.0  ;;  %v5053_v61 = vpop.f32.mrf.mxu0  ;;  %v5662_v57 = vld [vmem:[#allocation70_spill] sm:$0xff] }
 0x3ff   :  { %2286 = vmatpush.msra.mxu2 %v1716_v50  ;;  %2325 = vmatpush.msra.mxu0 %v1881_v40  ;;  %v1940_v50 = vmax.f32 %v5660_v42, 0.0  ;;  %v1812_v42 = vmax.f32 %v4920_v48, 0.0 }
 0x400   :  { %2172 = vmatpush.msra.mxu3 %v2024_v22  ;;  %1644 = vmatmul.f32.gmra.mxu1 %v2648_v49 }
 0x401   :  { %2287 = vmatpush.msra.mxu2 %v1711_v25  ;;  %2326 = vmatpush.msra.mxu0 %v1876_v28  ;;  %v1935_v25 = vmax.f32 %v5661_v6, 0.0  ;;  %v5673_v6 = vld [vmem:[#allocation5_spill] sm:$0xff] }
 0x402   :  { %2288 = vmatmul.f32.vlgmr.msra.gmra.mxu2 %v4773_v29  ;;  %2173 = vmatpush.msra.mxu3 %v2019_v32  ;;  %v2004_v29 = vmax.f32 %v4968_v3, 0.0  ;;  %v1989_v3 = vmax.f32 %v4918_v36, 0.0  ;;  %v1969_v36 = vmax.f32 %v4857_v5, 0.0  ;;  %v1949_v5 = vmax.f32 %v5658_v55, 0.0  ;;  %v5670_v55 = vld [vmem:[#allocation13_spill] sm:$0xff] }
 0x403   :  { %2327 = vmatpush.msra.mxu0 %v1871_v53  ;;  %v1930_v32 = vmax.f32 %v5662_v57, 0.0  ;;  %v5674_v57 = vld [vmem:[#allocation58_spill] sm:$0xff] }
 0x404   :  { %2174 = vmatpush.msra.mxu3 %v2014_v14  ;;  %2328 = vmatmul.f32.vlgmr.msra.gmra.mxu0 %v4795_v17  ;;  %v5663_v14 = vld [vmem:[#allocation67_spill] sm:$0xff] }
 0x405   :  { %v5058_v26 = vpop.f32.mrf.mxu1  ;;  %v1925_v49 = vmax.f32 %v5663_v14, 0.0 }
 0x406   :  { %2175 = vmatpush.msra.mxu3 %v2009_v7  ;;  %v5066_v58 = vpop.f32.mrf.mxu0  ;;  %v5664_v7 = vld [vmem:[#allocation64_spill] sm:$0xff] }
 0x407   :  { %v1920_v28 = vmax.f32 %v5664_v7, 0.0  ;;  %v5676_v7 = vld [vmem:[#allocation80_spill] sm:$0xff] }
 0x408   :  { %2176 = vmatpush.msra.mxu3 %v2004_v29  ;;  %1647 = vmatmul.f32.gmra.mxu1 %v2649_v31  ;;  %v1852_v29 = vmax.f32 %v5058_v26, 0.0  ;;  %v1847_v31 = vmax.f32 %v5043_v19, 0.0 }
 0x40a   :  { %2177 = vmatpush.msra.mxu3 %v1999_v47  ;;  %v5665_v47 = vld [vmem:[#allocation62_spill] sm:$0xff] }
 0x40c   :  { %2178 = vmatpush.msra.mxu3 %v1994_v45  ;;  %v1915_v45 = vmax.f32 %v5665_v47, 0.0 }
 0x40d   :  { %v1603_v16 = vpop.f32.mrf.mxu1 }
 0x40e   :  { %2179 = vmatpush.msra.mxu3 %v1989_v3  ;;  %v5076_v12 = vpop.f32.mrf.mxu0  ;;  %v1857_v40 = vmax.f32 %v1603_v16, 0.0  ;;  %v2653_v3 = vld [vmem:[%s5320_s2 + $0x180] sm:$0xff] }
 0x410   :  { %2180 = vmatpush.msra.mxu3 %v1984_v8  ;;  %1650 = vmatmul.f32.gmra.mxu1 %v2650_v30  ;;  %v5666_v8 = vld [vmem:[#allocation60_spill] sm:$0xff]  ;;  %v5667_v30 = vld [vmem:[#allocation37_spill] sm:$0xff] }
 0x411   :  { %v1910_v16 = vmax.f32 %v5666_v8, 0.0  ;;  %v1905_v19 = vmax.f32 %v5667_v30, 0.0  ;;  %v2657_v30 = vld [vmem:[%s5320_s2 + $0x1a0] sm:$0xff] }
 0x412   :  { %2181 = vmatpush.msra.mxu3 %v1979_v13  ;;  %v1842_v13 = vmax.f32 %v5028_v37, 0.0  ;;  %v1827_v37 = vmax.f32 %v4970_v18, 0.0  ;;  %v5671_v18 = vld [vmem:[#allocation52_spill] sm:$0xff] }
 0x414   :  { %2182 = vmatpush.msra.mxu3 %v1974_v24  ;;  %v1837_v24 = vmax.f32 %v5013_v9, 0.0  ;;  %v5669_v9 = vld [vmem:[#allocation12_spill] sm:$0xff] }
 0x415   :  { %v1606_v59 = vpop.f32.mrf.mxu1 }
 0x416   :  { %2183 = vmatpush.msra.mxu3 %v1969_v36  ;;  %v5085_v51 = vpop.f32.mrf.mxu0  ;;  %v1862_v22 = vmax.f32 %v1606_v59, 0.0  ;;  %v1832_v36 = vmax.f32 %v4994_v35, 0.0  ;;  %v5668_v59 = vld [vmem:[#allocation33_spill] sm:$0xff] }
 0x418   :  { %2184 = vmatpush.msra.mxu3 %v1964_v38  ;;  %1653 = vmatmul.f32.gmra.mxu1 %v2651_v2  ;;  %v1822_v2 = vmax.f32 %v4954_v41, 0.0 }
 0x41a   :  { %2185 = vmatpush.msra.mxu3 %v1959_v52  ;;  %v1900_v52 = vmax.f32 %v5668_v59, 0.0  ;;  %v5683_v59 = vld [vmem:[#allocation61_spill] sm:$0xff] }
 0x41c   :  { %2186 = vmatpush.msra.mxu3 %v1954_v33  ;;  %v1895_v33 = vmax.f32 %v5669_v9, 0.0 }
 0x41d   :  { %v1609_v63 = vpop.f32.mrf.mxu1 }
 0x41e   :  { %2187 = vmatpush.msra.mxu3 %v1949_v5  ;;  %v1867_v44 = vmax.f32 %v1609_v63, 0.0  ;;  %v5095_v20 = vpop.f32.mrf.mxu0  ;;  %v1890_v5 = vmax.f32 %v5670_v55, 0.0  ;;  %v5672_v63 = vld [vmem:[#allocation47_spill] sm:$0xff]  ;;  %v2658_v55 = vld [vmem:[%s5320_s2 + $0x1a8] sm:$0xff] }
 0x41f   :  { %2188 = vmatmul.f32.vlgmr.msra.gmra.mxu3 %v4976_v10  ;;  %v1880_v41 = vmax.f32 %v5672_v63, 0.0 }
 0x420   :  { %2232 = vmatpush.msrb.mxu3 %v1945_v54  ;;  %1656 = vmatmul.f32.gmra.mxu1 %v2652_v34  ;;  %v1885_v54 = vmax.f32 %v5671_v18, 0.0  ;;  %v1802_v34 = vmax.f32 %v4891_v15, 0.0  ;;  %v1861_v15 = vmax.f32 %v5676_v7, 0.0 }
 0x421   :  { %2372 = vmatpush.msrb.mxu0 %v1867_v44  ;;  %v1807_v44 = vmax.f32 %v4905_v27, 0.0  ;;  %v5675_v27 = vld [vmem:[#allocation82_spill] sm:$0xff] }
 0x422   :  { %2233 = vmatpush.msrb.mxu3 %v1940_v50  ;;  %v1866_v14 = vmax.f32 %v5675_v27, 0.0  ;;  %v5690_v27 = vld [vmem:[#allocation10_spill] sm:$0xff] }
 0x423   :  { %2373 = vmatpush.msrb.mxu0 %v1862_v22  ;;  %v1797_v22 = vmax.f32 %v4875_v1, 0.0  ;;  %v2656_v1 = vld [vmem:[%s5320_s2 + $0x198] sm:$0xff] }
 0x424   :  { %2234 = vmatpush.msrb.mxu3 %v1935_v25  ;;  %v1875_v25 = vmax.f32 %v5673_v6, 0.0 }
 0x425   :  { %2374 = vmatpush.msrb.mxu0 %v1857_v40  ;;  %v5100_v53 = vpop.f32.mrf.mxu1 }
 0x426   :  { %2235 = vmatpush.msrb.mxu3 %v1930_v32  ;;  %v5109_v26 = vpop.f32.mrf.mxu0  ;;  %v1870_v32 = vmax.f32 %v5674_v57, 0.0 }
 0x427   :  { %2375 = vmatpush.msrb.mxu0 %v1852_v29  ;;  %v2001_v7 = vmax.f32 %v5109_v26, 0.0  ;;  %v1991_v26 = vmax.f32 %v5085_v51, 0.0 }
 0x428   :  { %2236 = vmatpush.msrb.mxu3 %v1925_v49  ;;  %1659 = vmatmul.f32.gmra.mxu1 %v2653_v3  ;;  %v1792_v49 = vmax.f32 %v4859_v11, 0.0  ;;  %v5678_v11 = vld [vmem:[#allocation74_spill] sm:$0xff] }
 0x429   :  { %2376 = vmatpush.msrb.mxu0 %v1847_v31  ;;  %v1851_v47 = vmax.f32 %v5678_v11, 0.0  ;;  %v5679_v31 = vld [vmem:[#allocation71_spill] sm:$0xff]  ;;  %v1996_v11 = vmax.f32 %v5095_v20, 0.0  ;;  %v1986_v20 = vmax.f32 %v5076_v12, 0.0  ;;  %v1971_v12 = vmax.f32 %v5038_v60, 0.0 }
 0x42a   :  { %2237 = vmatpush.msrb.mxu3 %v1920_v28  ;;  %v5677_v28 = vld [vmem:[#allocation77_spill] sm:$0xff]  ;;  %v1846_v3 = vmax.f32 %v5679_v31, 0.0 }
 0x42b   :  { %2377 = vmatpush.msrb.mxu0 %v1842_v13  ;;  %v1856_v29 = vmax.f32 %v5677_v28, 0.0  ;;  %v5681_v13 = vld [vmem:[#allocation65_spill] sm:$0xff]  ;;  %v5691_v28 = vld [vmem:[#allocation28_spill] sm:$0xff] }
 0x42c   :  { %2238 = vmatpush.msrb.mxu3 %v1915_v45 }
 0x42d   :  { %2378 = vmatpush.msrb.mxu0 %v1837_v24  ;;  %v5114_v38 = vpop.f32.mrf.mxu1  ;;  %v1836_v24 = vmax.f32 %v5681_v13, 0.0  ;;  %v5695_v13 = vld [vmem:[#allocation87_spill] sm:$0xff] }
 0x42e   :  { %2239 = vmatpush.msrb.mxu3 %v1910_v16  ;;  %v5123_v35 = vpop.f32.mrf.mxu0  ;;  %v1762_v51 = vmax.f32 %v5695_v13, 0.0 }
 0x42f   :  { %2379 = vmatpush.msrb.mxu0 %v1832_v36 }
 0x430   :  { %2240 = vmatpush.msrb.mxu3 %v1905_v19  ;;  %1662 = vmatmul.f32.gmra.mxu1 %v2654_v43  ;;  %v5684_v43 = vld [vmem:[#allocation15_spill] sm:$0xff] }
 0x431   :  { %2380 = vmatpush.msrb.mxu0 %v1827_v37  ;;  %v1821_v9 = vmax.f32 %v5684_v43, 0.0  ;;  %v5698_v43 = vld [vmem:[#allocation84_spill] sm:$0xff] }
 0x432   :  { %2241 = vmatpush.msrb.mxu3 %v1900_v52  ;;  %v1826_v52 = vmax.f32 %v5683_v59, 0.0 }
 0x433   :  { %2381 = vmatpush.msrb.mxu0 %v1822_v2 }
 0x434   :  { %2242 = vmatpush.msrb.mxu3 %v1895_v33  ;;  %v5685_v33 = vld [vmem:[#allocation14_spill] sm:$0xff] }
 0x435   :  { %2382 = vmatpush.msrb.mxu0 %v1817_v21  ;;  %v5129_v50 = vpop.f32.mrf.mxu1  ;;  %v1816_v2 = vmax.f32 %v5685_v33, 0.0  ;;  %v5699_v33 = vld [vmem:[#allocation83_spill] sm:$0xff] }
 0x436   :  { %2243 = vmatpush.msrb.mxu3 %v1890_v5  ;;  %v5138_v48 = vpop.f32.mrf.mxu0  ;;  %v5686_v5 = vld [vmem:[#allocation11_spill] sm:$0xff]  ;;  %v1742_v60 = vmax.f32 %v5699_v33, 0.0 }
 0x437   :  { %2383 = vmatpush.msrb.mxu0 %v1812_v42  ;;  %v1811_v21 = vmax.f32 %v5686_v5, 0.0  ;;  %v5687_v42 = vld [vmem:[#allocation29_spill] sm:$0xff] }
 0x438   :  { %2244 = vmatpush.msrb.mxu3 %v1885_v54  ;;  %1665 = vmatmul.f32.gmra.mxu1 %v2655_v23  ;;  %v1806_v63 = vmax.f32 %v5687_v42, 0.0  ;;  %v5688_v23 = vld [vmem:[#allocation8_spill] sm:$0xff]  ;;  %v5700_v5 = vld [vmem:[#allocation81_spill] sm:$0xff]  ;;  %v5702_v42 = vld [vmem:[#allocation75_spill] sm:$0xff] }
 0x439   :  { %2384 = vmatpush.msrb.mxu0 %v1807_v44  ;;  %v1801_v6 = vmax.f32 %v5688_v23, 0.0 }
 0x43a   :  { %2245 = vmatpush.msrb.mxu3 %v1880_v41 }
 0x43b   :  { %2385 = vmatpush.msrb.mxu0 %v1802_v34  ;;  %v5689_v34 = vld [vmem:[#allocation9_spill] sm:$0xff] }
 0x43c   :  { %2246 = vmatpush.msrb.mxu3 %v1875_v25  ;;  %v1796_v57 = vmax.f32 %v5689_v34, 0.0  ;;  %v5705_v34 = vld [vmem:[#allocation66_spill] sm:$0xff] }
 0x43d   :  { %2386 = vmatpush.msrb.mxu0 %v1797_v22  ;;  %v5144_v40 = vpop.f32.mrf.mxu1  ;;  %v2011_v22 = vmax.f32 %v5138_v48, 0.0  ;;  %v2660_v48 = vld [vmem:[%s5321_s3 + $0x8] sm:$0xff] }
 0x43e   :  { %2247 = vmatpush.msrb.mxu3 %v1870_v32  ;;  %v1490_v45 = vpop.f32.mrf.mxu0  ;;  %v2659_v32 = vld [vmem:[%s5320_s2 + $0x1b0] sm:$0xff] }
 0x43f   :  { %2248 = vmatmul.f32.vlgmr.msrb.gmra.mxu3 %v4795_v17  ;;  %2387 = vmatpush.msrb.mxu0 %v1792_v49  ;;  %v5680_v17 = vld [vmem:[#allocation68_spill] sm:$0xff]  ;;  %v2016_v25 = vmax.f32 %v1490_v45, 0.0  ;;  %v1787_v49 = vmax.f32 %v4841_v46, 0.0  ;;  %v5693_v45 = vld [vmem:[#allocation89_spill] sm:$0xff] }
 0x440   :  { %2292 = vmatpush.msra.mxu3 %v1866_v14  ;;  %1668 = vmatmul.f32.gmra.mxu1 %v2656_v1  ;;  %v1841_v16 = vmax.f32 %v5680_v17, 0.0  ;;  %v1791_v14 = vmax.f32 %v5690_v27, 0.0  ;;  %v5692_v46 = vld [vmem:[#allocation32_spill] sm:$0xff]  ;;  %v1772_v31 = vmax.f32 %v5693_v45, 0.0 }
 0x441   :  { %2388 = vmatmul.f32.vlgmr.msrb.gmra.mxu0 %v4664_v0  ;;  %v5682_v0 = vld [vmem:[#allocation63_spill] sm:$0xff] }
 0x442   :  { %2293 = vmatpush.msra.mxu3 %v1861_v15  ;;  %v1831_v19 = vmax.f32 %v5682_v0, 0.0  ;;  %v2006_v15 = vmax.f32 %v5123_v35, 0.0  ;;  %v2661_v35 = vld [vmem:[%s5320_s2 + $0x1b8] sm:$0xff]  ;;  %v5696_v0 = vld [vmem:[#allocation86_spill] sm:$0xff] }
 0x444   :  { %2294 = vmatpush.msra.mxu3 %v1856_v29  ;;  %v1782_v29 = vmax.f32 %v5691_v28, 0.0  ;;  %v2669_v28 = vld [vmem:[%s5320_s2 + $0x1f0] sm:$0xff] }
 0x445   :  { %v5155_v8 = vpop.f32.mrf.mxu1 }
 0x446   :  { %2295 = vmatpush.msra.mxu3 %v1851_v47  ;;  %v1493_v36 = vpop.f32.mrf.mxu0  ;;  %v1777_v47 = vmax.f32 %v5692_v46, 0.0  ;;  %v2670_v46 = vld [vmem:[%s5320_s2 + $0x1f8] sm:$0xff] }
 0x447   :  { %v2021_v44 = vmax.f32 %v1493_v36, 0.0  ;;  %v2662_v36 = vld [vmem:[%s5320_s2 + $0x1c0] sm:$0xff] }
 0x448   :  { %2296 = vmatpush.msra.mxu3 %v1846_v3  ;;  %1671 = vmatmul.f32.gmra.mxu1 %v2657_v30  ;;  %v5694_v3 = vld [vmem:[#allocation88_spill] sm:$0xff]  ;;  %v1976_v30 = vmax.f32 %v5053_v61, 0.0  ;;  %v1747_v61 = vmax.f32 %v5698_v43, 0.0 }
 0x449   :  { %v1767_v17 = vmax.f32 %v5694_v3, 0.0 }
 0x44a   :  { %2297 = vmatpush.msra.mxu3 %v1841_v16  ;;  %v1981_v16 = vmax.f32 %v5066_v58, 0.0  ;;  %v5697_v58 = vld [vmem:[#allocation85_spill] sm:$0xff] }
 0x44b   :  { %v1752_v59 = vmax.f32 %v5697_v58, 0.0 }
 0x44c   :  { %2298 = vmatpush.msra.mxu3 %v1836_v24 }
 0x44d   :  { %v5164_v37 = vpop.f32.mrf.mxu1 }
 0x44e   :  { %2299 = vmatpush.msra.mxu3 %v1831_v19  ;;  %v1496_v18 = vpop.f32.mrf.mxu0  ;;  %v1757_v19 = vmax.f32 %v5696_v0, 0.0 }
 0x44f   :  { %v2026_v54 = vmax.f32 %v1496_v18, 0.0  ;;  %v1951_v18 = vmax.f32 %v4963_v62, 0.0  ;;  %v5704_v62 = vld [vmem:[#allocation69_spill] sm:$0xff] }
 0x450   :  { %2300 = vmatpush.msra.mxu3 %v1826_v52  ;;  %1674 = vmatmul.f32.gmra.mxu1 %v2658_v55  ;;  %v1966_v52 = vmax.f32 %v5023_v4, 0.0  ;;  %v1956_v55 = vmax.f32 %v4987_v39, 0.0  ;;  %v2663_v4 = vld [vmem:[%s5320_s2 + $0x1c8] sm:$0xff]  ;;  %v5703_v39 = vld [vmem:[#allocation72_spill] sm:$0xff] }
 0x451   :  { %2332 = vmatpush.msrb.mxu2 %v2026_v54 }
 0x452   :  { %2301 = vmatpush.msra.mxu3 %v1821_v9  ;;  %v1961_v9 = vmax.f32 %v5006_v56, 0.0  ;;  %v5701_v56 = vld [vmem:[#allocation78_spill] sm:$0xff] }
 0x453   :  { %2333 = vmatpush.msrb.mxu2 %v2021_v44  ;;  %v1732_v54 = vmax.f32 %v5701_v56, 0.0  ;;  %v1722_v44 = vmax.f32 %v5703_v39, 0.0 }
 0x454   :  { %2302 = vmatpush.msra.mxu3 %v1816_v2 }
 0x455   :  { %v5173_v41 = vpop.f32.mrf.mxu1  ;;  %2334 = vmatpush.msrb.mxu2 %v2016_v25  ;;  %v2664_v25 = vld [vmem:[%s5320_s2 + $0x1d0] sm:$0xff] }
 0x456   :  { %2303 = vmatpush.msra.mxu3 %v1811_v21  ;;  %v1737_v21 = vmax.f32 %v5700_v5, 0.0  ;;  %v1902_v13 = vmax.f32 %v5173_v41, 0.0  ;;  %v1872_v41 = vmax.f32 %v5100_v53, 0.0 }
 0x457   :  { %2335 = vmatpush.msrb.mxu2 %v2011_v22 }
 0x458   :  { %2304 = vmatpush.msra.mxu3 %v1806_v63  ;;  %1677 = vmatmul.f32.gmra.mxu1 %v2659_v32  ;;  %v1727_v63 = vmax.f32 %v5702_v42, 0.0  ;;  %v2665_v32 = vld [vmem:[%s5321_s3] sm:$0xff] }
 0x459   :  { %2336 = vmatpush.msrb.mxu2 %v2006_v15 }
 0x45a   :  { %2305 = vmatpush.msra.mxu3 %v1801_v6  ;;  %v1717_v6 = vmax.f32 %v5704_v62, 0.0 }
 0x45b   :  { %2337 = vmatpush.msrb.mxu2 %v2001_v7  ;;  %v2668_v7 = vld [vmem:[%s5320_s2 + $0x1e8] sm:$0xff] }
 0x45c   :  { %2306 = vmatpush.msra.mxu3 %v1796_v57  ;;  %v1712_v57 = vmax.f32 %v5705_v34, 0.0 }
 0x45d   :  { %v5186_v1 = vpop.f32.mrf.mxu1  ;;  %2338 = vmatpush.msrb.mxu2 %v1996_v11 }
 0x45e   :  { %2307 = vmatpush.msra.mxu3 %v1791_v14  ;;  %v2667_v14 = vld [vmem:[%s5320_s2 + $0x1e0] sm:$0xff] }
 0x45f   :  { %2308 = vmatmul.f32.vlgmr.msra.gmra.mxu3 %v2660_v48  ;;  %2339 = vmatpush.msrb.mxu2 %v1991_v26 }
 0x460   :  { %2352 = vmatpush.msrb.mxu3 %v1787_v49  ;;  %1680 = vmatmul.f32.gmra.mxu1 %v2661_v35 }
 0x461   :  { %2340 = vmatpush.msrb.mxu2 %v1986_v20 }
 0x462   :  { %2353 = vmatpush.msrb.mxu3 %v1782_v29 }
 0x463   :  { %2341 = vmatpush.msrb.mxu2 %v1981_v16  ;;  %v1907_v16 = vmax.f32 %v5186_v1, 0.0  ;;  %v1877_v1 = vmax.f32 %v5114_v38, 0.0 }
 0x464   :  { %2354 = vmatpush.msrb.mxu3 %v1777_v47 }
 0x465   :  { %v5202_v24 = vpop.f32.mrf.mxu1  ;;  %2342 = vmatpush.msrb.mxu2 %v1976_v30  ;;  %v1892_v30 = vmax.f32 %v5155_v8, 0.0  ;;  %v2671_v8 = vld [vmem:[%s5321_s3 + $0x10] sm:$0xff] }
 0x466   :  { %2355 = vmatpush.msrb.mxu3 %v1772_v31  ;;  %v1912_v3 = vmax.f32 %v5202_v24, 0.0  ;;  %v1882_v24 = vmax.f32 %v5129_v50, 0.0  ;;  %v2049_v50 = vpop.f32.mrf.mxu2 }
 0x467   :  { %2343 = vmatpush.msrb.mxu2 %v1971_v12 }
 0x468   :  { %2356 = vmatpush.msrb.mxu3 %v1767_v17  ;;  %1683 = vmatmul.f32.gmra.mxu1 %v2662_v36  ;;  %v2069_v36 = vpop.f32.mrf.mxu3 }
 0x469   :  { %2344 = vmatpush.msrb.mxu2 %v1966_v52  ;;  %v2070_v38 = vadd.f32 %v2069_v36, %v2049_v50 }
 0x46a   :  { %2357 = vmatpush.msrb.mxu3 %v1762_v51  ;;  %v1897_v51 = vmax.f32 %v5164_v37, 0.0 }
 0x46b   :  { %2345 = vmatpush.msrb.mxu2 %v1961_v9 }
 0x46c   :  { %2358 = vmatpush.msrb.mxu3 %v1757_v19  ;;  %v1887_v19 = vmax.f32 %v5144_v40, 0.0 }
 0x46d   :  { %v1639_v2 = vpop.f32.mrf.mxu1  ;;  %2346 = vmatpush.msrb.mxu2 %v1956_v55 }
 0x46e   :  { %2359 = vmatpush.msrb.mxu3 %v1752_v59  ;;  %v1917_v20 = vmax.f32 %v1639_v2, 0.0  ;;  %v2089_v59 = vpop.f32.mrf.mxu2 }
 0x46f   :  { %2347 = vmatpush.msrb.mxu2 %v1951_v18  ;;  %v2090_v53 = vadd.f32 %v2089_v59, %v2070_v38 }
 0x470   :  { %2360 = vmatpush.msrb.mxu3 %v1747_v61  ;;  %1686 = vmatmul.f32.gmra.mxu1 %v2663_v4  ;;  %v2109_v52 = vpop.f32.mrf.mxu3 }
 0x471   :  { %2348 = vmatmul.f32.vlgmr.msrb.gmra.mxu2 %v4976_v10  ;;  %v2666_v10 = vld [vmem:[%s5320_s2 + $0x1d8] sm:$0xff]  ;;  %v2110_v61 = vadd.f32 %v2109_v52, %v2090_v53 }
 0x472   :  { %2361 = vmatpush.msrb.mxu3 %v1742_v60 }
 0x473   :  { %v2439_v9 = vmin.f32 %v2110_v61, 20.0  ;;  %vm2434_vm1 = vcmp.gt.f32.partialorder %v2110_v61, 20.0 }
 0x474   :  { %2362 = vmatpush.msrb.mxu3 %v1737_v21 }
 0x475   :  { %v1642_v23 = vpop.f32.mrf.mxu1  ;;  %v2444_v33 = vmul.f32 1.442695, %v2439_v9 }
 0x476   :  { %2363 = vmatpush.msrb.mxu3 %v1732_v54  ;;  %v1922_v31 = vmax.f32 %v1642_v23, 0.0 }
 0x477   :  { %2569 = vpow2.f32 %v2444_v33 }
 0x478   :  { %2364 = vmatpush.msrb.mxu3 %v1727_v63  ;;  %1689 = vmatmul.f32.gmra.mxu1 %v2664_v25  ;;  %v2432_v63 = vlaneseq }
 0x47a   :  { %2365 = vmatpush.msrb.mxu3 %v1722_v44  ;;  %v5278_v23 = vshrl.u32 %v2432_v63, 7 }
 0x47c   :  { %2366 = vmatpush.msrb.mxu3 %v1717_v6  ;;  %vm2509_vm2 = vcmp.eq.s32.totalorder %v5278_v23, 0 }
 0x47d   :  { %v1645_v22 = vpop.f32.mrf.mxu1  ;;  %v2570_v2 = vpop.eup %2569 }
 0x47e   :  { %2367 = vmatpush.msrb.mxu3 %v1712_v57  ;;  %v1927_v45 = vmax.f32 %v1645_v22, 0.0  ;;  %v2454_v55 = vadd.f32 1.0, %v2570_v2  ;;  %v2457_v21 = vmul.f32 -0.5, %v2570_v2  ;;  %v2460_v56 = vand.u32 2147483647, %v2570_v2  ;;  %v2129_v22 = vpop.f32.mrf.mxu2 }
 0x47f   :  { %2368 = vmatmul.f32.vlgmr.msrb.gmra.mxu3 %v2665_v32 }
 0x480   :  { %1692 = vmatmul.f32.gmra.mxu1 %v2666_v10  ;;  %2571 = vlog2.f32 %v2454_v55  ;;  %v2458_v18 = vadd.f32 1.0, %v2457_v21  ;;  %vm2461_vm0 = vcmp.lt.f32.partialorder %v2460_v56, 0.0004427343  ;;  %v2149_v10 = vpop.f32.mrf.mxu3 }
 0x482   :  { %v2459_v42 = vmul.f32 %v2570_v2, %v2458_v18 }
 0x485   :  { %v1648_v27 = vpop.f32.mrf.mxu1 }
 0x486   :  { %v1932_v26 = vmax.f32 %v1648_v27, 0.0  ;;  %v2572_v4 = vpop.eup %2571 }
 0x487   :  { %v2456_v54 = vmul.f32 0.6931472, %v2572_v4 }
 0x488   :  { %1695 = vmatmul.f32.gmra.mxu1 %v2667_v14  ;;  %v2150_v14 = vadd.f32 %v2149_v10, %v2129_v22 }
 0x489   :  { %v2462_v44 = vsel %vm2461_vm0, %v2459_v42, %v2456_v54 }
 0x48a   :  { %v2499_v62 = vsel %vm2434_vm1, %v2110_v61, %v2462_v44 }
 0x48b   :  { %v2504_v6 = vadd.f32 1.0, %v2499_v62 }
 0x48d   :  { %v1651_v49 = vpop.f32.mrf.mxu1  ;;  %v2510_v25 = vsel %vm2509_vm2, %v2110_v61, %v2504_v6 }
 0x48e   :  { %v1937_v47 = vmax.f32 %v1651_v49, 0.0  ;;  %2515 = vst [vmem:[#allocation2] sm:$0xff] %v2510_v25  ;;  %v2169_v49 = vpop.f32.mrf.mxu2 }
 0x490   :  { %1698 = vmatmul.f32.gmra.mxu1 %v2668_v7  ;;  %v2170_v7 = vadd.f32 %v2169_v49, %v2150_v14 }
 0x495   :  { %v1654_v15 = vpop.f32.mrf.mxu1 }
 0x496   :  { %v1942_v48 = vmax.f32 %v1654_v15, 0.0 }
 0x498   :  { %1701 = vmatmul.f32.gmra.mxu1 %v2669_v28 }
 0x49d   :  { %v1657_v29 = vpop.f32.mrf.mxu1 }
 0x49e   :  { %v1947_v11 = vmax.f32 %v1657_v29, 0.0 }
 0x4a0   :  { %1704 = vmatmul.f32.gmra.mxu1 %v2670_v46  ;;  %2392 = vmatpush.msra.mxu2 %v1947_v11 }
 0x4a2   :  { %2393 = vmatpush.msra.mxu2 %v1942_v48  ;;  %v2189_v15 = vpop.f32.mrf.mxu3 }
 0x4a3   :  { %v5283_v28 = vadd.f32 %v2189_v15, %v2170_v7 }
 0x4a4   :  { %2394 = vmatpush.msra.mxu2 %v1937_v47  ;;  %v2209_v47 = vpop.f32.mrf.mxu0 }
 0x4a5   :  { %v5248_v35 = vpop.f32.mrf.mxu1  ;;  %v2440_v11 = vmin.f32 %v5283_v28, 20.0  ;;  %vm2435_vm4 = vcmp.gt.f32.partialorder %v5283_v28, 20.0 }
 0x4a6   :  { %2395 = vmatpush.msra.mxu2 %v1932_v26 }
 0x4a7   :  { %v2446_v46 = vmul.f32 1.442695, %v2440_v11 }
 0x4a8   :  { %2396 = vmatpush.msra.mxu2 %v1927_v45  ;;  %v2229_v45 = vpop.f32.mrf.mxu2 }
 0x4a9   :  { %2573 = vpow2.f32 %v2446_v46 }
 0x4aa   :  { %2397 = vmatpush.msra.mxu2 %v1922_v31  ;;  %v2230_v31 = vadd.f32 %v2229_v45, %v2209_v47 }
 0x4ac   :  { %2398 = vmatpush.msra.mxu2 %v1917_v20 }
 0x4ad   :  { %v5251_v17 = vpop.f32.mrf.mxu1 }
 0x4ae   :  { %2399 = vmatpush.msra.mxu2 %v1912_v3  ;;  %v1957_v22 = vmax.f32 %v5251_v17, 0.0 }
 0x4b0   :  { %2400 = vmatpush.msra.mxu2 %v1907_v16  ;;  %v2289_v50 = vpop.f32.mrf.mxu2 }
 0x4b2   :  { %2401 = vmatpush.msra.mxu2 %v1902_v13 }
 0x4b4   :  { %2402 = vmatpush.msra.mxu2 %v1897_v51 }
 0x4b5   :  { %v5257_v0 = vpop.f32.mrf.mxu1 }
 0x4b6   :  { %2403 = vmatpush.msra.mxu2 %v1892_v30  ;;  %v2574_v30 = vpop.eup %2573 }
 0x4b7   :  { %v2469_v61 = vand.u32 2147483647, %v2574_v30 }
 0x4b8   :  { %2404 = vmatpush.msra.mxu2 %v1887_v19  ;;  %v2269_v19 = vpop.f32.mrf.mxu0 }
 0x4b9   :  { %vm2470_vm3 = vcmp.lt.f32.partialorder %v2469_v61, 0.0004427343 }
 0x4ba   :  { %2405 = vmatpush.msra.mxu2 %v1882_v24 }
 0x4bc   :  { %2406 = vmatpush.msra.mxu2 %v1877_v1  ;;  %v2463_v1 = vadd.f32 1.0, %v2574_v30 }
 0x4bd   :  { %v5263_v12 = vpop.f32.mrf.mxu1 }
 0x4be   :  { %2407 = vmatpush.msra.mxu2 %v1872_v41  ;;  %v2466_v41 = vmul.f32 -0.5, %v2574_v30  ;;  %2575 = vlog2.f32 %v2463_v1  ;;  %v1967_v6 = vmax.f32 %v5263_v12, 0.0  ;;  %v1952_v12 = vmax.f32 %v5248_v35, 0.0 }
 0x4bf   :  { %2408 = vmatmul.f32.vlgmr.msra.gmra.mxu2 %v2671_v8 }
 0x4c0   :  { %v2467_v59 = vadd.f32 1.0, %v2466_v41  ;;  %v2329_v21 = vpop.f32.mrf.mxu0 }
 0x4c2   :  { %v2249_v3 = vpop.f32.mrf.mxu3  ;;  %v2468_v55 = vmul.f32 %v2574_v30, %v2467_v59 }
 0x4c3   :  { %v2250_v13 = vadd.f32 %v2249_v3, %v2230_v31 }
 0x4c4   :  { %v2576_v18 = vpop.eup %2575 }
 0x4c5   :  { %v5268_v37 = vpop.f32.mrf.mxu1  ;;  %v5286_v8 = vadd.f32 %v2269_v19, %v2250_v13 }
 0x4c7   :  { %v2441_v53 = vmin.f32 %v5286_v8, 20.0  ;;  %vm2436_vm6 = vcmp.gt.f32.partialorder %v5286_v8, 20.0 }
 0x4c9   :  { %v2448_v33 = vmul.f32 1.442695, %v2441_v53 }
 0x4cb   :  { %2577 = vpow2.f32 %v2448_v33 }
 0x4cd   :  { %v5270_v40 = vpop.f32.mrf.mxu1 }
 0x4ce   :  { %v1977_v54 = vmax.f32 %v5270_v40, 0.0 }
 0x4d1   :  { %v2578_v62 = vpop.eup %2577 }
 0x4d2   :  { %v2472_v25 = vadd.f32 1.0, %v2578_v62  ;;  %v2478_v10 = vand.u32 2147483647, %v2578_v62 }
 0x4d4   :  { %2579 = vlog2.f32 %v2472_v25  ;;  %vm2479_vm5 = vcmp.lt.f32.partialorder %v2478_v10, 0.0004427343 }
 0x4d5   :  { %v5272_v58 = vpop.f32.mrf.mxu1 }
 0x4da   :  { %v2580_v14 = vpop.eup %2579 }
 0x4db   :  { %v2474_v7 = vmul.f32 0.6931472, %v2580_v14 }
 0x4dd   :  { %v5274_v43 = vpop.f32.mrf.mxu1 }
 0x4de   :  { %v1987_v2 = vmax.f32 %v5274_v43, 0.0  ;;  %v1972_v43 = vmax.f32 %v5268_v37, 0.0 }
 0x4e2   :  { %v2309_v38 = vpop.f32.mrf.mxu3 }
 0x4e3   :  { %v2310_v9 = vadd.f32 %v2309_v38, %v2289_v50 }
 0x4e5   :  { %v5276_v60 = vpop.f32.mrf.mxu1  ;;  %v2330_v4 = vadd.f32 %v2329_v21, %v2310_v9 }
 0x4e6   :  { %v1992_v52 = vmax.f32 %v5276_v60, 0.0  ;;  %v2465_v60 = vmul.f32 0.6931472, %v2576_v18 }
 0x4e8   :  { %v2471_v63 = vsel %vm2470_vm3, %v2468_v55, %v2465_v60 }
 0x4ed   :  { %v1687_v5 = vpop.f32.mrf.mxu1 }
 0x4ee   :  { %v1997_v36 = vmax.f32 %v1687_v5, 0.0  ;;  %v1982_v5 = vmax.f32 %v5272_v58, 0.0 }
 0x4f4   :  { %v2349_v56 = vpop.f32.mrf.mxu2 }
 0x4f5   :  { %v1690_v39 = vpop.f32.mrf.mxu1  ;;  %v2350_v42 = vadd.f32 %v2349_v56, %v2330_v4 }
 0x4f6   :  { %v2002_v24 = vmax.f32 %v1690_v39, 0.0  ;;  %v2500_v39 = vsel %vm2435_vm4, %v5283_v28, %v2471_v63 }
 0x4f7   :  { %v2442_v44 = vmin.f32 %v2350_v42, 20.0  ;;  %v2505_v58 = vadd.f32 1.0, %v2500_v39  ;;  %vm2437_vm8 = vcmp.gt.f32.partialorder %v2350_v42, 20.0 }
 0x4f9   :  { %v2511_v40 = vsel %vm2509_vm2, %v5283_v28, %v2505_v58 }
 0x4fa   :  { %2516 = vst [vmem:[#allocation2 + $0x8] sm:$0xff] %v2511_v40 }
 0x4fd   :  { %v1693_v34 = vpop.f32.mrf.mxu1 }
 0x4fe   :  { %v2007_v51 = vmax.f32 %v1693_v34, 0.0  ;;  %v2475_v34 = vmul.f32 -0.5, %v2578_v62 }
 0x500   :  { %v2476_v37 = vadd.f32 1.0, %v2475_v34 }
 0x502   :  { %v2369_v13 = vpop.f32.mrf.mxu3 }
 0x505   :  { %v1696_v57 = vpop.f32.mrf.mxu1 }
 0x506   :  { %v2012_v16 = vmax.f32 %v1696_v57, 0.0  ;;  %v2450_v57 = vmul.f32 1.442695, %v2442_v44 }
 0x508   :  { %2581 = vpow2.f32 %v2450_v57 }
 0x50d   :  { %v1699_v32 = vpop.f32.mrf.mxu1 }
 0x50e   :  { %v2017_v20 = vmax.f32 %v1699_v32, 0.0  ;;  %v1962_v32 = vmax.f32 %v5257_v0, 0.0  ;;  %v2582_v49 = vpop.eup %2581  ;;  %v2672_v0 = vld [vmem:[%s5321_s3 + $0x18] sm:$0xff]  ;;  %s2699_s3 = smov [#allocation2]  }
 0x50f   :  { %v2481_v15 = vadd.f32 1.0, %v2582_v49  ;;  %v2484_v17 = vmul.f32 -0.5, %v2582_v49  ;;  %s2525_s20 = sshll.u32 %s2699_s3, 4  ;;  %s2526_s20 = int_to_ptr.vmem [resolvable:$true] %s2525_s20 }
 0x511   :  { %2583 = vlog2.f32 %v2481_v15  ;;  %v2485_v11 = vadd.f32 1.0, %v2484_v17 }
 0x513   :  { %v2486_v47 = vmul.f32 %v2582_v49, %v2485_v11 }
 0x515   :  { %v1702_v27 = vpop.f32.mrf.mxu1 }
 0x516   :  { %v2022_v26 = vmax.f32 %v1702_v27, 0.0  ;;  %v2477_v27 = vmul.f32 %v2578_v62, %v2476_v37 }
 0x518   :  { %v2480_v28 = vsel %vm2479_vm5, %v2477_v27, %v2474_v7 }
 0x51d   :  { %v1705_v29 = vpop.f32.mrf.mxu1 }
 0x51e   :  { %v2027_v48 = vmax.f32 %v1705_v29, 0.0  ;;  %v2501_v29 = vsel %vm2436_vm6, %v5286_v8, %v2480_v28 }
 0x51f   :  { %v2506_v35 = vadd.f32 1.0, %v2501_v29 }
 0x520   :  { %2412 = vmatpush.msra.mxu3 %v2027_v48  ;;  %v2487_v48 = vand.u32 2147483647, %v2582_v49 }
 0x521   :  { %v2512_v46 = vsel %vm2509_vm2, %v5286_v8, %v2506_v35 }
 0x522   :  { %2413 = vmatpush.msra.mxu3 %v2022_v26  ;;  %2517 = vst [vmem:[#allocation2 + $0x10] sm:$0xff] %v2512_v46  ;;  %v2584_v26 = vpop.eup %2583  ;;  %vm2488_vm7 = vcmp.lt.f32.partialorder %v2487_v48, 0.0004427343 }
 0x523   :  { %v2483_v45 = vmul.f32 0.6931472, %v2584_v26 }
 0x524   :  { %2414 = vmatpush.msra.mxu3 %v2017_v20 }
 0x525   :  { %v2489_v31 = vsel %vm2488_vm7, %v2486_v47, %v2483_v45 }
 0x526   :  { %2415 = vmatpush.msra.mxu3 %v2012_v16  ;;  %v2502_v20 = vsel %vm2437_vm8, %v2350_v42, %v2489_v31 }
 0x527   :  { %v2507_v3 = vadd.f32 1.0, %v2502_v20 }
 0x528   :  { %2416 = vmatpush.msra.mxu3 %v2007_v51  ;;  %v2389_v51 = vpop.f32.mrf.mxu0 }
 0x529   :  { %v2513_v16 = vsel %vm2509_vm2, %v2350_v42, %v2507_v3  ;;  %v2390_v30 = vadd.f32 %v2389_v51, %v2369_v13 }
 0x52a   :  { %2417 = vmatpush.msra.mxu3 %v2002_v24  ;;  %2518 = vst [vmem:[#allocation2 + $0x18] sm:$0xff] %v2513_v16 }
 0x52c   :  { %2418 = vmatpush.msra.mxu3 %v1997_v36 }
 0x52e   :  { %2419 = vmatpush.msra.mxu3 %v1992_v52 }
 0x530   :  { %2420 = vmatpush.msra.mxu3 %v1987_v2 }
 0x532   :  { %2421 = vmatpush.msra.mxu3 %v1982_v5 }
 0x534   :  { %2422 = vmatpush.msra.mxu3 %v1977_v54 }
 0x536   :  { %2423 = vmatpush.msra.mxu3 %v1972_v43 }
 0x538   :  { %2424 = vmatpush.msra.mxu3 %v1967_v6 }
 0x53a   :  { %2425 = vmatpush.msra.mxu3 %v1962_v32 }
 0x53c   :  { %2426 = vmatpush.msra.mxu3 %v1957_v22 }
 0x53e   :  { %2427 = vmatpush.msra.mxu3 %v1952_v12 }
 0x53f   :  { %2428 = vmatmul.f32.vlgmr.msra.gmra.mxu3 %v2672_v0 }
 0x542   :  { %v2409_v19 = vpop.f32.mrf.mxu2 }
 0x543   :  { %v2410_v24 = vadd.f32 %v2409_v19, %v2390_v30 }
 0x5c2   :  { %v2429_v1 = vpop.f32.mrf.mxu3 }
 0x5c3   :  { %v2430_v41 = vadd.f32 %v2429_v1, %v2410_v24 }
 0x5c5   :  { %v2443_v8 = vmin.f32 %v2430_v41, 20.0  ;;  %vm2438_vm10 = vcmp.gt.f32.partialorder %v2430_v41, 20.0 }
 0x5c7   :  { %v2452_v50 = vmul.f32 1.442695, %v2443_v8 }
 0x5c9   :  { %2585 = vpow2.f32 %v2452_v50 }
 0x5cf   :  { %v2586_v36 = vpop.eup %2585 }
 0x5d0   :  { %v2490_v38 = vadd.f32 1.0, %v2586_v36  ;;  %v2493_v59 = vmul.f32 -0.5, %v2586_v36  ;;  %v2496_v52 = vand.u32 2147483647, %v2586_v36 }
 0x5d2   :  { %2587 = vlog2.f32 %v2490_v38  ;;  %v2494_v53 = vadd.f32 1.0, %v2493_v59  ;;  %vm2497_vm9 = vcmp.lt.f32.partialorder %v2496_v52, 0.0004427343 }
 0x5d4   :  { %v2495_v33 = vmul.f32 %v2586_v36, %v2494_v53 }
 0x5d8   :  { %v2588_v61 = vpop.eup %2587 }
 0x5d9   :  { %v2492_v9 = vmul.f32 0.6931472, %v2588_v61 }
 0x5db   :  { %v2498_v2 = vsel %vm2497_vm9, %v2495_v33, %v2492_v9 }
 0x5dc   :  { %v2503_v55 = vsel %vm2438_vm10, %v2430_v41, %v2498_v2 }
 0x5dd   :  { %v2508_v21 = vadd.f32 1.0, %v2503_v55 }
 0x5df   :  { %v2514_v18 = vsel %vm2509_vm2, %v2430_v41, %v2508_v21 }
 0x5e0   :  { %2519 = vst [vmem:[#allocation2 + $0x20] sm:$0xff] %v2514_v18 }
 0x5e1   :  { %2530 = dma.vmem_to_hbm [thread:$0]  %s2526_s20, 640, %s2528_s23, [#allocation3]  }
 0x5e2   :  { %2697 = dma.done.wait [#allocation3], 640  }
 0x5e3   :  { %2698 = vsyncadd [#allocation3], 4294966656 }
 0x5e4   :  { %2535 = vsyncpa [#allocation3], 1 }

</bundles_post_ra>
